<compile_context>
chip_gen: v5e
topology: v5e:2x2
jax: 0.10.0
libtpu: 0.0.40
codegen_flags: <defaults>
</compile_context>

<pallas_src>
import functools

import jax
import jax.numpy as jnp
import numpy as np
from jax.experimental import pallas as pl
from jax.experimental.pallas import tpu as pltpu

EPS = 1e-5


@functools.lru_cache(maxsize=None)
def _vmem_limit_bytes():
    """Generation-aware scoped-VMEM limit (v5e/v6e: 128 MiB phys, v7x: 64 MiB)."""
    cap = 128 * 1024 * 1024
    try:
        info = pltpu.get_tpu_info()
        cap = int(getattr(info, "vmem_capacity_bytes", cap))
    except Exception:
        pass
    return int(min(48 * 1024 * 1024, 0.6 * cap))


def _cparams(semantics):
    return pltpu.CompilerParams(dimension_semantics=semantics,
                                vmem_limit_bytes=_vmem_limit_bytes())


def _pick_row_tile(m, c_in, c_out, requested=None, max_tile=1024,
                   bytes_budget=8 * 1024 * 1024):
    """Largest row tile dividing m, multiple of 8, under a rough VMEM budget.

    Budget models the double-buffered bf16 input tile + f32-ish output tile.
    """
    per_row = 2 * (2 * c_in + 4 * c_out)          # 2 buffers, bf16 in / f32 out
    cap = min(max_tile, max(8, bytes_budget // max(per_row, 1)))
    cap = max(8, (cap // 8) * 8)
    if (requested is not None and requested <= cap and requested % 8 == 0
            and m % requested == 0):
        return requested
    best = None
    for t in range(8, min(m, cap) + 1, 8):
        if m % t == 0:
            best = t
    if best is not None:
        return best
    if m * per_row <= bytes_budget:
        return m                                   # small m: single block is fine
    # TODO(synk): pad M to a multiple of 8 (zero rows are BN-neutral) instead of
    # failing on pathological row counts.
    raise ValueError(f"no VMEM-friendly row tile for m={m}")


# ---------------------------------------------------------------------------
# In-kernel helpers (training-mode BN from (sum, sumsq) statistics)
# ---------------------------------------------------------------------------
def _affine_from_stats(sum_ref, sq_ref, g_ref, b_ref, count, eps):
    inv = 1.0 / float(count)
    mean = sum_ref[...] * inv                       # (1, C) f32
    var = sq_ref[...] * inv - mean * mean           # biased variance
    scale = g_ref[...] * jax.lax.rsqrt(var + eps)
    shift = b_ref[...] - mean * scale
    return scale, shift


def _accumulate_stats(sum_ref, sq_ref, y):
    sum_ref[...] += jnp.sum(y, axis=0, keepdims=True)
    sq_ref[...] += jnp.sum(y * y, axis=0, keepdims=True)


def _init_stats(sum_ref, sq_ref):
    @pl.when(pl.program_id(0) == 0)
    def _():
        sum_ref[...] = jnp.zeros_like(sum_ref)
        sq_ref[...] = jnp.zeros_like(sq_ref)


# ---------------------------------------------------------------------------
# Pallas kernels
# ---------------------------------------------------------------------------
def matmul_stats_kernel(x_ref, w_ref, y_ref, sum_ref, sq_ref):
    """1x1 conv as a row-tiled matmul; bf16 output + per-channel BN stats."""
    _init_stats(sum_ref, sq_ref)
    y = jnp.dot(x_ref[...], w_ref[...], preferred_element_type=jnp.float32)
    y_bf = y.astype(y_ref.dtype)
    y_ref[...] = y_bf
    _accumulate_stats(sum_ref, sq_ref, y_bf.astype(jnp.float32))


def conv3x3_bn_stats_kernel(y1_ref, s1sum_ref, s1sq_ref, g1_ref, b1_ref,
                            w2_ref, y2_ref, sum2_ref, sq2_ref, act_pad,
                            *, count, stride, out_hw, eps):
    """Fused bn1-normalize + ReLU + 3x3 conv (stride, pad=1) + bn2 stats.

    The 1-px zero halo lives in the `act_pad` VMEM scratch: it is zeroed once
    at grid step 0 and only the interior is rewritten per image, so no padded
    activation ever round-trips HBM.
    """
    _init_stats(sum2_ref, sq2_ref)
    Ho, Wo = out_hw
    _, H, W, C = y1_ref.shape

    @pl.when(pl.program_id(0) == 0)
    def _():
        act_pad[...] = jnp.zeros_like(act_pad)

    scale, shift = _affine_from_stats(s1sum_ref, s1sq_ref, g1_ref, b1_ref,
                                      count, eps)
    y1 = y1_ref[0].astype(jnp.float32)                       # (H, W, C)
    act_pad[pl.ds(1, H), pl.ds(1, W), :] = jnp.maximum(y1 * scale + shift, 0.0)

    act = act_pad[...]                                       # (H+2, W+2, C) f32
    w2 = w2_ref[...]                                         # (3, 3, C, Cout)
    strides = None if stride == 1 else (stride, stride, 1)
    acc = None
    for kh in range(3):
        for kw in range(3):
            limit = (kh + (Ho - 1) * stride + 1,
                     kw + (Wo - 1) * stride + 1, C)
            patch = jax.lax.slice(act, (kh, kw, 0), limit, strides)
            tap = jnp.dot(patch.reshape(Ho * Wo, C).astype(w2.dtype),
                          w2[kh, kw], preferred_element_type=jnp.float32)
            acc = tap if acc is None else acc + tap

    y2_bf = acc.astype(y2_ref.dtype)
    y2_ref[...] = y2_bf
    _accumulate_stats(sum2_ref, sq2_ref, y2_bf.astype(jnp.float32))


def bn_relu_matmul_stats_kernel(y_in_ref, sum_in_ref, sq_in_ref,
                                g_ref, b_ref, w_ref,
                                y_ref, sum_ref, sq_ref, *, count, eps):
    """Fused bn2-normalize + ReLU + 1x1 conv3 + bn3 stats (row-tiled)."""
    _init_stats(sum_ref, sq_ref)
    scale, shift = _affine_from_stats(sum_in_ref, sq_in_ref, g_ref, b_ref,
                                      count, eps)
    y_in = y_in_ref[...].astype(jnp.float32)
    act = jnp.maximum(y_in * scale + shift, 0.0).astype(w_ref.dtype)
    y = jnp.dot(act, w_ref[...], preferred_element_type=jnp.float32)
    y_bf = y.astype(y_ref.dtype)
    y_ref[...] = y_bf
    _accumulate_stats(sum_ref, sq_ref, y_bf.astype(jnp.float32))


def conv1x1_strided_stats_kernel(x_ref, w_ref, y_ref, sum_ref, sq_ref,
                                 *, stride, out_hw):
    """Shortcut 1x1 conv (bf16 input); strided spatial subsample in-kernel."""
    _init_stats(sum_ref, sq_ref)
    Ho, Wo = out_hw
    x = x_ref[0].astype(jnp.float32)                         # (H, W, Cin)
    Cin = x.shape[-1]
    strides = None if stride == 1 else (stride, stride, 1)
    limit = ((Ho - 1) * stride + 1, (Wo - 1) * stride + 1, Cin)
    xs = jax.lax.slice(x, (0, 0, 0), limit, strides)
    y = jnp.dot(xs.reshape(Ho * Wo, Cin).astype(w_ref.dtype), w_ref[...],
                preferred_element_type=jnp.float32)
    y_bf = y.astype(y_ref.dtype)
    y_ref[...] = y_bf
    _accumulate_stats(sum_ref, sq_ref, y_bf.astype(jnp.float32))


def bn_add_relu_kernel(y_ref, sum_ref, sq_ref, g_ref, b_ref, sc_ref, o_ref,
                       *, count, eps):
    """bn3 normalize + identity residual + ReLU (row-tiled, parallel)."""
    scale, shift = _affine_from_stats(sum_ref, sq_ref, g_ref, b_ref, count, eps)
    y = y_ref[...].astype(jnp.float32)
    o_ref[...] = jnp.maximum(y * scale + shift + sc_ref[...], 0.0)


def bn_add_bn_relu_kernel(y_ref, sum_ref, sq_ref, g_ref, b_ref,
                          ys_ref, ssum_ref, ssq_ref, gs_ref, bs_ref, o_ref,
                          *, count, eps):
    """bn3 normalize + shortcut-bn normalize + add + ReLU (row-tiled)."""
    scale, shift = _affine_from_stats(sum_ref, sq_ref, g_ref, b_ref, count, eps)
    sscale, sshift = _affine_from_stats(ssum_ref, ssq_ref, gs_ref, bs_ref,
                                        count, eps)
    y = y_ref[...].astype(jnp.float32)
    ys = ys_ref[...].astype(jnp.float32)
    o_ref[...] = jnp.maximum(y * scale + shift + ys * sscale + sshift, 0.0)


# ---------------------------------------------------------------------------
# pallas_call wrappers
# ---------------------------------------------------------------------------
def _conv1x1_stats(x2d, w, *, row_tile):
    M, Cin = x2d.shape
    Cout = w.shape[1]
    tm = row_tile
    return pl.pallas_call(
        matmul_stats_kernel,
        grid=(M // tm,),
        in_specs=[
            pl.BlockSpec((tm, Cin), lambda i: (i, 0)),
            pl.BlockSpec((Cin, Cout), lambda i: (0, 0)),      # weights resident
        ],
        out_specs=(
            pl.BlockSpec((tm, Cout), lambda i: (i, 0)),
            pl.BlockSpec((1, Cout), lambda i: (0, 0)),        # resident accum
            pl.BlockSpec((1, Cout), lambda i: (0, 0)),
        ),
        out_shape=(
            jax.ShapeDtypeStruct((M, Cout), jnp.bfloat16),
            jax.ShapeDtypeStruct((1, Cout), jnp.float32),
            jax.ShapeDtypeStruct((1, Cout), jnp.float32),
        ),
        compiler_params=_cparams(("arbitrary",)),
    )(x2d, w)


def _conv3x3_bn_stats(y1_nhwc, s1sum, s1sq, g1, b1, w2,
                      *, count, stride, out_hw, eps):
    N, H, W, C = y1_nhwc.shape
    Cout = w2.shape[-1]
    Ho, Wo = out_hw
    kern = functools.partial(conv3x3_bn_stats_kernel, count=count,
                             stride=stride, out_hw=out_hw, eps=eps)
    return pl.pallas_call(
        kern,
        grid=(N,),
        in_specs=[
            pl.BlockSpec((1, H, W, C), lambda b: (b, 0, 0, 0)),
            pl.BlockSpec((1, C), lambda b: (0, 0)),
            pl.BlockSpec((1, C), lambda b: (0, 0)),
            pl.BlockSpec((1, C), lambda b: (0, 0)),
            pl.BlockSpec((1, C), lambda b: (0, 0)),
            pl.BlockSpec((3, 3, C, Cout), lambda b: (0, 0, 0, 0)),
        ],
        out_specs=(
            pl.BlockSpec((Ho * Wo, Cout), lambda b: (b, 0)),
            pl.BlockSpec((1, Cout), lambda b: (0, 0)),
            pl.BlockSpec((1, Cout), lambda b: (0, 0)),
        ),
        out_shape=(
            jax.ShapeDtypeStruct((N * Ho * Wo, Cout), jnp.bfloat16),
            jax.ShapeDtypeStruct((1, Cout), jnp.float32),
            jax.ShapeDtypeStruct((1, Cout), jnp.float32),
        ),
        scratch_shapes=[pltpu.VMEM((H + 2, W + 2, C), jnp.float32)],
        compiler_params=_cparams(("arbitrary",)),
    )(y1_nhwc, s1sum, s1sq, g1.reshape(1, -1), b1.reshape(1, -1), w2)


def _bn_relu_conv1x1_stats(y_in, s_sum, s_sq, g, b, w, *, count, eps, row_tile):
    M, C = y_in.shape
    Cout = w.shape[1]
    tm = row_tile
    kern = functools.partial(bn_relu_matmul_stats_kernel, count=count, eps=eps)
    return pl.pallas_call(
        kern,
        grid=(M // tm,),
        in_specs=[
            pl.BlockSpec((tm, C), lambda i: (i, 0)),
            pl.BlockSpec((1, C), lambda i: (0, 0)),
            pl.BlockSpec((1, C), lambda i: (0, 0)),
            pl.BlockSpec((1, C), lambda i: (0, 0)),
            pl.BlockSpec((1, C), lambda i: (0, 0)),
            pl.BlockSpec((C, Cout), lambda i: (0, 0)),
        ],
        out_specs=(
            pl.BlockSpec((tm, Cout), lambda i: (i, 0)),
            pl.BlockSpec((1, Cout), lambda i: (0, 0)),
            pl.BlockSpec((1, Cout), lambda i: (0, 0)),
        ),
        out_shape=(
            jax.ShapeDtypeStruct((M, Cout), jnp.bfloat16),
            jax.ShapeDtypeStruct((1, Cout), jnp.float32),
            jax.ShapeDtypeStruct((1, Cout), jnp.float32),
        ),
        compiler_params=_cparams(("arbitrary",)),
    )(y_in, s_sum, s_sq, g.reshape(1, -1), b.reshape(1, -1), w)


def _conv1x1_strided_stats(x_nhwc_bf, w, *, stride, out_hw):
    N, H, W, Cin = x_nhwc_bf.shape
    Cout = w.shape[1]
    Ho, Wo = out_hw
    kern = functools.partial(conv1x1_strided_stats_kernel, stride=stride,
                             out_hw=out_hw)
    return pl.pallas_call(
        kern,
        grid=(N,),
        in_specs=[
            pl.BlockSpec((1, H, W, Cin), lambda b: (b, 0, 0, 0)),
            pl.BlockSpec((Cin, Cout), lambda b: (0, 0)),
        ],
        out_specs=(
            pl.BlockSpec((Ho * Wo, Cout), lambda b: (b, 0)),
            pl.BlockSpec((1, Cout), lambda b: (0, 0)),
            pl.BlockSpec((1, Cout), lambda b: (0, 0)),
        ),
        out_shape=(
            jax.ShapeDtypeStruct((N * Ho * Wo, Cout), jnp.bfloat16),
            jax.ShapeDtypeStruct((1, Cout), jnp.float32),
            jax.ShapeDtypeStruct((1, Cout), jnp.float32),
        ),
        compiler_params=_cparams(("arbitrary",)),
    )(x_nhwc_bf, w)


def _bn_add_relu(y, s_sum, s_sq, g, b, shortcut2d, *, count, eps, row_tile):
    M, Cout = y.shape
    tm = row_tile
    kern = functools.partial(bn_add_relu_kernel, count=count, eps=eps)
    return pl.pallas_call(
        kern,
        grid=(M // tm,),
        in_specs=[
            pl.BlockSpec((tm, Cout), lambda i: (i, 0)),
            pl.BlockSpec((1, Cout), lambda i: (0, 0)),
            pl.BlockSpec((1, Cout), lambda i: (0, 0)),
            pl.BlockSpec((1, Cout), lambda i: (0, 0)),
            pl.BlockSpec((1, Cout), lambda i: (0, 0)),
            pl.BlockSpec((tm, Cout), lambda i: (i, 0)),
        ],
        out_specs=pl.BlockSpec((tm, Cout), lambda i: (i, 0)),
        out_shape=jax.ShapeDtypeStruct((M, Cout), jnp.float32),
        compiler_params=_cparams(("parallel",)),
    )(y, s_sum, s_sq, g.reshape(1, -1), b.reshape(1, -1), shortcut2d)


def _bn_add_bn_relu(y, s_sum, s_sq, g, b, ys, ssum, ssq, gs, bs,
                    *, count, eps, row_tile):
    M, Cout = y.shape
    tm = row_tile
    kern = functools.partial(bn_add_bn_relu_kernel, count=count, eps=eps)
    return pl.pallas_call(
        kern,
        grid=(M // tm,),
        in_specs=[
            pl.BlockSpec((tm, Cout), lambda i: (i, 0)),
            pl.BlockSpec((1, Cout), lambda i: (0, 0)),
            pl.BlockSpec((1, Cout), lambda i: (0, 0)),
            pl.BlockSpec((1, Cout), lambda i: (0, 0)),
            pl.BlockSpec((1, Cout), lambda i: (0, 0)),
            pl.BlockSpec((tm, Cout), lambda i: (i, 0)),
            pl.BlockSpec((1, Cout), lambda i: (0, 0)),
            pl.BlockSpec((1, Cout), lambda i: (0, 0)),
            pl.BlockSpec((1, Cout), lambda i: (0, 0)),
            pl.BlockSpec((1, Cout), lambda i: (0, 0)),
        ],
        out_specs=pl.BlockSpec((tm, Cout), lambda i: (i, 0)),
        out_shape=jax.ShapeDtypeStruct((M, Cout), jnp.float32),
        compiler_params=_cparams(("parallel",)),
    )(y, s_sum, s_sq, g.reshape(1, -1), b.reshape(1, -1),
      ys, ssum, ssq, gs.reshape(1, -1), bs.reshape(1, -1))


# ---------------------------------------------------------------------------
# Forward pass (PyTorch Bottleneck, training-mode BatchNorm)
# ---------------------------------------------------------------------------
def bottleneck_forward(x_nchw, params, stride=1, *, row_tile=None, eps=EPS):
    N, Cin, H, W = x_nchw.shape
    planes = params["w1"].shape[1]
    Cout = params["w3"].shape[1]                                   # 4 * planes

    Ho = (H + 2 - 3) // stride + 1
    Wo = (W + 2 - 3) // stride + 1
    M0 = N * H * W
    M1 = N * Ho * Wo

    # NHWC bf16 for the MXU; f32 NHWC is only built for the identity residual.
    # TODO(synk): fold this transpose and the final NHWC->NCHW transpose into
    # the first / last Pallas kernels (in-kernel XLU transpose).
    x_bf = jnp.transpose(x_nchw, (0, 2, 3, 1)).astype(jnp.bfloat16)

    w1 = params["w1"].astype(jnp.bfloat16)
    w2 = params["w2"].astype(jnp.bfloat16)
    w3 = params["w3"].astype(jnp.bfloat16)

    tm0 = _pick_row_tile(M0, Cin, planes, requested=row_tile)
    tm1 = _pick_row_tile(M1, planes, Cout, requested=row_tile)

    # conv1 (1x1): bf16 output + per-channel (sum, sumsq) for bn1
    y1, s1sum, s1sq = _conv1x1_stats(x_bf.reshape(M0, Cin), w1, row_tile=tm0)

    # conv2 (3x3, stride, pad=1) fused with bn1-normalize + ReLU; the zero
    # halo lives in a VMEM scratch inside the kernel (no XLA pad / mask).
    y2, s2sum, s2sq = _conv3x3_bn_stats(
        y1.reshape(N, H, W, planes), s1sum, s1sq, params["g1"], params["b1"],
        w2, count=M0, stride=stride, out_hw=(Ho, Wo), eps=eps)

    # conv3 (1x1) fused with bn2-normalize + ReLU
    y3, s3sum, s3sq = _bn_relu_conv1x1_stats(
        y2, s2sum, s2sq, params["g2"], params["b2"], w3,
        count=M1, eps=eps, row_tile=tm1)

    # shortcut branch + bn3 + residual add + ReLU (fused epilogue)
    if stride != 1 or Cin != Cout:
        ws = params["ws"].astype(jnp.bfloat16)
        if stride == 1:
            ys, ssum, ssq = _conv1x1_stats(x_bf.reshape(M0, Cin), ws,
                                           row_tile=tm0)
        else:
            ys, ssum, ssq = _conv1x1_strided_stats(x_bf, ws, stride=stride,
                                                   out_hw=(Ho, Wo))
        out = _bn_add_bn_relu(y3, s3sum, s3sq, params["g3"], params["b3"],
                              ys, ssum, ssq, params["gs"], params["bs"],
                              count=M1, eps=eps, row_tile=tm1)
    else:
        x_res = jnp.transpose(x_nchw, (0, 2, 3, 1)).astype(
            jnp.float32).reshape(M1, Cout)
        out = _bn_add_relu(y3, s3sum, s3sq, params["g3"], params["b3"], x_res,
                           count=M1, eps=eps, row_tile=tm1)

    return jnp.transpose(out.reshape(N, Ho, Wo, Cout), (0, 3, 1, 2))  # NCHW


# ---------------------------------------------------------------------------
# Pure-JAX reference.  quantize=True mirrors the kernels' quantization points
# exactly: conv inputs/weights rounded to bf16, f32 accumulation, conv outputs
# rounded to bf16 before BatchNorm, all BN / residual math in f32.
# ---------------------------------------------------------------------------
def _reference(x_nchw, params, stride, *, quantize=False):
    if quantize:
        q = lambda t: t.astype(jnp.bfloat16).astype(jnp.float32)
    else:
        q = lambda t: t

    def conv(x, w_hwio, s, pad):
        return jax.lax.conv_general_dilated(
            x, w_hwio, (s, s), pad, dimension_numbers=("NCHW", "HWIO", "NCHW"))

    def bn(y, gamma, beta):
        mean = jnp.mean(y, axis=(0, 2, 3), keepdims=True)
        var = jnp.mean((y - mean) ** 2, axis=(0, 2, 3), keepdims=True)
        return ((y - mean) / jnp.sqrt(var + EPS)
                * gamma.reshape(1, -1, 1, 1) + beta.reshape(1, -1, 1, 1))

    xf = x_nchw.astype(jnp.float32)
    xq = q(xf)
    Cin = xf.shape[1]
    Cout = params["w3"].shape[1]

    w1 = q(params["w1"]).reshape(1, 1, *params["w1"].shape)        # HWIO
    w2 = q(params["w2"])
    w3 = q(params["w3"]).reshape(1, 1, *params["w3"].shape)

    out = jax.nn.relu(bn(q(conv(xq, w1, 1, "VALID")),
                         params["g1"], params["b1"]))
    out = jax.nn.relu(bn(q(conv(q(out), w2, stride, ((1, 1), (1, 1)))),
                         params["g2"], params["b2"]))
    out = bn(q(conv(q(out), w3, 1, "VALID")), params["g3"], params["b3"])
    if stride != 1 or Cin != Cout:
        ws = q(params["ws"]).reshape(1, 1, *params["ws"].shape)
        sc = bn(q(conv(xq, ws, stride, "VALID")), params["gs"], params["bs"])
    else:
        sc = xf
    return jax.nn.relu(out + sc)


# ---------------------------------------------------------------------------
if __name__ == "__main__":
    key = jax.random.PRNGKey(0)
    keys = jax.random.split(key, 10)

    in_planes, planes, stride = 8, 4, 1
    expansion = 4
    N, H, W = 2, 16, 16

    def bn_params(k, c):
        ka, kb = jax.random.split(k)
        return (1.0 + 0.1 * jax.random.normal(ka, (c,), jnp.float32),
                0.1 * jax.random.normal(kb, (c,), jnp.float32))

    g1, b1 = bn_params(keys[4], planes)
    g2, b2 = bn_params(keys[5], planes)
    g3, b3 = bn_params(keys[6], expansion * planes)
    gs, bs = bn_params(keys[7], expansion * planes)

    params = {
        # 1x1 convs stored as (Cin, Cout); 3x3 conv stored HWIO (3,3,Cin,Cout)
        "w1": 0.1 * jax.random.normal(keys[0], (in_planes, planes), jnp.float32),
        "w2": 0.1 * jax.random.normal(keys[1], (3, 3, planes, planes), jnp.float32),
        "w3": 0.1 * jax.random.normal(keys[2], (planes, expansion * planes), jnp.float32),
        "ws": 0.1 * jax.random.normal(keys[3], (in_planes, expansion * planes), jnp.float32),
        "g1": g1, "b1": b1, "g2": g2, "b2": b2,
        "g3": g3, "b3": b3, "gs": gs, "bs": bs,
    }

    x = jax.random.normal(keys[8], (N, in_planes, H, W), jnp.float32)

    # row_tile=128 -> 4 row tiles per 1x1 conv: exercises the pipelined grid
    # and the cross-tile (sum, sumsq) BN reduction.
    fwd = jax.jit(functools.partial(bottleneck_forward, stride=stride,
                                    row_tile=128))
    out = jax.block_until_ready(fwd(x, params))

    # Tight check against the bf16-faithful reference (same quantization
    # points as the kernels, f32 accumulation / BN).
    ref_bf16 = _reference(x, params, stride, quantize=True)
    np.testing.assert_allclose(np.asarray(out), np.asarray(ref_bf16),
                               rtol=1e-2, atol=1e-2)

    # Loose sanity check against the pure-f32 reference (bf16 MXU inputs and
    # bf16 intermediate activations).
    ref_f32 = _reference(x, params, stride, quantize=False)
    np.testing.assert_allclose(np.asarray(out), np.asarray(ref_f32),
                               rtol=1e-1, atol=1e-1)

    print("KERNEL_OK")
</pallas_src>

<mosaic_0001>
module attributes {stable_mosaic.version = 11 : i64} {
  func.func @matmul_stats_kernel(%arg0: i32, %arg1: memref<128x8xbf16, #tpu.memory_space<vmem>>, %arg2: memref<8x16xbf16, #tpu.memory_space<vmem>>, %arg3: memref<128x16xbf16, #tpu.memory_space<vmem>>, %arg4: memref<1x16xf32, #tpu.memory_space<vmem>>, %arg5: memref<1x16xf32, #tpu.memory_space<vmem>>) attributes {dimension_semantics = [#tpu.dimension_semantics<arbitrary>], iteration_bounds = array<i64: 4>, scalar_prefetch = 0 : i64, scratch_operands = 0 : i64, tpu.core_type = #tpu.core_type<tc>, window_params = [{transform_indices = @transform_0, window_bounds = array<i64: 128, 8>}, {pipeline_mode = #tpu.pipeline_mode<synchronous>, transform_indices = @transform_1, window_bounds = array<i64: 8, 16>}, {transform_indices = @transform_2, window_bounds = array<i64: 128, 16>}, {pipeline_mode = #tpu.pipeline_mode<synchronous>, transform_indices = @transform_3, window_bounds = array<i64: 1, 16>}, {pipeline_mode = #tpu.pipeline_mode<synchronous>, transform_indices = @transform_4, window_bounds = array<i64: 1, 16>}]} {
    %c0_i32 = arith.constant 0 : i32
    %0 = arith.cmpi eq, %arg0, %c0_i32 : i32
    %1 = arith.extui %0 : i1 to i32
    %c0_i32_0 = arith.constant 0 : i32
    %2 = arith.cmpi ne, %1, %c0_i32_0 : i32
    scf.if %2 {
      %cst_16 = arith.constant 0.000000e+00 : f32
      %20 = vector.broadcast %cst_16 : f32 to vector<1x16xf32>
      %c0_17 = arith.constant 0 : index
      %c0_18 = arith.constant 0 : index
      %21 = vector.load %arg4[%c0_17, %c0_18] : memref<1x16xf32, #tpu.memory_space<vmem>>, vector<1x16xf32>
      tpu.vector_store %arg4[%c0_17, %c0_18], %20 {strides = array<i32>} : memref<1x16xf32, #tpu.memory_space<vmem>>, vector<1x16xf32>,
      %cst_19 = arith.constant 0.000000e+00 : f32
      %22 = vector.broadcast %cst_19 : f32 to vector<1x16xf32>
      %c0_20 = arith.constant 0 : index
      %c0_21 = arith.constant 0 : index
      %23 = vector.load %arg5[%c0_20, %c0_21] : memref<1x16xf32, #tpu.memory_space<vmem>>, vector<1x16xf32>
      tpu.vector_store %arg5[%c0_20, %c0_21], %22 {strides = array<i32>} : memref<1x16xf32, #tpu.memory_space<vmem>>, vector<1x16xf32>,
    } else {
    }
    %c0 = arith.constant 0 : index
    %c0_1 = arith.constant 0 : index
    %3 = vector.load %arg1[%c0, %c0_1] : memref<128x8xbf16, #tpu.memory_space<vmem>>, vector<128x8xbf16>
    %c0_2 = arith.constant 0 : index
    %c0_3 = arith.constant 0 : index
    %4 = vector.load %arg2[%c0_2, %c0_3] : memref<8x16xbf16, #tpu.memory_space<vmem>>, vector<8x16xbf16>
    %cst = arith.constant dense<0.000000e+00> : vector<128x16xf32>
    %5 = tpu.matmul %3, %4, %cst {dimension_numbers = #tpu.dot_dimension_numbers<[1], [0], [0], [1], [0, 0, 1, 1], [], []>} : vector<128x8xbf16>, vector<8x16xbf16>, vector<128x16xf32> -> vector<128x16xf32>
    %6 = arith.truncf %5 : vector<128x16xf32> to vector<128x16xbf16>
    %c0_4 = arith.constant 0 : index
    %c0_5 = arith.constant 0 : index
    %7 = vector.load %arg3[%c0_4, %c0_5] : memref<128x16xbf16, #tpu.memory_space<vmem>>, vector<128x16xbf16>
    tpu.vector_store %arg3[%c0_4, %c0_5], %6 {strides = array<i32>} : memref<128x16xbf16, #tpu.memory_space<vmem>>, vector<128x16xbf16>,
    %8 = arith.extf %6 : vector<128x16xbf16> to vector<128x16xf32>
    %c0_6 = arith.constant 0 : index
    %c0_7 = arith.constant 0 : index
    %9 = vector.load %arg4[%c0_6, %c0_7] : memref<1x16xf32, #tpu.memory_space<vmem>>, vector<1x16xf32>
    %cst_8 = arith.constant dense<0.000000e+00> : vector<16xf32>
    %10 = vector.multi_reduction <add>, %8, %cst_8 [0] : vector<128x16xf32> to vector<16xf32>
    %11 = vector.shape_cast %10 : vector<16xf32> to vector<1x16xf32>
    %12 = arith.addf %9, %11 : vector<1x16xf32>
    %c0_9 = arith.constant 0 : index
    %c0_10 = arith.constant 0 : index
    %13 = vector.load %arg4[%c0_9, %c0_10] : memref<1x16xf32, #tpu.memory_space<vmem>>, vector<1x16xf32>
    tpu.vector_store %arg4[%c0_9, %c0_10], %12 {strides = array<i32>} : memref<1x16xf32, #tpu.memory_space<vmem>>, vector<1x16xf32>,
    %c0_11 = arith.constant 0 : index
    %c0_12 = arith.constant 0 : index
    %14 = vector.load %arg5[%c0_11, %c0_12] : memref<1x16xf32, #tpu.memory_space<vmem>>, vector<1x16xf32>
    %15 = arith.mulf %8, %8 : vector<128x16xf32>
    %cst_13 = arith.constant dense<0.000000e+00> : vector<16xf32>
    %16 = vector.multi_reduction <add>, %15, %cst_13 [0] : vector<128x16xf32> to vector<16xf32>
    %17 = vector.shape_cast %16 : vector<16xf32> to vector<1x16xf32>
    %18 = arith.addf %14, %17 : vector<1x16xf32>
    %c0_14 = arith.constant 0 : index
    %c0_15 = arith.constant 0 : index
    %19 = vector.load %arg5[%c0_14, %c0_15] : memref<1x16xf32, #tpu.memory_space<vmem>>, vector<1x16xf32>
    tpu.vector_store %arg5[%c0_14, %c0_15], %18 {strides = array<i32>} : memref<1x16xf32, #tpu.memory_space<vmem>>, vector<1x16xf32>,
    return
  }
  func.func @transform_0(%arg0: i32) -> (i32, i32) {
    %c0_i32 = arith.constant 0 : i32
    %c0_i32_0 = arith.constant 0 : i32
    return %arg0, %c0_i32 : i32, i32
  }
  func.func @transform_1(%arg0: i32) -> (i32, i32) {
    %c0_i32 = arith.constant 0 : i32
    %c0_i32_0 = arith.constant 0 : i32
    %c0_i32_1 = arith.constant 0 : i32
    return %c0_i32, %c0_i32_0 : i32, i32
  }
  func.func @transform_2(%arg0: i32) -> (i32, i32) {
    %c0_i32 = arith.constant 0 : i32
    %c0_i32_0 = arith.constant 0 : i32
    return %arg0, %c0_i32 : i32, i32
  }
  func.func @transform_3(%arg0: i32) -> (i32, i32) {
    %c0_i32 = arith.constant 0 : i32
    %c0_i32_0 = arith.constant 0 : i32
    %c0_i32_1 = arith.constant 0 : i32
    return %c0_i32, %c0_i32_0 : i32, i32
  }
  func.func @transform_4(%arg0: i32) -> (i32, i32) {
    %c0_i32 = arith.constant 0 : i32
    %c0_i32_0 = arith.constant 0 : i32
    %c0_i32_1 = arith.constant 0 : i32
    return %c0_i32, %c0_i32_0 : i32, i32
  }
}

module attributes {stable_mosaic.version = 11 : i64} {
  func.func @matmul_stats_kernel(%arg0: i32, %arg1: memref<128x8xbf16, #tpu.memory_space<vmem>>, %arg2: memref<8x4xbf16, #tpu.memory_space<vmem>>, %arg3: memref<128x4xbf16, #tpu.memory_space<vmem>>, %arg4: memref<1x4xf32, #tpu.memory_space<vmem>>, %arg5: memref<1x4xf32, #tpu.memory_space<vmem>>) attributes {dimension_semantics = [#tpu.dimension_semantics<arbitrary>], iteration_bounds = array<i64: 4>, scalar_prefetch = 0 : i64, scratch_operands = 0 : i64, tpu.core_type = #tpu.core_type<tc>, window_params = [{transform_indices = @transform_0, window_bounds = array<i64: 128, 8>}, {pipeline_mode = #tpu.pipeline_mode<synchronous>, transform_indices = @transform_1, window_bounds = array<i64: 8, 4>}, {transform_indices = @transform_2, window_bounds = array<i64: 128, 4>}, {pipeline_mode = #tpu.pipeline_mode<synchronous>, transform_indices = @transform_3, window_bounds = array<i64: 1, 4>}, {pipeline_mode = #tpu.pipeline_mode<synchronous>, transform_indices = @transform_4, window_bounds = array<i64: 1, 4>}]} {
    %c0_i32 = arith.constant 0 : i32
    %0 = arith.cmpi eq, %arg0, %c0_i32 : i32
    %1 = arith.extui %0 : i1 to i32
    %c0_i32_0 = arith.constant 0 : i32
    %2 = arith.cmpi ne, %1, %c0_i32_0 : i32
    scf.if %2 {
      %cst_16 = arith.constant 0.000000e+00 : f32
      %20 = vector.broadcast %cst_16 : f32 to vector<1x4xf32>
      %c0_17 = arith.constant 0 : index
      %c0_18 = arith.constant 0 : index
      %21 = vector.load %arg4[%c0_17, %c0_18] : memref<1x4xf32, #tpu.memory_space<vmem>>, vector<1x4xf32>
      tpu.vector_store %arg4[%c0_17, %c0_18], %20 {strides = array<i32>} : memref<1x4xf32, #tpu.memory_space<vmem>>, vector<1x4xf32>,
      %cst_19 = arith.constant 0.000000e+00 : f32
      %22 = vector.broadcast %cst_19 : f32 to vector<1x4xf32>
      %c0_20 = arith.constant 0 : index
      %c0_21 = arith.constant 0 : index
      %23 = vector.load %arg5[%c0_20, %c0_21] : memref<1x4xf32, #tpu.memory_space<vmem>>, vector<1x4xf32>
      tpu.vector_store %arg5[%c0_20, %c0_21], %22 {strides = array<i32>} : memref<1x4xf32, #tpu.memory_space<vmem>>, vector<1x4xf32>,
    } else {
    }
    %c0 = arith.constant 0 : index
    %c0_1 = arith.constant 0 : index
    %3 = vector.load %arg1[%c0, %c0_1] : memref<128x8xbf16, #tpu.memory_space<vmem>>, vector<128x8xbf16>
    %c0_2 = arith.constant 0 : index
    %c0_3 = arith.constant 0 : index
    %4 = vector.load %arg2[%c0_2, %c0_3] : memref<8x4xbf16, #tpu.memory_space<vmem>>, vector<8x4xbf16>
    %cst = arith.constant dense<0.000000e+00> : vector<128x4xf32>
    %5 = tpu.matmul %3, %4, %cst {dimension_numbers = #tpu.dot_dimension_numbers<[1], [0], [0], [1], [0, 0, 1, 1], [], []>} : vector<128x8xbf16>, vector<8x4xbf16>, vector<128x4xf32> -> vector<128x4xf32>
    %6 = arith.truncf %5 : vector<128x4xf32> to vector<128x4xbf16>
    %c0_4 = arith.constant 0 : index
    %c0_5 = arith.constant 0 : index
    %7 = vector.load %arg3[%c0_4, %c0_5] : memref<128x4xbf16, #tpu.memory_space<vmem>>, vector<128x4xbf16>
    tpu.vector_store %arg3[%c0_4, %c0_5], %6 {strides = array<i32>} : memref<128x4xbf16, #tpu.memory_space<vmem>>, vector<128x4xbf16>,
    %8 = arith.extf %6 : vector<128x4xbf16> to vector<128x4xf32>
    %c0_6 = arith.constant 0 : index
    %c0_7 = arith.constant 0 : index
    %9 = vector.load %arg4[%c0_6, %c0_7] : memref<1x4xf32, #tpu.memory_space<vmem>>, vector<1x4xf32>
    %cst_8 = arith.constant dense<0.000000e+00> : vector<4xf32>
    %10 = vector.multi_reduction <add>, %8, %cst_8 [0] : vector<128x4xf32> to vector<4xf32>
    %11 = vector.shape_cast %10 : vector<4xf32> to vector<1x4xf32>
    %12 = arith.addf %9, %11 : vector<1x4xf32>
    %c0_9 = arith.constant 0 : index
    %c0_10 = arith.constant 0 : index
    %13 = vector.load %arg4[%c0_9, %c0_10] : memref<1x4xf32, #tpu.memory_space<vmem>>, vector<1x4xf32>
    tpu.vector_store %arg4[%c0_9, %c0_10], %12 {strides = array<i32>} : memref<1x4xf32, #tpu.memory_space<vmem>>, vector<1x4xf32>,
    %c0_11 = arith.constant 0 : index
    %c0_12 = arith.constant 0 : index
    %14 = vector.load %arg5[%c0_11, %c0_12] : memref<1x4xf32, #tpu.memory_space<vmem>>, vector<1x4xf32>
    %15 = arith.mulf %8, %8 : vector<128x4xf32>
    %cst_13 = arith.constant dense<0.000000e+00> : vector<4xf32>
    %16 = vector.multi_reduction <add>, %15, %cst_13 [0] : vector<128x4xf32> to vector<4xf32>
    %17 = vector.shape_cast %16 : vector<4xf32> to vector<1x4xf32>
    %18 = arith.addf %14, %17 : vector<1x4xf32>
    %c0_14 = arith.constant 0 : index
    %c0_15 = arith.constant 0 : index
    %19 = vector.load %arg5[%c0_14, %c0_15] : memref<1x4xf32, #tpu.memory_space<vmem>>, vector<1x4xf32>
    tpu.vector_store %arg5[%c0_14, %c0_15], %18 {strides = array<i32>} : memref<1x4xf32, #tpu.memory_space<vmem>>, vector<1x4xf32>,
    return
  }
  func.func @transform_0(%arg0: i32) -> (i32, i32) {
    %c0_i32 = arith.constant 0 : i32
    %c0_i32_0 = arith.constant 0 : i32
    return %arg0, %c0_i32 : i32, i32
  }
  func.func @transform_1(%arg0: i32) -> (i32, i32) {
    %c0_i32 = arith.constant 0 : i32
    %c0_i32_0 = arith.constant 0 : i32
    %c0_i32_1 = arith.constant 0 : i32
    return %c0_i32, %c0_i32_0 : i32, i32
  }
  func.func @transform_2(%arg0: i32) -> (i32, i32) {
    %c0_i32 = arith.constant 0 : i32
    %c0_i32_0 = arith.constant 0 : i32
    return %arg0, %c0_i32 : i32, i32
  }
  func.func @transform_3(%arg0: i32) -> (i32, i32) {
    %c0_i32 = arith.constant 0 : i32
    %c0_i32_0 = arith.constant 0 : i32
    %c0_i32_1 = arith.constant 0 : i32
    return %c0_i32, %c0_i32_0 : i32, i32
  }
  func.func @transform_4(%arg0: i32) -> (i32, i32) {
    %c0_i32 = arith.constant 0 : i32
    %c0_i32_0 = arith.constant 0 : i32
    %c0_i32_1 = arith.constant 0 : i32
    return %c0_i32, %c0_i32_0 : i32, i32
  }
}

module attributes {stable_mosaic.version = 11 : i64} {
  func.func @conv3x3_bn_stats_kernel(%arg0: i32, %arg1: memref<1x16x16x4xbf16, #tpu.memory_space<vmem>>, %arg2: memref<1x4xf32, #tpu.memory_space<vmem>>, %arg3: memref<1x4xf32, #tpu.memory_space<vmem>>, %arg4: memref<1x4xf32, #tpu.memory_space<vmem>>, %arg5: memref<1x4xf32, #tpu.memory_space<vmem>>, %arg6: memref<3x3x4x4xbf16, #tpu.memory_space<vmem>>, %arg7: memref<256x4xbf16, #tpu.memory_space<vmem>>, %arg8: memref<1x4xf32, #tpu.memory_space<vmem>>, %arg9: memref<1x4xf32, #tpu.memory_space<vmem>>, %arg10: memref<18x18x4xf32, #tpu.memory_space<vmem>>) attributes {dimension_semantics = [#tpu.dimension_semantics<arbitrary>], iteration_bounds = array<i64: 2>, scalar_prefetch = 0 : i64, scratch_operands = 1 : i64, tpu.core_type = #tpu.core_type<tc>, window_params = [{transform_indices = @transform_0, window_bounds = array<i64: 1, 16, 16, 4>}, {pipeline_mode = #tpu.pipeline_mode<synchronous>, transform_indices = @transform_1, window_bounds = array<i64: 1, 4>}, {pipeline_mode = #tpu.pipeline_mode<synchronous>, transform_indices = @transform_2, window_bounds = array<i64: 1, 4>}, {pipeline_mode = #tpu.pipeline_mode<synchronous>, transform_indices = @transform_3, window_bounds = array<i64: 1, 4>}, {pipeline_mode = #tpu.pipeline_mode<synchronous>, transform_indices = @transform_4, window_bounds = array<i64: 1, 4>}, {pipeline_mode = #tpu.pipeline_mode<synchronous>, transform_indices = @transform_5, window_bounds = array<i64: 3, 3, 4, 4>}, {transform_indices = @transform_6, window_bounds = array<i64: 256, 4>}, {pipeline_mode = #tpu.pipeline_mode<synchronous>, transform_indices = @transform_7, window_bounds = array<i64: 1, 4>}, {pipeline_mode = #tpu.pipeline_mode<synchronous>, transform_indices = @transform_8, window_bounds = array<i64: 1, 4>}]} {
    %c0_i32 = arith.constant 0 : i32
    %0 = arith.cmpi eq, %arg0, %c0_i32 : i32
    %1 = arith.extui %0 : i1 to i32
    %c0_i32_0 = arith.constant 0 : i32
    %2 = arith.cmpi ne, %1, %c0_i32_0 : i32
    scf.if %2 {
      %cst_47 = arith.constant 0.000000e+00 : f32
      %112 = vector.broadcast %cst_47 : f32 to vector<1x4xf32>
      %c0_48 = arith.constant 0 : index
      %c0_49 = arith.constant 0 : index
      %113 = vector.load %arg8[%c0_48, %c0_49] : memref<1x4xf32, #tpu.memory_space<vmem>>, vector<1x4xf32>
      tpu.vector_store %arg8[%c0_48, %c0_49], %112 {strides = array<i32>} : memref<1x4xf32, #tpu.memory_space<vmem>>, vector<1x4xf32>,
      %cst_50 = arith.constant 0.000000e+00 : f32
      %114 = vector.broadcast %cst_50 : f32 to vector<1x4xf32>
      %c0_51 = arith.constant 0 : index
      %c0_52 = arith.constant 0 : index
      %115 = vector.load %arg9[%c0_51, %c0_52] : memref<1x4xf32, #tpu.memory_space<vmem>>, vector<1x4xf32>
      tpu.vector_store %arg9[%c0_51, %c0_52], %114 {strides = array<i32>} : memref<1x4xf32, #tpu.memory_space<vmem>>, vector<1x4xf32>,
    } else {
    }
    %c0_i32_1 = arith.constant 0 : i32
    %3 = arith.cmpi eq, %arg0, %c0_i32_1 : i32
    %4 = arith.extui %3 : i1 to i32
    %c0_i32_2 = arith.constant 0 : i32
    %5 = arith.cmpi ne, %4, %c0_i32_2 : i32
    scf.if %5 {
      %cst_47 = arith.constant 0.000000e+00 : f32
      %112 = vector.broadcast %cst_47 : f32 to vector<18x18x4xf32>
      %c0_48 = arith.constant 0 : index
      %c0_49 = arith.constant 0 : index
      %c0_50 = arith.constant 0 : index
      %113 = vector.load %arg10[%c0_48, %c0_49, %c0_50] : memref<18x18x4xf32, #tpu.memory_space<vmem>>, vector<18x18x4xf32>
      tpu.vector_store %arg10[%c0_48, %c0_49, %c0_50], %112 {strides = array<i32>} : memref<18x18x4xf32, #tpu.memory_space<vmem>>, vector<18x18x4xf32>,
    } else {
    }
    %c0 = arith.constant 0 : index
    %c0_3 = arith.constant 0 : index
    %6 = vector.load %arg2[%c0, %c0_3] : memref<1x4xf32, #tpu.memory_space<vmem>>, vector<1x4xf32>
    %cst = arith.constant 0.001953125 : f32
    %7 = vector.broadcast %cst : f32 to vector<1x4xf32>
    %8 = arith.mulf %6, %7 : vector<1x4xf32>
    %c0_4 = arith.constant 0 : index
    %c0_5 = arith.constant 0 : index
    %9 = vector.load %arg3[%c0_4, %c0_5] : memref<1x4xf32, #tpu.memory_space<vmem>>, vector<1x4xf32>
    %cst_6 = arith.constant 0.001953125 : f32
    %10 = vector.broadcast %cst_6 : f32 to vector<1x4xf32>
    %11 = arith.mulf %9, %10 : vector<1x4xf32>
    %12 = arith.mulf %8, %8 : vector<1x4xf32>
    %13 = arith.subf %11, %12 : vector<1x4xf32>
    %c0_7 = arith.constant 0 : index
    %c0_8 = arith.constant 0 : index
    %14 = vector.load %arg4[%c0_7, %c0_8] : memref<1x4xf32, #tpu.memory_space<vmem>>, vector<1x4xf32>
    %cst_9 = arith.constant 9.99999974E-6 : f32
    %15 = vector.broadcast %cst_9 : f32 to vector<1x4xf32>
    %16 = arith.addf %13, %15 : vector<1x4xf32>
    %17 = math.rsqrt %16 : vector<1x4xf32>
    %18 = arith.mulf %14, %17 : vector<1x4xf32>
    %c0_10 = arith.constant 0 : index
    %c0_11 = arith.constant 0 : index
    %19 = vector.load %arg5[%c0_10, %c0_11] : memref<1x4xf32, #tpu.memory_space<vmem>>, vector<1x4xf32>
    %20 = arith.mulf %8, %18 : vector<1x4xf32>
    %21 = arith.subf %19, %20 : vector<1x4xf32>
    %c0_12 = arith.constant 0 : index
    %c0_13 = arith.constant 0 : index
    %c0_14 = arith.constant 0 : index
    %c0_15 = arith.constant 0 : index
    %22 = vector.load %arg1[%c0_12, %c0_13, %c0_14, %c0_15] : memref<1x16x16x4xbf16, #tpu.memory_space<vmem>>, vector<1x16x16x4xbf16>
    %23 = vector.shape_cast %22 : vector<1x16x16x4xbf16> to vector<16x16x4xbf16>
    %24 = arith.extf %23 : vector<16x16x4xbf16> to vector<16x16x4xf32>
    %25 = vector.shape_cast %18 : vector<1x4xf32> to vector<1x1x4xf32>
    %26 = vector.broadcast %25 : vector<1x1x4xf32> to vector<16x16x4xf32>
    %27 = arith.mulf %24, %26 : vector<16x16x4xf32>
    %28 = vector.shape_cast %21 : vector<1x4xf32> to vector<1x1x4xf32>
    %29 = vector.broadcast %28 : vector<1x1x4xf32> to vector<16x16x4xf32>
    %30 = arith.addf %27, %29 : vector<16x16x4xf32>
    %cst_16 = arith.constant 0.000000e+00 : f32
    %31 = vector.broadcast %cst_16 : f32 to vector<16x16x4xf32>
    %32 = arith.maximumf %30, %31 : vector<16x16x4xf32>
    %c1 = arith.constant 1 : index
    %c1_17 = arith.constant 1 : index
    %c0_18 = arith.constant 0 : index
    %33 = vector.load %arg10[%c1, %c1_17, %c0_18] : memref<18x18x4xf32, #tpu.memory_space<vmem>>, vector<16x16x4xf32>
    tpu.vector_store %arg10[%c1, %c1_17, %c0_18], %32 {strides = array<i32>} : memref<18x18x4xf32, #tpu.memory_space<vmem>>, vector<16x16x4xf32>,
    %c0_19 = arith.constant 0 : index
    %c0_20 = arith.constant 0 : index
    %c0_21 = arith.constant 0 : index
    %34 = vector.load %arg10[%c0_19, %c0_20, %c0_21] : memref<18x18x4xf32, #tpu.memory_space<vmem>>, vector<18x18x4xf32>
    %c0_22 = arith.constant 0 : index
    %c0_23 = arith.constant 0 : index
    %c0_24 = arith.constant 0 : index
    %c0_25 = arith.constant 0 : index
    %35 = vector.load %arg6[%c0_22, %c0_23, %c0_24, %c0_25] : memref<3x3x4x4xbf16, #tpu.memory_space<vmem>>, vector<3x3x4x4xbf16>
    %36 = vector.extract_strided_slice %34 {offsets = [0, 0, 0], sizes = [16, 16, 4], strides = [1, 1, 1]} : vector<18x18x4xf32> to vector<16x16x4xf32>
    %37 = vector.shape_cast %36 : vector<16x16x4xf32> to vector<256x4xf32>
    %38 = arith.truncf %37 : vector<256x4xf32> to vector<256x4xbf16>
    %39 = vector.extract_strided_slice %35 {offsets = [0, 0, 0, 0], sizes = [1, 1, 4, 4], strides = [1, 1, 1, 1]} : vector<3x3x4x4xbf16> to vector<1x1x4x4xbf16>
    %40 = vector.shape_cast %39 : vector<1x1x4x4xbf16> to vector<4x4xbf16>
    %cst_26 = arith.constant dense<0.000000e+00> : vector<256x4xf32>
    %41 = tpu.matmul %38, %40, %cst_26 {dimension_numbers = #tpu.dot_dimension_numbers<[1], [0], [0], [1], [0, 0, 1, 1], [], []>} : vector<256x4xbf16>, vector<4x4xbf16>, vector<256x4xf32> -> vector<256x4xf32>
    %42 = vector.extract_strided_slice %34 {offsets = [0, 1, 0], sizes = [16, 16, 4], strides = [1, 1, 1]} : vector<18x18x4xf32> to vector<16x16x4xf32>
    %43 = vector.shape_cast %42 : vector<16x16x4xf32> to vector<256x4xf32>
    %44 = arith.truncf %43 : vector<256x4xf32> to vector<256x4xbf16>
    %45 = vector.extract_strided_slice %35 {offsets = [0, 1, 0, 0], sizes = [1, 1, 4, 4], strides = [1, 1, 1, 1]} : vector<3x3x4x4xbf16> to vector<1x1x4x4xbf16>
    %46 = vector.shape_cast %45 : vector<1x1x4x4xbf16> to vector<4x4xbf16>
    %cst_27 = arith.constant dense<0.000000e+00> : vector<256x4xf32>
    %47 = tpu.matmul %44, %46, %cst_27 {dimension_numbers = #tpu.dot_dimension_numbers<[1], [0], [0], [1], [0, 0, 1, 1], [], []>} : vector<256x4xbf16>, vector<4x4xbf16>, vector<256x4xf32> -> vector<256x4xf32>
    %48 = arith.addf %41, %47 : vector<256x4xf32>
    %49 = vector.extract_strided_slice %34 {offsets = [0, 2, 0], sizes = [16, 16, 4], strides = [1, 1, 1]} : vector<18x18x4xf32> to vector<16x16x4xf32>
    %50 = vector.shape_cast %49 : vector<16x16x4xf32> to vector<256x4xf32>
    %51 = arith.truncf %50 : vector<256x4xf32> to vector<256x4xbf16>
    %52 = vector.extract_strided_slice %35 {offsets = [0, 2, 0, 0], sizes = [1, 1, 4, 4], strides = [1, 1, 1, 1]} : vector<3x3x4x4xbf16> to vector<1x1x4x4xbf16>
    %53 = vector.shape_cast %52 : vector<1x1x4x4xbf16> to vector<4x4xbf16>
    %cst_28 = arith.constant dense<0.000000e+00> : vector<256x4xf32>
    %54 = tpu.matmul %51, %53, %cst_28 {dimension_numbers = #tpu.dot_dimension_numbers<[1], [0], [0], [1], [0, 0, 1, 1], [], []>} : vector<256x4xbf16>, vector<4x4xbf16>, vector<256x4xf32> -> vector<256x4xf32>
    %55 = arith.addf %48, %54 : vector<256x4xf32>
    %56 = vector.extract_strided_slice %34 {offsets = [1, 0, 0], sizes = [16, 16, 4], strides = [1, 1, 1]} : vector<18x18x4xf32> to vector<16x16x4xf32>
    %57 = vector.shape_cast %56 : vector<16x16x4xf32> to vector<256x4xf32>
    %58 = arith.truncf %57 : vector<256x4xf32> to vector<256x4xbf16>
    %59 = vector.extract_strided_slice %35 {offsets = [1, 0, 0, 0], sizes = [1, 1, 4, 4], strides = [1, 1, 1, 1]} : vector<3x3x4x4xbf16> to vector<1x1x4x4xbf16>
    %60 = vector.shape_cast %59 : vector<1x1x4x4xbf16> to vector<4x4xbf16>
    %cst_29 = arith.constant dense<0.000000e+00> : vector<256x4xf32>
    %61 = tpu.matmul %58, %60, %cst_29 {dimension_numbers = #tpu.dot_dimension_numbers<[1], [0], [0], [1], [0, 0, 1, 1], [], []>} : vector<256x4xbf16>, vector<4x4xbf16>, vector<256x4xf32> -> vector<256x4xf32>
    %62 = arith.addf %55, %61 : vector<256x4xf32>
    %63 = vector.extract_strided_slice %34 {offsets = [1, 1, 0], sizes = [16, 16, 4], strides = [1, 1, 1]} : vector<18x18x4xf32> to vector<16x16x4xf32>
    %64 = vector.shape_cast %63 : vector<16x16x4xf32> to vector<256x4xf32>
    %65 = arith.truncf %64 : vector<256x4xf32> to vector<256x4xbf16>
    %66 = vector.extract_strided_slice %35 {offsets = [1, 1, 0, 0], sizes = [1, 1, 4, 4], strides = [1, 1, 1, 1]} : vector<3x3x4x4xbf16> to vector<1x1x4x4xbf16>
    %67 = vector.shape_cast %66 : vector<1x1x4x4xbf16> to vector<4x4xbf16>
    %cst_30 = arith.constant dense<0.000000e+00> : vector<256x4xf32>
    %68 = tpu.matmul %65, %67, %cst_30 {dimension_numbers = #tpu.dot_dimension_numbers<[1], [0], [0], [1], [0, 0, 1, 1], [], []>} : vector<256x4xbf16>, vector<4x4xbf16>, vector<256x4xf32> -> vector<256x4xf32>
    %69 = arith.addf %62, %68 : vector<256x4xf32>
    %70 = vector.extract_strided_slice %34 {offsets = [1, 2, 0], sizes = [16, 16, 4], strides = [1, 1, 1]} : vector<18x18x4xf32> to vector<16x16x4xf32>
    %71 = vector.shape_cast %70 : vector<16x16x4xf32> to vector<256x4xf32>
    %72 = arith.truncf %71 : vector<256x4xf32> to vector<256x4xbf16>
    %73 = vector.extract_strided_slice %35 {offsets = [1, 2, 0, 0], sizes = [1, 1, 4, 4], strides = [1, 1, 1, 1]} : vector<3x3x4x4xbf16> to vector<1x1x4x4xbf16>
    %74 = vector.shape_cast %73 : vector<1x1x4x4xbf16> to vector<4x4xbf16>
    %cst_31 = arith.constant dense<0.000000e+00> : vector<256x4xf32>
    %75 = tpu.matmul %72, %74, %cst_31 {dimension_numbers = #tpu.dot_dimension_numbers<[1], [0], [0], [1], [0, 0, 1, 1], [], []>} : vector<256x4xbf16>, vector<4x4xbf16>, vector<256x4xf32> -> vector<256x4xf32>
    %76 = arith.addf %69, %75 : vector<256x4xf32>
    %77 = vector.extract_strided_slice %34 {offsets = [2, 0, 0], sizes = [16, 16, 4], strides = [1, 1, 1]} : vector<18x18x4xf32> to vector<16x16x4xf32>
    %78 = vector.shape_cast %77 : vector<16x16x4xf32> to vector<256x4xf32>
    %79 = arith.truncf %78 : vector<256x4xf32> to vector<256x4xbf16>
    %80 = vector.extract_strided_slice %35 {offsets = [2, 0, 0, 0], sizes = [1, 1, 4, 4], strides = [1, 1, 1, 1]} : vector<3x3x4x4xbf16> to vector<1x1x4x4xbf16>
    %81 = vector.shape_cast %80 : vector<1x1x4x4xbf16> to vector<4x4xbf16>
    %cst_32 = arith.constant dense<0.000000e+00> : vector<256x4xf32>
    %82 = tpu.matmul %79, %81, %cst_32 {dimension_numbers = #tpu.dot_dimension_numbers<[1], [0], [0], [1], [0, 0, 1, 1], [], []>} : vector<256x4xbf16>, vector<4x4xbf16>, vector<256x4xf32> -> vector<256x4xf32>
    %83 = arith.addf %76, %82 : vector<256x4xf32>
    %84 = vector.extract_strided_slice %34 {offsets = [2, 1, 0], sizes = [16, 16, 4], strides = [1, 1, 1]} : vector<18x18x4xf32> to vector<16x16x4xf32>
    %85 = vector.shape_cast %84 : vector<16x16x4xf32> to vector<256x4xf32>
    %86 = arith.truncf %85 : vector<256x4xf32> to vector<256x4xbf16>
    %87 = vector.extract_strided_slice %35 {offsets = [2, 1, 0, 0], sizes = [1, 1, 4, 4], strides = [1, 1, 1, 1]} : vector<3x3x4x4xbf16> to vector<1x1x4x4xbf16>
    %88 = vector.shape_cast %87 : vector<1x1x4x4xbf16> to vector<4x4xbf16>
    %cst_33 = arith.constant dense<0.000000e+00> : vector<256x4xf32>
    %89 = tpu.matmul %86, %88, %cst_33 {dimension_numbers = #tpu.dot_dimension_numbers<[1], [0], [0], [1], [0, 0, 1, 1], [], []>} : vector<256x4xbf16>, vector<4x4xbf16>, vector<256x4xf32> -> vector<256x4xf32>
    %90 = arith.addf %83, %89 : vector<256x4xf32>
    %91 = vector.extract_strided_slice %34 {offsets = [2, 2, 0], sizes = [16, 16, 4], strides = [1, 1, 1]} : vector<18x18x4xf32> to vector<16x16x4xf32>
    %92 = vector.shape_cast %91 : vector<16x16x4xf32> to vector<256x4xf32>
    %93 = arith.truncf %92 : vector<256x4xf32> to vector<256x4xbf16>
    %94 = vector.extract_strided_slice %35 {offsets = [2, 2, 0, 0], sizes = [1, 1, 4, 4], strides = [1, 1, 1, 1]} : vector<3x3x4x4xbf16> to vector<1x1x4x4xbf16>
    %95 = vector.shape_cast %94 : vector<1x1x4x4xbf16> to vector<4x4xbf16>
    %cst_34 = arith.constant dense<0.000000e+00> : vector<256x4xf32>
    %96 = tpu.matmul %93, %95, %cst_34 {dimension_numbers = #tpu.dot_dimension_numbers<[1], [0], [0], [1], [0, 0, 1, 1], [], []>} : vector<256x4xbf16>, vector<4x4xbf16>, vector<256x4xf32> -> vector<256x4xf32>
    %97 = arith.addf %90, %96 : vector<256x4xf32>
    %98 = arith.truncf %97 : vector<256x4xf32> to vector<256x4xbf16>
    %c0_35 = arith.constant 0 : index
    %c0_36 = arith.constant 0 : index
    %99 = vector.load %arg7[%c0_35, %c0_36] : memref<256x4xbf16, #tpu.memory_space<vmem>>, vector<256x4xbf16>
    tpu.vector_store %arg7[%c0_35, %c0_36], %98 {strides = array<i32>} : memref<256x4xbf16, #tpu.memory_space<vmem>>, vector<256x4xbf16>,
    %100 = arith.extf %98 : vector<256x4xbf16> to vector<256x4xf32>
    %c0_37 = arith.constant 0 : index
    %c0_38 = arith.constant 0 : index
    %101 = vector.load %arg8[%c0_37, %c0_38] : memref<1x4xf32, #tpu.memory_space<vmem>>, vector<1x4xf32>
    %cst_39 = arith.constant dense<0.000000e+00> : vector<4xf32>
    %102 = vector.multi_reduction <add>, %100, %cst_39 [0] : vector<256x4xf32> to vector<4xf32>
    %103 = vector.shape_cast %102 : vector<4xf32> to vector<1x4xf32>
    %104 = arith.addf %101, %103 : vector<1x4xf32>
    %c0_40 = arith.constant 0 : index
    %c0_41 = arith.constant 0 : index
    %105 = vector.load %arg8[%c0_40, %c0_41] : memref<1x4xf32, #tpu.memory_space<vmem>>, vector<1x4xf32>
    tpu.vector_store %arg8[%c0_40, %c0_41], %104 {strides = array<i32>} : memref<1x4xf32, #tpu.memory_space<vmem>>, vector<1x4xf32>,
    %c0_42 = arith.constant 0 : index
    %c0_43 = arith.constant 0 : index
    %106 = vector.load %arg9[%c0_42, %c0_43] : memref<1x4xf32, #tpu.memory_space<vmem>>, vector<1x4xf32>
    %107 = arith.mulf %100, %100 : vector<256x4xf32>
    %cst_44 = arith.constant dense<0.000000e+00> : vector<4xf32>
    %108 = vector.multi_reduction <add>, %107, %cst_44 [0] : vector<256x4xf32> to vector<4xf32>
    %109 = vector.shape_cast %108 : vector<4xf32> to vector<1x4xf32>
    %110 = arith.addf %106, %109 : vector<1x4xf32>
    %c0_45 = arith.constant 0 : index
    %c0_46 = arith.constant 0 : index
    %111 = vector.load %arg9[%c0_45, %c0_46] : memref<1x4xf32, #tpu.memory_space<vmem>>, vector<1x4xf32>
    tpu.vector_store %arg9[%c0_45, %c0_46], %110 {strides = array<i32>} : memref<1x4xf32, #tpu.memory_space<vmem>>, vector<1x4xf32>,
    return
  }
  func.func @transform_0(%arg0: i32) -> (i32, i32, i32, i32) {
    %c0_i32 = arith.constant 0 : i32
    %c0_i32_0 = arith.constant 0 : i32
    %c0_i32_1 = arith.constant 0 : i32
    %c0_i32_2 = arith.constant 0 : i32
    return %arg0, %c0_i32, %c0_i32_0, %c0_i32_1 : i32, i32, i32, i32
  }
  func.func @transform_1(%arg0: i32) -> (i32, i32) {
    %c0_i32 = arith.constant 0 : i32
    %c0_i32_0 = arith.constant 0 : i32
    %c0_i32_1 = arith.constant 0 : i32
    return %c0_i32, %c0_i32_0 : i32, i32
  }
  func.func @transform_2(%arg0: i32) -> (i32, i32) {
    %c0_i32 = arith.constant 0 : i32
    %c0_i32_0 = arith.constant 0 : i32
    %c0_i32_1 = arith.constant 0 : i32
    return %c0_i32, %c0_i32_0 : i32, i32
  }
  func.func @transform_3(%arg0: i32) -> (i32, i32) {
    %c0_i32 = arith.constant 0 : i32
    %c0_i32_0 = arith.constant 0 : i32
    %c0_i32_1 = arith.constant 0 : i32
    return %c0_i32, %c0_i32_0 : i32, i32
  }
  func.func @transform_4(%arg0: i32) -> (i32, i32) {
    %c0_i32 = arith.constant 0 : i32
    %c0_i32_0 = arith.constant 0 : i32
    %c0_i32_1 = arith.constant 0 : i32
    return %c0_i32, %c0_i32_0 : i32, i32
  }
  func.func @transform_5(%arg0: i32) -> (i32, i32, i32, i32) {
    %c0_i32 = arith.constant 0 : i32
    %c0_i32_0 = arith.constant 0 : i32
    %c0_i32_1 = arith.constant 0 : i32
    %c0_i32_2 = arith.constant 0 : i32
    %c0_i32_3 = arith.constant 0 : i32
    return %c0_i32, %c0_i32_0, %c0_i32_1, %c0_i32_2 : i32, i32, i32, i32
  }
  func.func @transform_6(%arg0: i32) -> (i32, i32) {
    %c0_i32 = arith.constant 0 : i32
    %c0_i32_0 = arith.constant 0 : i32
    return %arg0, %c0_i32 : i32, i32
  }
  func.func @transform_7(%arg0: i32) -> (i32, i32) {
    %c0_i32 = arith.constant 0 : i32
    %c0_i32_0 = arith.constant 0 : i32
    %c0_i32_1 = arith.constant 0 : i32
    return %c0_i32, %c0_i32_0 : i32, i32
  }
  func.func @transform_8(%arg0: i32) -> (i32, i32) {
    %c0_i32 = arith.constant 0 : i32
    %c0_i32_0 = arith.constant 0 : i32
    %c0_i32_1 = arith.constant 0 : i32
    return %c0_i32, %c0_i32_0 : i32, i32
  }
}

module attributes {stable_mosaic.version = 11 : i64} {
  func.func @bn_relu_matmul_stats_kernel(%arg0: i32, %arg1: memref<128x4xbf16, #tpu.memory_space<vmem>>, %arg2: memref<1x4xf32, #tpu.memory_space<vmem>>, %arg3: memref<1x4xf32, #tpu.memory_space<vmem>>, %arg4: memref<1x4xf32, #tpu.memory_space<vmem>>, %arg5: memref<1x4xf32, #tpu.memory_space<vmem>>, %arg6: memref<4x16xbf16, #tpu.memory_space<vmem>>, %arg7: memref<128x16xbf16, #tpu.memory_space<vmem>>, %arg8: memref<1x16xf32, #tpu.memory_space<vmem>>, %arg9: memref<1x16xf32, #tpu.memory_space<vmem>>) attributes {dimension_semantics = [#tpu.dimension_semantics<arbitrary>], iteration_bounds = array<i64: 4>, scalar_prefetch = 0 : i64, scratch_operands = 0 : i64, tpu.core_type = #tpu.core_type<tc>, window_params = [{transform_indices = @transform_0, window_bounds = array<i64: 128, 4>}, {pipeline_mode = #tpu.pipeline_mode<synchronous>, transform_indices = @transform_1, window_bounds = array<i64: 1, 4>}, {pipeline_mode = #tpu.pipeline_mode<synchronous>, transform_indices = @transform_2, window_bounds = array<i64: 1, 4>}, {pipeline_mode = #tpu.pipeline_mode<synchronous>, transform_indices = @transform_3, window_bounds = array<i64: 1, 4>}, {pipeline_mode = #tpu.pipeline_mode<synchronous>, transform_indices = @transform_4, window_bounds = array<i64: 1, 4>}, {pipeline_mode = #tpu.pipeline_mode<synchronous>, transform_indices = @transform_5, window_bounds = array<i64: 4, 16>}, {transform_indices = @transform_6, window_bounds = array<i64: 128, 16>}, {pipeline_mode = #tpu.pipeline_mode<synchronous>, transform_indices = @transform_7, window_bounds = array<i64: 1, 16>}, {pipeline_mode = #tpu.pipeline_mode<synchronous>, transform_indices = @transform_8, window_bounds = array<i64: 1, 16>}]} {
    %c0_i32 = arith.constant 0 : i32
    %0 = arith.cmpi eq, %arg0, %c0_i32 : i32
    %1 = arith.extui %0 : i1 to i32
    %c0_i32_0 = arith.constant 0 : i32
    %2 = arith.cmpi ne, %1, %c0_i32_0 : i32
    scf.if %2 {
      %cst_28 = arith.constant 0.000000e+00 : f32
      %44 = vector.broadcast %cst_28 : f32 to vector<1x16xf32>
      %c0_29 = arith.constant 0 : index
      %c0_30 = arith.constant 0 : index
      %45 = vector.load %arg8[%c0_29, %c0_30] : memref<1x16xf32, #tpu.memory_space<vmem>>, vector<1x16xf32>
      tpu.vector_store %arg8[%c0_29, %c0_30], %44 {strides = array<i32>} : memref<1x16xf32, #tpu.memory_space<vmem>>, vector<1x16xf32>,
      %cst_31 = arith.constant 0.000000e+00 : f32
      %46 = vector.broadcast %cst_31 : f32 to vector<1x16xf32>
      %c0_32 = arith.constant 0 : index
      %c0_33 = arith.constant 0 : index
      %47 = vector.load %arg9[%c0_32, %c0_33] : memref<1x16xf32, #tpu.memory_space<vmem>>, vector<1x16xf32>
      tpu.vector_store %arg9[%c0_32, %c0_33], %46 {strides = array<i32>} : memref<1x16xf32, #tpu.memory_space<vmem>>, vector<1x16xf32>,
    } else {
    }
    %c0 = arith.constant 0 : index
    %c0_1 = arith.constant 0 : index
    %3 = vector.load %arg2[%c0, %c0_1] : memref<1x4xf32, #tpu.memory_space<vmem>>, vector<1x4xf32>
    %cst = arith.constant 0.001953125 : f32
    %4 = vector.broadcast %cst : f32 to vector<1x4xf32>
    %5 = arith.mulf %3, %4 : vector<1x4xf32>
    %c0_2 = arith.constant 0 : index
    %c0_3 = arith.constant 0 : index
    %6 = vector.load %arg3[%c0_2, %c0_3] : memref<1x4xf32, #tpu.memory_space<vmem>>, vector<1x4xf32>
    %cst_4 = arith.constant 0.001953125 : f32
    %7 = vector.broadcast %cst_4 : f32 to vector<1x4xf32>
    %8 = arith.mulf %6, %7 : vector<1x4xf32>
    %9 = arith.mulf %5, %5 : vector<1x4xf32>
    %10 = arith.subf %8, %9 : vector<1x4xf32>
    %c0_5 = arith.constant 0 : index
    %c0_6 = arith.constant 0 : index
    %11 = vector.load %arg4[%c0_5, %c0_6] : memref<1x4xf32, #tpu.memory_space<vmem>>, vector<1x4xf32>
    %cst_7 = arith.constant 9.99999974E-6 : f32
    %12 = vector.broadcast %cst_7 : f32 to vector<1x4xf32>
    %13 = arith.addf %10, %12 : vector<1x4xf32>
    %14 = math.rsqrt %13 : vector<1x4xf32>
    %15 = arith.mulf %11, %14 : vector<1x4xf32>
    %c0_8 = arith.constant 0 : index
    %c0_9 = arith.constant 0 : index
    %16 = vector.load %arg5[%c0_8, %c0_9] : memref<1x4xf32, #tpu.memory_space<vmem>>, vector<1x4xf32>
    %17 = arith.mulf %5, %15 : vector<1x4xf32>
    %18 = arith.subf %16, %17 : vector<1x4xf32>
    %c0_10 = arith.constant 0 : index
    %c0_11 = arith.constant 0 : index
    %19 = vector.load %arg1[%c0_10, %c0_11] : memref<128x4xbf16, #tpu.memory_space<vmem>>, vector<128x4xbf16>
    %20 = arith.extf %19 : vector<128x4xbf16> to vector<128x4xf32>
    %21 = vector.broadcast %15 : vector<1x4xf32> to vector<128x4xf32>
    %22 = arith.mulf %20, %21 : vector<128x4xf32>
    %23 = vector.broadcast %18 : vector<1x4xf32> to vector<128x4xf32>
    %24 = arith.addf %22, %23 : vector<128x4xf32>
    %cst_12 = arith.constant 0.000000e+00 : f32
    %25 = vector.broadcast %cst_12 : f32 to vector<128x4xf32>
    %26 = arith.maximumf %24, %25 : vector<128x4xf32>
    %27 = arith.truncf %26 : vector<128x4xf32> to vector<128x4xbf16>
    %c0_13 = arith.constant 0 : index
    %c0_14 = arith.constant 0 : index
    %28 = vector.load %arg6[%c0_13, %c0_14] : memref<4x16xbf16, #tpu.memory_space<vmem>>, vector<4x16xbf16>
    %cst_15 = arith.constant dense<0.000000e+00> : vector<128x16xf32>
    %29 = tpu.matmul %27, %28, %cst_15 {dimension_numbers = #tpu.dot_dimension_numbers<[1], [0], [0], [1], [0, 0, 1, 1], [], []>} : vector<128x4xbf16>, vector<4x16xbf16>, vector<128x16xf32> -> vector<128x16xf32>
    %30 = arith.truncf %29 : vector<128x16xf32> to vector<128x16xbf16>
    %c0_16 = arith.constant 0 : index
    %c0_17 = arith.constant 0 : index
    %31 = vector.load %arg7[%c0_16, %c0_17] : memref<128x16xbf16, #tpu.memory_space<vmem>>, vector<128x16xbf16>
    tpu.vector_store %arg7[%c0_16, %c0_17], %30 {strides = array<i32>} : memref<128x16xbf16, #tpu.memory_space<vmem>>, vector<128x16xbf16>,
    %32 = arith.extf %30 : vector<128x16xbf16> to vector<128x16xf32>
    %c0_18 = arith.constant 0 : index
    %c0_19 = arith.constant 0 : index
    %33 = vector.load %arg8[%c0_18, %c0_19] : memref<1x16xf32, #tpu.memory_space<vmem>>, vector<1x16xf32>
    %cst_20 = arith.constant dense<0.000000e+00> : vector<16xf32>
    %34 = vector.multi_reduction <add>, %32, %cst_20 [0] : vector<128x16xf32> to vector<16xf32>
    %35 = vector.shape_cast %34 : vector<16xf32> to vector<1x16xf32>
    %36 = arith.addf %33, %35 : vector<1x16xf32>
    %c0_21 = arith.constant 0 : index
    %c0_22 = arith.constant 0 : index
    %37 = vector.load %arg8[%c0_21, %c0_22] : memref<1x16xf32, #tpu.memory_space<vmem>>, vector<1x16xf32>
    tpu.vector_store %arg8[%c0_21, %c0_22], %36 {strides = array<i32>} : memref<1x16xf32, #tpu.memory_space<vmem>>, vector<1x16xf32>,
    %c0_23 = arith.constant 0 : index
    %c0_24 = arith.constant 0 : index
    %38 = vector.load %arg9[%c0_23, %c0_24] : memref<1x16xf32, #tpu.memory_space<vmem>>, vector<1x16xf32>
    %39 = arith.mulf %32, %32 : vector<128x16xf32>
    %cst_25 = arith.constant dense<0.000000e+00> : vector<16xf32>
    %40 = vector.multi_reduction <add>, %39, %cst_25 [0] : vector<128x16xf32> to vector<16xf32>
    %41 = vector.shape_cast %40 : vector<16xf32> to vector<1x16xf32>
    %42 = arith.addf %38, %41 : vector<1x16xf32>
    %c0_26 = arith.constant 0 : index
    %c0_27 = arith.constant 0 : index
    %43 = vector.load %arg9[%c0_26, %c0_27] : memref<1x16xf32, #tpu.memory_space<vmem>>, vector<1x16xf32>
    tpu.vector_store %arg9[%c0_26, %c0_27], %42 {strides = array<i32>} : memref<1x16xf32, #tpu.memory_space<vmem>>, vector<1x16xf32>,
    return
  }
  func.func @transform_0(%arg0: i32) -> (i32, i32) {
    %c0_i32 = arith.constant 0 : i32
    %c0_i32_0 = arith.constant 0 : i32
    return %arg0, %c0_i32 : i32, i32
  }
  func.func @transform_1(%arg0: i32) -> (i32, i32) {
    %c0_i32 = arith.constant 0 : i32
    %c0_i32_0 = arith.constant 0 : i32
    %c0_i32_1 = arith.constant 0 : i32
    return %c0_i32, %c0_i32_0 : i32, i32
  }
  func.func @transform_2(%arg0: i32) -> (i32, i32) {
    %c0_i32 = arith.constant 0 : i32
    %c0_i32_0 = arith.constant 0 : i32
    %c0_i32_1 = arith.constant 0 : i32
    return %c0_i32, %c0_i32_0 : i32, i32
  }
  func.func @transform_3(%arg0: i32) -> (i32, i32) {
    %c0_i32 = arith.constant 0 : i32
    %c0_i32_0 = arith.constant 0 : i32
    %c0_i32_1 = arith.constant 0 : i32
    return %c0_i32, %c0_i32_0 : i32, i32
  }
  func.func @transform_4(%arg0: i32) -> (i32, i32) {
    %c0_i32 = arith.constant 0 : i32
    %c0_i32_0 = arith.constant 0 : i32
    %c0_i32_1 = arith.constant 0 : i32
    return %c0_i32, %c0_i32_0 : i32, i32
  }
  func.func @transform_5(%arg0: i32) -> (i32, i32) {
    %c0_i32 = arith.constant 0 : i32
    %c0_i32_0 = arith.constant 0 : i32
    %c0_i32_1 = arith.constant 0 : i32
    return %c0_i32, %c0_i32_0 : i32, i32
  }
  func.func @transform_6(%arg0: i32) -> (i32, i32) {
    %c0_i32 = arith.constant 0 : i32
    %c0_i32_0 = arith.constant 0 : i32
    return %arg0, %c0_i32 : i32, i32
  }
  func.func @transform_7(%arg0: i32) -> (i32, i32) {
    %c0_i32 = arith.constant 0 : i32
    %c0_i32_0 = arith.constant 0 : i32
    %c0_i32_1 = arith.constant 0 : i32
    return %c0_i32, %c0_i32_0 : i32, i32
  }
  func.func @transform_8(%arg0: i32) -> (i32, i32) {
    %c0_i32 = arith.constant 0 : i32
    %c0_i32_0 = arith.constant 0 : i32
    %c0_i32_1 = arith.constant 0 : i32
    return %c0_i32, %c0_i32_0 : i32, i32
  }
}

module attributes {stable_mosaic.version = 11 : i64} {
  func.func @bn_add_bn_relu_kernel(%arg0: i32, %arg1: memref<128x16xbf16, #tpu.memory_space<vmem>>, %arg2: memref<1x16xf32, #tpu.memory_space<vmem>>, %arg3: memref<1x16xf32, #tpu.memory_space<vmem>>, %arg4: memref<1x16xf32, #tpu.memory_space<vmem>>, %arg5: memref<1x16xf32, #tpu.memory_space<vmem>>, %arg6: memref<128x16xbf16, #tpu.memory_space<vmem>>, %arg7: memref<1x16xf32, #tpu.memory_space<vmem>>, %arg8: memref<1x16xf32, #tpu.memory_space<vmem>>, %arg9: memref<1x16xf32, #tpu.memory_space<vmem>>, %arg10: memref<1x16xf32, #tpu.memory_space<vmem>>, %arg11: memref<128x16xf32, #tpu.memory_space<vmem>>) attributes {dimension_semantics = [#tpu.dimension_semantics<parallel>], iteration_bounds = array<i64: 4>, scalar_prefetch = 0 : i64, scratch_operands = 0 : i64, tpu.core_type = #tpu.core_type<tc>, window_params = [{transform_indices = @transform_0, window_bounds = array<i64: 128, 16>}, {pipeline_mode = #tpu.pipeline_mode<synchronous>, transform_indices = @transform_1, window_bounds = array<i64: 1, 16>}, {pipeline_mode = #tpu.pipeline_mode<synchronous>, transform_indices = @transform_2, window_bounds = array<i64: 1, 16>}, {pipeline_mode = #tpu.pipeline_mode<synchronous>, transform_indices = @transform_3, window_bounds = array<i64: 1, 16>}, {pipeline_mode = #tpu.pipeline_mode<synchronous>, transform_indices = @transform_4, window_bounds = array<i64: 1, 16>}, {transform_indices = @transform_5, window_bounds = array<i64: 128, 16>}, {pipeline_mode = #tpu.pipeline_mode<synchronous>, transform_indices = @transform_6, window_bounds = array<i64: 1, 16>}, {pipeline_mode = #tpu.pipeline_mode<synchronous>, transform_indices = @transform_7, window_bounds = array<i64: 1, 16>}, {pipeline_mode = #tpu.pipeline_mode<synchronous>, transform_indices = @transform_8, window_bounds = array<i64: 1, 16>}, {pipeline_mode = #tpu.pipeline_mode<synchronous>, transform_indices = @transform_9, window_bounds = array<i64: 1, 16>}, {transform_indices = @transform_10, window_bounds = array<i64: 128, 16>}]} {
    %c0 = arith.constant 0 : index
    %c0_0 = arith.constant 0 : index
    %0 = vector.load %arg2[%c0, %c0_0] : memref<1x16xf32, #tpu.memory_space<vmem>>, vector<1x16xf32>
    %cst = arith.constant 0.001953125 : f32
    %1 = vector.broadcast %cst : f32 to vector<1x16xf32>
    %2 = arith.mulf %0, %1 : vector<1x16xf32>
    %c0_1 = arith.constant 0 : index
    %c0_2 = arith.constant 0 : index
    %3 = vector.load %arg3[%c0_1, %c0_2] : memref<1x16xf32, #tpu.memory_space<vmem>>, vector<1x16xf32>
    %cst_3 = arith.constant 0.001953125 : f32
    %4 = vector.broadcast %cst_3 : f32 to vector<1x16xf32>
    %5 = arith.mulf %3, %4 : vector<1x16xf32>
    %6 = arith.mulf %2, %2 : vector<1x16xf32>
    %7 = arith.subf %5, %6 : vector<1x16xf32>
    %c0_4 = arith.constant 0 : index
    %c0_5 = arith.constant 0 : index
    %8 = vector.load %arg4[%c0_4, %c0_5] : memref<1x16xf32, #tpu.memory_space<vmem>>, vector<1x16xf32>
    %cst_6 = arith.constant 9.99999974E-6 : f32
    %9 = vector.broadcast %cst_6 : f32 to vector<1x16xf32>
    %10 = arith.addf %7, %9 : vector<1x16xf32>
    %11 = math.rsqrt %10 : vector<1x16xf32>
    %12 = arith.mulf %8, %11 : vector<1x16xf32>
    %c0_7 = arith.constant 0 : index
    %c0_8 = arith.constant 0 : index
    %13 = vector.load %arg5[%c0_7, %c0_8] : memref<1x16xf32, #tpu.memory_space<vmem>>, vector<1x16xf32>
    %14 = arith.mulf %2, %12 : vector<1x16xf32>
    %15 = arith.subf %13, %14 : vector<1x16xf32>
    %c0_9 = arith.constant 0 : index
    %c0_10 = arith.constant 0 : index
    %16 = vector.load %arg7[%c0_9, %c0_10] : memref<1x16xf32, #tpu.memory_space<vmem>>, vector<1x16xf32>
    %cst_11 = arith.constant 0.001953125 : f32
    %17 = vector.broadcast %cst_11 : f32 to vector<1x16xf32>
    %18 = arith.mulf %16, %17 : vector<1x16xf32>
    %c0_12 = arith.constant 0 : index
    %c0_13 = arith.constant 0 : index
    %19 = vector.load %arg8[%c0_12, %c0_13] : memref<1x16xf32, #tpu.memory_space<vmem>>, vector<1x16xf32>
    %cst_14 = arith.constant 0.001953125 : f32
    %20 = vector.broadcast %cst_14 : f32 to vector<1x16xf32>
    %21 = arith.mulf %19, %20 : vector<1x16xf32>
    %22 = arith.mulf %18, %18 : vector<1x16xf32>
    %23 = arith.subf %21, %22 : vector<1x16xf32>
    %c0_15 = arith.constant 0 : index
    %c0_16 = arith.constant 0 : index
    %24 = vector.load %arg9[%c0_15, %c0_16] : memref<1x16xf32, #tpu.memory_space<vmem>>, vector<1x16xf32>
    %cst_17 = arith.constant 9.99999974E-6 : f32
    %25 = vector.broadcast %cst_17 : f32 to vector<1x16xf32>
    %26 = arith.addf %23, %25 : vector<1x16xf32>
    %27 = math.rsqrt %26 : vector<1x16xf32>
    %28 = arith.mulf %24, %27 : vector<1x16xf32>
    %c0_18 = arith.constant 0 : index
    %c0_19 = arith.constant 0 : index
    %29 = vector.load %arg10[%c0_18, %c0_19] : memref<1x16xf32, #tpu.memory_space<vmem>>, vector<1x16xf32>
    %30 = arith.mulf %18, %28 : vector<1x16xf32>
    %31 = arith.subf %29, %30 : vector<1x16xf32>
    %c0_20 = arith.constant 0 : index
    %c0_21 = arith.constant 0 : index
    %32 = vector.load %arg1[%c0_20, %c0_21] : memref<128x16xbf16, #tpu.memory_space<vmem>>, vector<128x16xbf16>
    %33 = arith.extf %32 : vector<128x16xbf16> to vector<128x16xf32>
    %c0_22 = arith.constant 0 : index
    %c0_23 = arith.constant 0 : index
    %34 = vector.load %arg6[%c0_22, %c0_23] : memref<128x16xbf16, #tpu.memory_space<vmem>>, vector<128x16xbf16>
    %35 = arith.extf %34 : vector<128x16xbf16> to vector<128x16xf32>
    %36 = vector.broadcast %12 : vector<1x16xf32> to vector<128x16xf32>
    %37 = arith.mulf %33, %36 : vector<128x16xf32>
    %38 = vector.broadcast %15 : vector<1x16xf32> to vector<128x16xf32>
    %39 = arith.addf %37, %38 : vector<128x16xf32>
    %40 = vector.broadcast %28 : vector<1x16xf32> to vector<128x16xf32>
    %41 = arith.mulf %35, %40 : vector<128x16xf32>
    %42 = arith.addf %39, %41 : vector<128x16xf32>
    %43 = vector.broadcast %31 : vector<1x16xf32> to vector<128x16xf32>
    %44 = arith.addf %42, %43 : vector<128x16xf32>
    %cst_24 = arith.constant 0.000000e+00 : f32
    %45 = vector.broadcast %cst_24 : f32 to vector<128x16xf32>
    %46 = arith.maximumf %44, %45 : vector<128x16xf32>
    %c0_25 = arith.constant 0 : index
    %c0_26 = arith.constant 0 : index
    %47 = vector.load %arg11[%c0_25, %c0_26] : memref<128x16xf32, #tpu.memory_space<vmem>>, vector<128x16xf32>
    tpu.vector_store %arg11[%c0_25, %c0_26], %46 {strides = array<i32>} : memref<128x16xf32, #tpu.memory_space<vmem>>, vector<128x16xf32>,
    return
  }
  func.func @transform_0(%arg0: i32) -> (i32, i32) {
    %c0_i32 = arith.constant 0 : i32
    %c0_i32_0 = arith.constant 0 : i32
    return %arg0, %c0_i32 : i32, i32
  }
  func.func @transform_1(%arg0: i32) -> (i32, i32) {
    %c0_i32 = arith.constant 0 : i32
    %c0_i32_0 = arith.constant 0 : i32
    %c0_i32_1 = arith.constant 0 : i32
    return %c0_i32, %c0_i32_0 : i32, i32
  }
  func.func @transform_2(%arg0: i32) -> (i32, i32) {
    %c0_i32 = arith.constant 0 : i32
    %c0_i32_0 = arith.constant 0 : i32
    %c0_i32_1 = arith.constant 0 : i32
    return %c0_i32, %c0_i32_0 : i32, i32
  }
  func.func @transform_3(%arg0: i32) -> (i32, i32) {
    %c0_i32 = arith.constant 0 : i32
    %c0_i32_0 = arith.constant 0 : i32
    %c0_i32_1 = arith.constant 0 : i32
    return %c0_i32, %c0_i32_0 : i32, i32
  }
  func.func @transform_4(%arg0: i32) -> (i32, i32) {
    %c0_i32 = arith.constant 0 : i32
    %c0_i32_0 = arith.constant 0 : i32
    %c0_i32_1 = arith.constant 0 : i32
    return %c0_i32, %c0_i32_0 : i32, i32
  }
  func.func @transform_5(%arg0: i32) -> (i32, i32) {
    %c0_i32 = arith.constant 0 : i32
    %c0_i32_0 = arith.constant 0 : i32
    return %arg0, %c0_i32 : i32, i32
  }
  func.func @transform_6(%arg0: i32) -> (i32, i32) {
    %c0_i32 = arith.constant 0 : i32
    %c0_i32_0 = arith.constant 0 : i32
    %c0_i32_1 = arith.constant 0 : i32
    return %c0_i32, %c0_i32_0 : i32, i32
  }
  func.func @transform_7(%arg0: i32) -> (i32, i32) {
    %c0_i32 = arith.constant 0 : i32
    %c0_i32_0 = arith.constant 0 : i32
    %c0_i32_1 = arith.constant 0 : i32
    return %c0_i32, %c0_i32_0 : i32, i32
  }
  func.func @transform_8(%arg0: i32) -> (i32, i32) {
    %c0_i32 = arith.constant 0 : i32
    %c0_i32_0 = arith.constant 0 : i32
    %c0_i32_1 = arith.constant 0 : i32
    return %c0_i32, %c0_i32_0 : i32, i32
  }
  func.func @transform_9(%arg0: i32) -> (i32, i32) {
    %c0_i32 = arith.constant 0 : i32
    %c0_i32_0 = arith.constant 0 : i32
    %c0_i32_1 = arith.constant 0 : i32
    return %c0_i32, %c0_i32_0 : i32, i32
  }
  func.func @transform_10(%arg0: i32) -> (i32, i32) {
    %c0_i32 = arith.constant 0 : i32
    %c0_i32_0 = arith.constant 0 : i32
    return %arg0, %c0_i32 : i32, i32
  }
}

</mosaic_0001>

<bundles_post_ra>
// kernel: bottleneck_forward.8
= control target key start
LH: loop header
LB: loop body
LE: loop exit
PB: predicated region body
PF: predicated region fallthrough
CT: control target
= control target key end

     0   :  { %s660_s15 = smov 0   ;;  %s792_s0 = inlined_call_operand.vmem [shape: bf16[512,8], index: 0, kind: input, shape index: {}]   ;;  %s793_s1 = inlined_call_operand.vmem [shape: bf16[8,16], index: 1, kind: input, shape index: {}]   ;;  %s794_s2 = inlined_call_operand.vmem [shape: bf16[512,16], index: 2, kind: output, shape index: {0}]   ;;  %s795_s3 = inlined_call_operand.vmem [shape: f32[1,16], index: 3, kind: output, shape index: {1}]   ;;  %s796_s4 = inlined_call_operand.vmem [shape: f32[1,16], index: 4, kind: output, shape index: {2}]  }
   0x1 LB: > { %s554_s16 = sadd.s32 4294967295, %s632_s15   ;;  %p558_p0 = scmp.ge.s32.totalorder %s632_s15, 1  ;;  %s632_s15 = sphi %s660_s15, %s15_s15  }
   0x2   : > { %p158_p1 = scmp.lt.s32.totalorder %s632_s15, 5 }
   0x4   : > { %p159_p2 = pnand %p558_p0, %p158_p1 }
   0x5   : > { %s559_s17 = sshll.u32 (!%p159_p2), %s554_s16, 4  ;;  %p563_p4 = scmp.ne.s32.totalorder (!%p159_p2), %s554_s16, 0 }
   0x6   : > { %162 = sbr.rel (%p159_p2) target bundleno = 222 (0xde), region = 28  ;;  %p185_p3 = scmp.lt.s32.totalorder (!%p159_p2), %s559_s17, 63 }
   0xb   : > { %s798_s17 = smov (!%p185_p3, %s559_s17), 63  ;;  %200 = sbr.rel (%p563_p4) target bundleno = 19 (0x13), region = 32 }
   0xc   : > { %s560_s18 = sshll.u32 %s798_s17, 2 }
   0xd   : > { %s188_s21 = scalar_lea.vmem %s792_s0, %s560_s18  ;;  %s674_s24 = scalar_lea.vmem %s794_s2, %s560_s18 }
  0x10   : > { %vm201_vm0 = vcmask 122880   ;;  %v634_v0 = vmov 0.0  }
  0x11   : > { %202 = vst.msk [vmem:[%s795_s3] sm:$0x1] %vm201_vm0, %v634_v0 }
  0x12   : > { %203 = vst.msk [vmem:[%s796_s4] sm:$0x1] %vm201_vm0, %v634_v0 }
  0x13 PF: > { %v220_v1 = vld [vmem:[%s793_s1] sm:$0xf]  ;;  %vm286_vm1 = vcmask 1043456   ;;  %v608_v4 = vld [vmem:[%s188_s21 + $0x10] sm:$0xff]  ;;  %vm261_vm2 = vcmask 64512   ;;  %v607_v7 = vld [vmem:[%s188_s21 + $0x8] sm:$0xff] }
  0x14   : > { %v288_v2 = vsel %vm286_vm1, %v220_v1, 0  ;;  %v606_v3 = vld [vmem:[%s188_s21] sm:$0xff]  ;;  %v612_v6 = vld [vmem:[%s188_s21 + $0x30] sm:$0xff]  ;;  %v609_v8 = vld [vmem:[%s188_s21 + $0x18] sm:$0xff]  ;;  %vm355_vm3 = vcmask 125952   ;;  %vm389_vm4 = vcmask 130048  }
  0x15   : > { %297 = vmatpush.bf16.msra.mxu0 %v288_v2  ;;  %614 = vmatpush.bf16.msra.mxu1 %v288_v2  ;;  %v610_v5 = vld [vmem:[%s188_s21 + $0x20] sm:$0xff]  ;;  %v611_v9 = vld [vmem:[%s188_s21 + $0x28] sm:$0xff]  ;;  %v613_v10 = vld [vmem:[%s188_s21 + $0x38] sm:$0xff]  ;;  %vm428_vm5 = vcmask 122880  }
  0x16   : > { %615 = vmatpush.bf16.msra.mxu2 %v288_v2  ;;  %616 = vmatpush.bf16.msra.mxu3 %v288_v2 }
  0x18   : > { %596 = vmatmul.msk.bf16.vlgmr.msra.gmra.mxu0 %vm261_vm2, %v606_v3  ;;  %598 = vmatmul.msk.bf16.vlgmr.msra.gmra.mxu1 %vm261_vm2, %v608_v4 }
  0x19   : > { %600 = vmatmul.msk.bf16.vlgmr.msra.gmra.mxu2 %vm261_vm2, %v610_v5  ;;  %602 = vmatmul.msk.bf16.vlgmr.msra.gmra.mxu3 %vm261_vm2, %v612_v6 }
  0x28   : > { %597 = vmatmul.msk.bf16.gmra.mxu0 %vm261_vm2, %v607_v7  ;;  %599 = vmatmul.msk.bf16.gmra.mxu1 %vm261_vm2, %v609_v8 }
  0x29   : > { %601 = vmatmul.msk.bf16.gmra.mxu2 %vm261_vm2, %v611_v9  ;;  %603 = vmatmul.msk.bf16.gmra.mxu3 %vm261_vm2, %v613_v10 }
  0x95   : > { %v299_v11 = vpop.f32.mrf.mxu0  ;;  %v309_v12 = vpop.f32.mrf.mxu1 }
  0x96   : > { %v339_v13 = vpack.c.bf16 %v299_v11, %v299_v11  ;;  %v343_v14 = vpack.c.bf16 %v309_v12, %v309_v12 }
  0x98   : > { %356 = vst.msk [vmem:[%s674_s24] sm:$0xf] %vm355_vm3, %v339_v13  ;;  %v372_v32 = vunpack.c.l.bf16 %v339_v13  ;;  %v376_v41 = vunpack.c.l.bf16 %v343_v14 }
  0x99   : > { %360 = vst.msk [vmem:[%s674_s24 + $0x10] sm:$0xf] %vm355_vm3, %v343_v14 }
  0x9a   : > { %v431_v35 = vmul.f32 %v372_v32, %v372_v32  ;;  %v390_v40 = vsel %vm389_vm4, %v372_v32, 0.0  ;;  %v435_v57 = vmul.f32 %v376_v41, %v376_v41  ;;  %v397_v63 = vsel %vm389_vm4, %v376_v41, 0.0 }
  0x9c   : > { %v319_v15 = vpop.f32.mrf.mxu2  ;;  %v329_v16 = vpop.f32.mrf.mxu3  ;;  %v447_v51 = vsel %vm389_vm4, %v431_v35, 0.0  ;;  %v454_v9 = vsel %vm389_vm4, %v435_v57, 0.0 }
  0x9d   : > { %v301_v17 = vpop.f32.mrf.mxu0  ;;  %v311_v18 = vpop.f32.mrf.mxu1  ;;  %v697_v19 = vpack.c.bf16 %v319_v15, %v319_v15  ;;  %v699_v22 = vpack.c.bf16 %v329_v16, %v329_v16 }
  0x9e   : > { %v340_v20 = vpack.c.bf16 %v301_v17, %v301_v17  ;;  %v344_v21 = vpack.c.bf16 %v311_v18, %v311_v18 }
  0x9f   : > { %364 = vst.msk [vmem:[%s674_s24 + $0x20] sm:$0xf] %vm355_vm3, %v697_v19  ;;  %v380_v11 = vunpack.c.l.bf16 %v697_v19 }
  0xa0   : > { %357 = vst.msk [vmem:[%s674_s24 + $0x4] sm:$0xf] %vm355_vm3, %v340_v20  ;;  %v373_v25 = vunpack.c.l.bf16 %v340_v20  ;;  %v377_v52 = vunpack.c.l.bf16 %v344_v21 }
  0xa1   : > { %361 = vst.msk [vmem:[%s674_s24 + $0x14] sm:$0xf] %vm355_vm3, %v344_v21 }
  0xa2   : > { %368 = vst.msk [vmem:[%s674_s24 + $0x30] sm:$0xf] %vm355_vm3, %v699_v22  ;;  %v432_v34 = vmul.f32 %v373_v25, %v373_v25  ;;  %v391_v36 = vsel %vm389_vm4, %v373_v25, 0.0  ;;  %v436_v0 = vmul.f32 %v377_v52, %v377_v52  ;;  %v399_v10 = vsel %vm389_vm4, %v377_v52, 0.0 }
  0xa3   : > { %v392_v50 = vadd.f32 %v391_v36, %v390_v40 }
  0xa4   : > { %v321_v23 = vpop.f32.mrf.mxu2  ;;  %v331_v24 = vpop.f32.mrf.mxu3  ;;  %v448_v42 = vsel %vm389_vm4, %v432_v34, 0.0  ;;  %v456_v15 = vsel %vm389_vm4, %v436_v0, 0.0 }
  0xa5   : > { %v304_v26 = vpop.f32.mrf.mxu0  ;;  %v314_v27 = vpop.f32.mrf.mxu1  ;;  %v711_v28 = vpack.c.bf16 %v321_v23, %v321_v23  ;;  %v713_v31 = vpack.c.bf16 %v331_v24, %v331_v24  ;;  %v449_v55 = vadd.f32 %v448_v42, %v447_v51  ;;  %v439_v23 = vmul.f32 %v380_v11, %v380_v11 }
  0xa6   : > { %v341_v29 = vpack.c.bf16 %v304_v26, %v304_v26  ;;  %v345_v30 = vpack.c.bf16 %v314_v27, %v314_v27 }
  0xa7   : > { %365 = vst.msk [vmem:[%s674_s24 + $0x24] sm:$0xf] %vm355_vm3, %v711_v28  ;;  %v381_v17 = vunpack.c.l.bf16 %v711_v28  ;;  %v462_v35 = vsel %vm389_vm4, %v439_v23, 0.0  ;;  %v430_v23 = vld [vmem:[%s796_s4] sm:$0x1] }
  0xa8   : > { %358 = vst.msk [vmem:[%s674_s24 + $0x8] sm:$0xf] %vm355_vm3, %v341_v29  ;;  %v374_v33 = vunpack.c.l.bf16 %v341_v29  ;;  %v378_v58 = vunpack.c.l.bf16 %v345_v30  ;;  %v405_v29 = vsel %vm389_vm4, %v380_v11, 0.0 }
  0xa9   : > { %362 = vst.msk [vmem:[%s674_s24 + $0x18] sm:$0xf] %vm355_vm3, %v345_v30  ;;  %v440_v30 = vmul.f32 %v381_v17, %v381_v17  ;;  %v407_v36 = vsel %vm389_vm4, %v381_v17, 0.0 }
  0xaa   : > { %369 = vst.msk [vmem:[%s674_s24 + $0x34] sm:$0xf] %vm355_vm3, %v713_v31  ;;  %v433_v37 = vmul.f32 %v374_v33, %v374_v33  ;;  %v393_v46 = vsel %vm389_vm4, %v374_v33, 0.0  ;;  %v437_v12 = vmul.f32 %v378_v58, %v378_v58  ;;  %v401_v16 = vsel %vm389_vm4, %v378_v58, 0.0 }
  0xab   : > { %v394_v56 = vadd.f32 %v393_v46, %v392_v50  ;;  %v464_v41 = vsel %vm389_vm4, %v440_v30, 0.0 }
  0xac   : > { %v324_v38 = vpop.f32.mrf.mxu2  ;;  %v334_v39 = vpop.f32.mrf.mxu3  ;;  %v450_v53 = vsel %vm389_vm4, %v433_v37, 0.0  ;;  %v458_v24 = vsel %vm389_vm4, %v437_v12, 0.0  ;;  %v384_v37 = vunpack.c.l.bf16 %v699_v22 }
  0xad   : > { %v306_v43 = vpop.f32.mrf.mxu0  ;;  %v316_v44 = vpop.f32.mrf.mxu1  ;;  %v349_v45 = vpack.c.bf16 %v324_v38, %v324_v38  ;;  %v729_v49 = vpack.c.bf16 %v334_v39, %v334_v39  ;;  %v451_v61 = vadd.f32 %v450_v53, %v449_v55 }
  0xae   : > { %v342_v47 = vpack.c.bf16 %v306_v43, %v306_v43  ;;  %v346_v48 = vpack.c.bf16 %v316_v44, %v316_v44  ;;  %v385_v43 = vunpack.c.l.bf16 %v713_v31  ;;  %v413_v53 = vsel %vm389_vm4, %v384_v37, 0.0 }
  0xaf   : > { %366 = vst.msk [vmem:[%s674_s24 + $0x28] sm:$0xf] %vm355_vm3, %v349_v45  ;;  %v382_v25 = vunpack.c.l.bf16 %v349_v45  ;;  %v386_v51 = vunpack.c.l.bf16 %v729_v49 }
  0xb0   : > { %359 = vst.msk [vmem:[%s674_s24 + $0xc] sm:$0xf] %vm355_vm3, %v342_v47  ;;  %v375_v54 = vunpack.c.l.bf16 %v342_v47  ;;  %v379_v2 = vunpack.c.l.bf16 %v346_v48  ;;  %v443_v47 = vmul.f32 %v384_v37, %v384_v37 }
  0xb1   : > { %363 = vst.msk [vmem:[%s674_s24 + $0x1c] sm:$0xf] %vm355_vm3, %v346_v48  ;;  %v441_v38 = vmul.f32 %v382_v25, %v382_v25  ;;  %v409_v42 = vsel %vm389_vm4, %v382_v25, 0.0 }
  0xb2   : > { %v395_v59 = vsel %vm389_vm4, %v375_v54, 0.0  ;;  %v434_v60 = vmul.f32 %v375_v54, %v375_v54  ;;  %370 = vst.msk [vmem:[%s674_s24 + $0x38] sm:$0xf] %vm355_vm3, %v729_v49  ;;  %v438_v18 = vmul.f32 %v379_v2, %v379_v2  ;;  %v403_v19 = vsel %vm389_vm4, %v379_v2, 0.0 }
  0xb3   : > { %v396_v62 = vadd.f32 %v395_v59, %v394_v56  ;;  %v466_v48 = vsel %vm389_vm4, %v441_v38, 0.0  ;;  %v444_v54 = vmul.f32 %v385_v43, %v385_v43  ;;  %v470_v58 = vsel %vm389_vm4, %v443_v47, 0.0 }
  0xb4   : > { %v452_v1 = vsel %vm389_vm4, %v434_v60, 0.0  ;;  %v326_v3 = vpop.f32.mrf.mxu2  ;;  %v336_v4 = vpop.f32.mrf.mxu3  ;;  %v460_v32 = vsel %vm389_vm4, %v438_v18, 0.0  ;;  %v415_v59 = vsel %vm389_vm4, %v385_v43, 0.0  ;;  %v445_v60 = vmul.f32 %v386_v51, %v386_v51  ;;  %v388_v18 = vld [vmem:[%s795_s3] sm:$0x1] }
  0xb5   : > { %v398_v5 = vadd.f32 %v397_v63, %v396_v62  ;;  %v453_v6 = vadd.f32 %v452_v1, %v451_v61  ;;  %v350_v7 = vpack.c.bf16 %v326_v3, %v326_v3  ;;  %v354_v8 = vpack.c.bf16 %v336_v4, %v336_v4 }
  0xb6   : > { %v472_v63 = vsel %vm389_vm4, %v444_v54, 0.0  ;;  %v417_v49 = vsel %vm389_vm4, %v386_v51, 0.0  ;;  %v474_v3 = vsel %vm389_vm4, %v445_v60, 0.0 }
  0xb7   : > { %v455_v13 = vadd.f32 %v454_v9, %v453_v6  ;;  %v400_v14 = vadd.f32 %v399_v10, %v398_v5  ;;  %367 = vst.msk [vmem:[%s674_s24 + $0x2c] sm:$0xf] %vm355_vm3, %v350_v7  ;;  %v383_v33 = vunpack.c.l.bf16 %v350_v7  ;;  %v387_v56 = vunpack.c.l.bf16 %v354_v8 }
  0xb8   : > { %371 = vst.msk [vmem:[%s674_s24 + $0x3c] sm:$0xf] %vm355_vm3, %v354_v8 }
  0xb9   : > { %v402_v20 = vadd.f32 %v401_v16, %v400_v14  ;;  %v457_v21 = vadd.f32 %v456_v15, %v455_v13  ;;  %v442_v44 = vmul.f32 %v383_v33, %v383_v33  ;;  %v411_v50 = vsel %vm389_vm4, %v383_v33, 0.0 }
  0xba   : > { %v446_v0 = vmul.f32 %v387_v56, %v387_v56  ;;  %v419_v4 = vsel %vm389_vm4, %v387_v56, 0.0 }
  0xbb   : > { %v404_v26 = vadd.f32 %v403_v19, %v402_v20  ;;  %v459_v27 = vadd.f32 %v458_v24, %v457_v21  ;;  %v468_v55 = vsel %vm389_vm4, %v442_v44, 0.0 }
  0xbc   : > { %v476_v7 = vsel %vm389_vm4, %v446_v0, 0.0 }
  0xbd   : > { %v406_v28 = vadd.f32 %v405_v29, %v404_v26  ;;  %v461_v34 = vadd.f32 %v460_v32, %v459_v27 }
  0xbf   : > { %v463_v39 = vadd.f32 %v462_v35, %v461_v34  ;;  %v408_v40 = vadd.f32 %v407_v36, %v406_v28 }
  0xc1   : > { %v410_v45 = vadd.f32 %v409_v42, %v408_v40  ;;  %v465_v46 = vadd.f32 %v464_v41, %v463_v39 }
  0xc3   : > { %v467_v22 = vadd.f32 %v466_v48, %v465_v46  ;;  %v412_v52 = vadd.f32 %v411_v50, %v410_v45 }
  0xc5   : > { %v414_v57 = vadd.f32 %v413_v53, %v412_v52  ;;  %v469_v31 = vadd.f32 %v468_v55, %v467_v22 }
  0xc7   : > { %v471_v61 = vadd.f32 %v470_v58, %v469_v31  ;;  %v416_v62 = vadd.f32 %v415_v59, %v414_v57 }
  0xc9   : > { %v418_v1 = vadd.f32 %v417_v49, %v416_v62  ;;  %v473_v2 = vadd.f32 %v472_v63, %v471_v61 }
  0xcb   : > { %v475_v5 = vadd.f32 %v474_v3, %v473_v2  ;;  %v420_v6 = vadd.f32 %v419_v4, %v418_v1 }
  0xcd   : > { %v421_v8 = vrot.slane %v420_v6, 4  ;;  %v477_v9 = vadd.f32 %v476_v7, %v475_v5 }
  0xcf   : > { %v422_v10 = vadd.f32 %v421_v8, %v420_v6  ;;  %v478_v11 = vrot.slane %v477_v9, 4 }
  0xd1   : > { %v423_v12 = vrot.slane %v422_v10, 2  ;;  %v479_v13 = vadd.f32 %v478_v11, %v477_v9 }
  0xd3   : > { %v424_v14 = vadd.f32 %v423_v12, %v422_v10  ;;  %v480_v15 = vrot.slane %v479_v13, 2 }
  0xd5   : > { %v425_v16 = vrot.slane %v424_v14, 1  ;;  %v481_v17 = vadd.f32 %v480_v15, %v479_v13 }
  0xd7   : > { %v426_v20 = vadd.f32 %v425_v16, %v424_v14  ;;  %v482_v21 = vrot.slane %v481_v17, 1 }
  0xd9   : > { %v427_v24 = vadd.f32 %v426_v20, %v388_v18  ;;  %v483_v19 = vadd.f32 %v482_v21, %v481_v17 }
  0xdb   : > { %429 = vst.msk [vmem:[%s795_s3] sm:$0x1] %vm428_vm5, %v427_v24  ;;  %v484_v25 = vadd.f32 %v483_v19, %v430_v23 }
  0xdd   : > { %485 = vst.msk [vmem:[%s796_s4] sm:$0x1] %vm428_vm5, %v484_v25 }
  0xde PF: > { %s15_s15 = sadd.s32 1, %s632_s15  }
  0xdf   : > { %p12_p5 = scmp.ge.s32.totalorder %s15_s15, 6  }
  0xe1   :  { %14 = sbr.rel (!%p12_p5) target bundleno = 1 (0x1), region = 78 }

// kernel: bottleneck_forward.5
= control target key start
LH: loop header
LB: loop body
LE: loop exit
PB: predicated region body
PF: predicated region fallthrough
CT: control target
= control target key end

     0   :  { %s660_s15 = smov 0   ;;  %s792_s0 = inlined_call_operand.vmem [shape: bf16[512,8], index: 0, kind: input, shape index: {}]   ;;  %s793_s1 = inlined_call_operand.vmem [shape: bf16[8,4], index: 1, kind: input, shape index: {}]   ;;  %s794_s2 = inlined_call_operand.vmem [shape: bf16[512,4], index: 2, kind: output, shape index: {0}]   ;;  %s795_s3 = inlined_call_operand.vmem [shape: f32[1,4], index: 3, kind: output, shape index: {1}]   ;;  %s796_s4 = inlined_call_operand.vmem [shape: f32[1,4], index: 4, kind: output, shape index: {2}]  }
   0x1 LB: > { %s554_s16 = sadd.s32 4294967295, %s632_s15   ;;  %p558_p0 = scmp.ge.s32.totalorder %s632_s15, 1  ;;  %s632_s15 = sphi %s660_s15, %s15_s15  }
   0x2   : > { %p158_p1 = scmp.lt.s32.totalorder %s632_s15, 5 }
   0x4   : > { %p159_p2 = pnand %p558_p0, %p158_p1 }
   0x5   : > { %s559_s17 = sshll.u32 (!%p159_p2), %s554_s16, 4  ;;  %p563_p4 = scmp.ne.s32.totalorder (!%p159_p2), %s554_s16, 0 }
   0x6   : > { %162 = sbr.rel (%p159_p2) target bundleno = 222 (0xde), region = 28  ;;  %p185_p3 = scmp.lt.s32.totalorder (!%p159_p2), %s559_s17, 63 }
   0xb   : > { %s798_s17 = smov (!%p185_p3, %s559_s17), 63  ;;  %200 = sbr.rel (%p563_p4) target bundleno = 19 (0x13), region = 32 }
   0xc   : > { %s560_s18 = sshll.u32 %s798_s17, 2 }
   0xd   : > { %s188_s21 = scalar_lea.vmem %s792_s0, %s560_s18  ;;  %s674_s24 = scalar_lea.vmem %s794_s2, %s560_s18 }
  0x10   : > { %vm201_vm0 = vcmask 24576   ;;  %v634_v0 = vmov 0.0  }
  0x11   : > { %202 = vst.msk [vmem:[%s795_s3] sm:$0x1] %vm201_vm0, %v634_v0 }
  0x12   : > { %203 = vst.msk [vmem:[%s796_s4] sm:$0x1] %vm201_vm0, %v634_v0 }
  0x13 PF: > { %v220_v1 = vld [vmem:[%s793_s1] sm:$0xf]  ;;  %vm286_vm1 = vcmask 1043456   ;;  %v608_v4 = vld [vmem:[%s188_s21 + $0x10] sm:$0xff]  ;;  %vm261_vm2 = vcmask 64512   ;;  %v607_v7 = vld [vmem:[%s188_s21 + $0x8] sm:$0xff] }
  0x14   : > { %v288_v2 = vsel %vm286_vm1, %v220_v1, 0  ;;  %v606_v3 = vld [vmem:[%s188_s21] sm:$0xff]  ;;  %v612_v6 = vld [vmem:[%s188_s21 + $0x30] sm:$0xff]  ;;  %v609_v8 = vld [vmem:[%s188_s21 + $0x18] sm:$0xff]  ;;  %vm355_vm3 = vcmask 27648   ;;  %vm389_vm4 = vcmask 31744  }
  0x15   : > { %297 = vmatpush.bf16.msra.mxu0 %v288_v2  ;;  %614 = vmatpush.bf16.msra.mxu1 %v288_v2  ;;  %v610_v5 = vld [vmem:[%s188_s21 + $0x20] sm:$0xff]  ;;  %v611_v9 = vld [vmem:[%s188_s21 + $0x28] sm:$0xff]  ;;  %v613_v10 = vld [vmem:[%s188_s21 + $0x38] sm:$0xff]  ;;  %vm428_vm5 = vcmask 24576  }
  0x16   : > { %615 = vmatpush.bf16.msra.mxu2 %v288_v2  ;;  %616 = vmatpush.bf16.msra.mxu3 %v288_v2 }
  0x18   : > { %596 = vmatmul.msk.bf16.vlgmr.msra.gmra.mxu0 %vm261_vm2, %v606_v3  ;;  %598 = vmatmul.msk.bf16.vlgmr.msra.gmra.mxu1 %vm261_vm2, %v608_v4 }
  0x19   : > { %600 = vmatmul.msk.bf16.vlgmr.msra.gmra.mxu2 %vm261_vm2, %v610_v5  ;;  %602 = vmatmul.msk.bf16.vlgmr.msra.gmra.mxu3 %vm261_vm2, %v612_v6 }
  0x28   : > { %597 = vmatmul.msk.bf16.gmra.mxu0 %vm261_vm2, %v607_v7  ;;  %599 = vmatmul.msk.bf16.gmra.mxu1 %vm261_vm2, %v609_v8 }
  0x29   : > { %601 = vmatmul.msk.bf16.gmra.mxu2 %vm261_vm2, %v611_v9  ;;  %603 = vmatmul.msk.bf16.gmra.mxu3 %vm261_vm2, %v613_v10 }
  0x95   : > { %v299_v11 = vpop.f32.mrf.mxu0  ;;  %v309_v12 = vpop.f32.mrf.mxu1 }
  0x96   : > { %v339_v13 = vpack.c.bf16 %v299_v11, %v299_v11  ;;  %v343_v14 = vpack.c.bf16 %v309_v12, %v309_v12 }
  0x98   : > { %356 = vst.msk [vmem:[%s674_s24] sm:$0xf] %vm355_vm3, %v339_v13  ;;  %v372_v32 = vunpack.c.l.bf16 %v339_v13  ;;  %v376_v41 = vunpack.c.l.bf16 %v343_v14 }
  0x99   : > { %360 = vst.msk [vmem:[%s674_s24 + $0x10] sm:$0xf] %vm355_vm3, %v343_v14 }
  0x9a   : > { %v431_v35 = vmul.f32 %v372_v32, %v372_v32  ;;  %v390_v40 = vsel %vm389_vm4, %v372_v32, 0.0  ;;  %v435_v57 = vmul.f32 %v376_v41, %v376_v41  ;;  %v397_v63 = vsel %vm389_vm4, %v376_v41, 0.0 }
  0x9c   : > { %v319_v15 = vpop.f32.mrf.mxu2  ;;  %v329_v16 = vpop.f32.mrf.mxu3  ;;  %v447_v51 = vsel %vm389_vm4, %v431_v35, 0.0  ;;  %v454_v9 = vsel %vm389_vm4, %v435_v57, 0.0 }
  0x9d   : > { %v301_v17 = vpop.f32.mrf.mxu0  ;;  %v311_v18 = vpop.f32.mrf.mxu1  ;;  %v697_v19 = vpack.c.bf16 %v319_v15, %v319_v15  ;;  %v699_v22 = vpack.c.bf16 %v329_v16, %v329_v16 }
  0x9e   : > { %v340_v20 = vpack.c.bf16 %v301_v17, %v301_v17  ;;  %v344_v21 = vpack.c.bf16 %v311_v18, %v311_v18 }
  0x9f   : > { %364 = vst.msk [vmem:[%s674_s24 + $0x20] sm:$0xf] %vm355_vm3, %v697_v19  ;;  %v380_v11 = vunpack.c.l.bf16 %v697_v19 }
  0xa0   : > { %357 = vst.msk [vmem:[%s674_s24 + $0x4] sm:$0xf] %vm355_vm3, %v340_v20  ;;  %v373_v25 = vunpack.c.l.bf16 %v340_v20  ;;  %v377_v52 = vunpack.c.l.bf16 %v344_v21 }
  0xa1   : > { %361 = vst.msk [vmem:[%s674_s24 + $0x14] sm:$0xf] %vm355_vm3, %v344_v21 }
  0xa2   : > { %368 = vst.msk [vmem:[%s674_s24 + $0x30] sm:$0xf] %vm355_vm3, %v699_v22  ;;  %v432_v34 = vmul.f32 %v373_v25, %v373_v25  ;;  %v391_v36 = vsel %vm389_vm4, %v373_v25, 0.0  ;;  %v436_v0 = vmul.f32 %v377_v52, %v377_v52  ;;  %v399_v10 = vsel %vm389_vm4, %v377_v52, 0.0 }
  0xa3   : > { %v392_v50 = vadd.f32 %v391_v36, %v390_v40 }
  0xa4   : > { %v321_v23 = vpop.f32.mrf.mxu2  ;;  %v331_v24 = vpop.f32.mrf.mxu3  ;;  %v448_v42 = vsel %vm389_vm4, %v432_v34, 0.0  ;;  %v456_v15 = vsel %vm389_vm4, %v436_v0, 0.0 }
  0xa5   : > { %v304_v26 = vpop.f32.mrf.mxu0  ;;  %v314_v27 = vpop.f32.mrf.mxu1  ;;  %v711_v28 = vpack.c.bf16 %v321_v23, %v321_v23  ;;  %v713_v31 = vpack.c.bf16 %v331_v24, %v331_v24  ;;  %v449_v55 = vadd.f32 %v448_v42, %v447_v51  ;;  %v439_v23 = vmul.f32 %v380_v11, %v380_v11 }
  0xa6   : > { %v341_v29 = vpack.c.bf16 %v304_v26, %v304_v26  ;;  %v345_v30 = vpack.c.bf16 %v314_v27, %v314_v27 }
  0xa7   : > { %365 = vst.msk [vmem:[%s674_s24 + $0x24] sm:$0xf] %vm355_vm3, %v711_v28  ;;  %v381_v17 = vunpack.c.l.bf16 %v711_v28  ;;  %v462_v35 = vsel %vm389_vm4, %v439_v23, 0.0  ;;  %v430_v23 = vld [vmem:[%s796_s4] sm:$0x1] }
  0xa8   : > { %358 = vst.msk [vmem:[%s674_s24 + $0x8] sm:$0xf] %vm355_vm3, %v341_v29  ;;  %v374_v33 = vunpack.c.l.bf16 %v341_v29  ;;  %v378_v58 = vunpack.c.l.bf16 %v345_v30  ;;  %v405_v29 = vsel %vm389_vm4, %v380_v11, 0.0 }
  0xa9   : > { %362 = vst.msk [vmem:[%s674_s24 + $0x18] sm:$0xf] %vm355_vm3, %v345_v30  ;;  %v440_v30 = vmul.f32 %v381_v17, %v381_v17  ;;  %v407_v36 = vsel %vm389_vm4, %v381_v17, 0.0 }
  0xaa   : > { %369 = vst.msk [vmem:[%s674_s24 + $0x34] sm:$0xf] %vm355_vm3, %v713_v31  ;;  %v433_v37 = vmul.f32 %v374_v33, %v374_v33  ;;  %v393_v46 = vsel %vm389_vm4, %v374_v33, 0.0  ;;  %v437_v12 = vmul.f32 %v378_v58, %v378_v58  ;;  %v401_v16 = vsel %vm389_vm4, %v378_v58, 0.0 }
  0xab   : > { %v394_v56 = vadd.f32 %v393_v46, %v392_v50  ;;  %v464_v41 = vsel %vm389_vm4, %v440_v30, 0.0 }
  0xac   : > { %v324_v38 = vpop.f32.mrf.mxu2  ;;  %v334_v39 = vpop.f32.mrf.mxu3  ;;  %v450_v53 = vsel %vm389_vm4, %v433_v37, 0.0  ;;  %v458_v24 = vsel %vm389_vm4, %v437_v12, 0.0  ;;  %v384_v37 = vunpack.c.l.bf16 %v699_v22 }
  0xad   : > { %v306_v43 = vpop.f32.mrf.mxu0  ;;  %v316_v44 = vpop.f32.mrf.mxu1  ;;  %v349_v45 = vpack.c.bf16 %v324_v38, %v324_v38  ;;  %v729_v49 = vpack.c.bf16 %v334_v39, %v334_v39  ;;  %v451_v61 = vadd.f32 %v450_v53, %v449_v55 }
  0xae   : > { %v342_v47 = vpack.c.bf16 %v306_v43, %v306_v43  ;;  %v346_v48 = vpack.c.bf16 %v316_v44, %v316_v44  ;;  %v385_v43 = vunpack.c.l.bf16 %v713_v31  ;;  %v413_v53 = vsel %vm389_vm4, %v384_v37, 0.0 }
  0xaf   : > { %366 = vst.msk [vmem:[%s674_s24 + $0x28] sm:$0xf] %vm355_vm3, %v349_v45  ;;  %v382_v25 = vunpack.c.l.bf16 %v349_v45  ;;  %v386_v51 = vunpack.c.l.bf16 %v729_v49 }
  0xb0   : > { %359 = vst.msk [vmem:[%s674_s24 + $0xc] sm:$0xf] %vm355_vm3, %v342_v47  ;;  %v375_v54 = vunpack.c.l.bf16 %v342_v47  ;;  %v379_v2 = vunpack.c.l.bf16 %v346_v48  ;;  %v443_v47 = vmul.f32 %v384_v37, %v384_v37 }
  0xb1   : > { %363 = vst.msk [vmem:[%s674_s24 + $0x1c] sm:$0xf] %vm355_vm3, %v346_v48  ;;  %v441_v38 = vmul.f32 %v382_v25, %v382_v25  ;;  %v409_v42 = vsel %vm389_vm4, %v382_v25, 0.0 }
  0xb2   : > { %v395_v59 = vsel %vm389_vm4, %v375_v54, 0.0  ;;  %v434_v60 = vmul.f32 %v375_v54, %v375_v54  ;;  %370 = vst.msk [vmem:[%s674_s24 + $0x38] sm:$0xf] %vm355_vm3, %v729_v49  ;;  %v438_v18 = vmul.f32 %v379_v2, %v379_v2  ;;  %v403_v19 = vsel %vm389_vm4, %v379_v2, 0.0 }
  0xb3   : > { %v396_v62 = vadd.f32 %v395_v59, %v394_v56  ;;  %v466_v48 = vsel %vm389_vm4, %v441_v38, 0.0  ;;  %v444_v54 = vmul.f32 %v385_v43, %v385_v43  ;;  %v470_v58 = vsel %vm389_vm4, %v443_v47, 0.0 }
  0xb4   : > { %v452_v1 = vsel %vm389_vm4, %v434_v60, 0.0  ;;  %v326_v3 = vpop.f32.mrf.mxu2  ;;  %v336_v4 = vpop.f32.mrf.mxu3  ;;  %v460_v32 = vsel %vm389_vm4, %v438_v18, 0.0  ;;  %v415_v59 = vsel %vm389_vm4, %v385_v43, 0.0  ;;  %v445_v60 = vmul.f32 %v386_v51, %v386_v51  ;;  %v388_v18 = vld [vmem:[%s795_s3] sm:$0x1] }
  0xb5   : > { %v398_v5 = vadd.f32 %v397_v63, %v396_v62  ;;  %v453_v6 = vadd.f32 %v452_v1, %v451_v61  ;;  %v350_v7 = vpack.c.bf16 %v326_v3, %v326_v3  ;;  %v354_v8 = vpack.c.bf16 %v336_v4, %v336_v4 }
  0xb6   : > { %v472_v63 = vsel %vm389_vm4, %v444_v54, 0.0  ;;  %v417_v49 = vsel %vm389_vm4, %v386_v51, 0.0  ;;  %v474_v3 = vsel %vm389_vm4, %v445_v60, 0.0 }
  0xb7   : > { %v455_v13 = vadd.f32 %v454_v9, %v453_v6  ;;  %v400_v14 = vadd.f32 %v399_v10, %v398_v5  ;;  %367 = vst.msk [vmem:[%s674_s24 + $0x2c] sm:$0xf] %vm355_vm3, %v350_v7  ;;  %v383_v33 = vunpack.c.l.bf16 %v350_v7  ;;  %v387_v56 = vunpack.c.l.bf16 %v354_v8 }
  0xb8   : > { %371 = vst.msk [vmem:[%s674_s24 + $0x3c] sm:$0xf] %vm355_vm3, %v354_v8 }
  0xb9   : > { %v402_v20 = vadd.f32 %v401_v16, %v400_v14  ;;  %v457_v21 = vadd.f32 %v456_v15, %v455_v13  ;;  %v442_v44 = vmul.f32 %v383_v33, %v383_v33  ;;  %v411_v50 = vsel %vm389_vm4, %v383_v33, 0.0 }
  0xba   : > { %v446_v0 = vmul.f32 %v387_v56, %v387_v56  ;;  %v419_v4 = vsel %vm389_vm4, %v387_v56, 0.0 }
  0xbb   : > { %v404_v26 = vadd.f32 %v403_v19, %v402_v20  ;;  %v459_v27 = vadd.f32 %v458_v24, %v457_v21  ;;  %v468_v55 = vsel %vm389_vm4, %v442_v44, 0.0 }
  0xbc   : > { %v476_v7 = vsel %vm389_vm4, %v446_v0, 0.0 }
  0xbd   : > { %v406_v28 = vadd.f32 %v405_v29, %v404_v26  ;;  %v461_v34 = vadd.f32 %v460_v32, %v459_v27 }
  0xbf   : > { %v463_v39 = vadd.f32 %v462_v35, %v461_v34  ;;  %v408_v40 = vadd.f32 %v407_v36, %v406_v28 }
  0xc1   : > { %v410_v45 = vadd.f32 %v409_v42, %v408_v40  ;;  %v465_v46 = vadd.f32 %v464_v41, %v463_v39 }
  0xc3   : > { %v467_v22 = vadd.f32 %v466_v48, %v465_v46  ;;  %v412_v52 = vadd.f32 %v411_v50, %v410_v45 }
  0xc5   : > { %v414_v57 = vadd.f32 %v413_v53, %v412_v52  ;;  %v469_v31 = vadd.f32 %v468_v55, %v467_v22 }
  0xc7   : > { %v471_v61 = vadd.f32 %v470_v58, %v469_v31  ;;  %v416_v62 = vadd.f32 %v415_v59, %v414_v57 }
  0xc9   : > { %v418_v1 = vadd.f32 %v417_v49, %v416_v62  ;;  %v473_v2 = vadd.f32 %v472_v63, %v471_v61 }
  0xcb   : > { %v475_v5 = vadd.f32 %v474_v3, %v473_v2  ;;  %v420_v6 = vadd.f32 %v419_v4, %v418_v1 }
  0xcd   : > { %v421_v8 = vrot.slane %v420_v6, 4  ;;  %v477_v9 = vadd.f32 %v476_v7, %v475_v5 }
  0xcf   : > { %v422_v10 = vadd.f32 %v421_v8, %v420_v6  ;;  %v478_v11 = vrot.slane %v477_v9, 4 }
  0xd1   : > { %v423_v12 = vrot.slane %v422_v10, 2  ;;  %v479_v13 = vadd.f32 %v478_v11, %v477_v9 }
  0xd3   : > { %v424_v14 = vadd.f32 %v423_v12, %v422_v10  ;;  %v480_v15 = vrot.slane %v479_v13, 2 }
  0xd5   : > { %v425_v16 = vrot.slane %v424_v14, 1  ;;  %v481_v17 = vadd.f32 %v480_v15, %v479_v13 }
  0xd7   : > { %v426_v20 = vadd.f32 %v425_v16, %v424_v14  ;;  %v482_v21 = vrot.slane %v481_v17, 1 }
  0xd9   : > { %v427_v24 = vadd.f32 %v426_v20, %v388_v18  ;;  %v483_v19 = vadd.f32 %v482_v21, %v481_v17 }
  0xdb   : > { %429 = vst.msk [vmem:[%s795_s3] sm:$0x1] %vm428_vm5, %v427_v24  ;;  %v484_v25 = vadd.f32 %v483_v19, %v430_v23 }
  0xdd   : > { %485 = vst.msk [vmem:[%s796_s4] sm:$0x1] %vm428_vm5, %v484_v25 }
  0xde PF: > { %s15_s15 = sadd.s32 1, %s632_s15  }
  0xdf   : > { %p12_p5 = scmp.ge.s32.totalorder %s15_s15, 6  }
  0xe1   :  { %14 = sbr.rel (!%p12_p5) target bundleno = 1 (0x1), region = 78 }

// kernel: bottleneck_forward.7
= control target key start
LH: loop header
LB: loop body
LE: loop exit
PB: predicated region body
PF: predicated region fallthrough
CT: control target
= control target key end

     0   :  { %s849_s27 = smov 0   ;;  %s1003_s0 = inlined_call_operand.vmem [shape: bf16[512,4], index: 0, kind: input, shape index: {}]   ;;  %s1004_s1 = inlined_call_operand.vmem [shape: f32[1,4], index: 1, kind: input, shape index: {}]   ;;  %s1005_s2 = inlined_call_operand.vmem [shape: f32[1,4], index: 2, kind: input, shape index: {}]   ;;  %s1006_s3 = inlined_call_operand.vmem [shape: f32[1,4], index: 3, kind: input, shape index: {}]   ;;  %s1007_s4 = inlined_call_operand.vmem [shape: f32[1,4], index: 4, kind: input, shape index: {}]   ;;  %s1008_s5 = inlined_call_operand.vmem [shape: bf16[4,16], index: 5, kind: input, shape index: {}]   ;;  %s1009_s6 = inlined_call_operand.vmem [shape: bf16[512,16], index: 6, kind: output, shape index: {0}]   ;;  %s1010_s7 = inlined_call_operand.vmem [shape: f32[1,16], index: 7, kind: output, shape index: {1}]   ;;  %s1011_s8 = inlined_call_operand.vmem [shape: f32[1,16], index: 8, kind: output, shape index: {2}]  }
   0x1 LB: > { %s722_s28 = sadd.s32 4294967295, %s801_s27   ;;  %p726_p0 = scmp.ge.s32.totalorder %s801_s27, 1  ;;  %s801_s27 = sphi %s849_s27, %s19_s27  }
   0x2   : > { %p258_p1 = scmp.lt.s32.totalorder %s801_s27, 5 }
   0x4   : > { %p259_p2 = pnand %p726_p0, %p258_p1 }
   0x5   : > { %s727_s29 = sshll.u32 (!%p259_p2), %s722_s28, 4  ;;  %p731_p4 = scmp.ne.s32.totalorder (!%p259_p2), %s722_s28, 0 }
   0x6   : > { %262 = sbr.rel (%p259_p2) target bundleno = 259 (0x103), region = 44  ;;  %p293_p3 = scmp.lt.s32.totalorder (!%p259_p2), %s727_s29, 63 }
   0xb   : > { %s1013_s29 = smov (!%p293_p3, %s727_s29), 63  ;;  %308 = sbr.rel (%p731_p4) target bundleno = 19 (0x13), region = 48 }
   0xc   : > { %s728_s30 = sshll.u32 %s1013_s29, 2 }
   0xd   : > { %s860_s11 = scalar_lea.vmem %s1003_s0, %s728_s30  ;;  %s865_s14 = scalar_lea.vmem %s1009_s6, %s728_s30 }
  0x10   : > { %vm309_vm0 = vcmask 122880   ;;  %v803_v0 = vmov 0.0  }
  0x11   : > { %310 = vst.msk [vmem:[%s1010_s7] sm:$0x1] %vm309_vm0, %v803_v0 }
  0x12   : > { %311 = vst.msk [vmem:[%s1011_s8] sm:$0x1] %vm309_vm0, %v803_v0 }
  0x13 PF: > { %v428_v1 = vld [vmem:[%s1008_s5] sm:$0x3]  ;;  %vm454_vm1 = vcmask 1041408   ;;  %v775_v18 = vld [vmem:[%s860_s11 + $0x10] sm:$0xff]   ;;  %v774_v26 = vld [vmem:[%s860_s11 + $0x8] sm:$0xff]   ;;  %vm429_vm5 = vcmask 31744  }
  0x14   : > { %v312_v2 = vld [vmem:[%s1004_s1] sm:$0x1]  ;;  %v456_v3 = vsel %vm454_vm1, %v428_v1, 0  ;;  %v779_v20 = vld [vmem:[%s860_s11 + $0x30] sm:$0xff]   ;;  %v752_v25 = vunpack.c.l.bf16 %v775_v18  ;;  %v753_v28 = vunpack.c.h.bf16 %v775_v18  ;;  %v748_v35 = vunpack.c.l.bf16 %v774_v26  ;;  %v776_v37 = vld [vmem:[%s860_s11 + $0x18] sm:$0xff]  }
  0x15   : > { %v313_v4 = vmul.f32 0.001953125, %v312_v2  ;;  %v314_v5 = vld [vmem:[%s1005_s2] sm:$0x1]  ;;  %465 = vmatpush.bf16.msra.mxu0 %v456_v3  ;;  %781 = vmatpush.bf16.msra.mxu1 %v456_v3  ;;  %v768_v31 = vunpack.c.l.bf16 %v779_v20  ;;  %v769_v34 = vunpack.c.h.bf16 %v779_v20  ;;  %v749_v36 = vunpack.c.h.bf16 %v774_v26  ;;  %v778_v42 = vld [vmem:[%s860_s11 + $0x28] sm:$0xff]   ;;  %v780_v43 = vld [vmem:[%s860_s11 + $0x38] sm:$0xff]  }
  0x16   : > { %v315_v6 = vmul.f32 0.001953125, %v314_v5  ;;  %782 = vmatpush.bf16.msra.mxu2 %v456_v3  ;;  %783 = vmatpush.bf16.msra.mxu3 %v456_v3  ;;  %v318_v15 = vld [vmem:[%s1006_s3] sm:$0x1]  ;;  %v756_v50 = vunpack.c.l.bf16 %v776_v37  ;;  %v757_v51 = vunpack.c.h.bf16 %v776_v37  ;;  %v764_v52 = vunpack.c.l.bf16 %v778_v42 }
  0x17   : > { %v316_v7 = vmul.f32 %v313_v4, %v313_v4  ;;  %v743_v17 = vld [vmem:[%s860_s11] sm:$0xff]   ;;  %v765_v53 = vunpack.c.h.bf16 %v778_v42  ;;  %v772_v54 = vunpack.c.l.bf16 %v780_v43  ;;  %v773_v55 = vunpack.c.h.bf16 %v780_v43 }
  0x18   : > { %v777_v19 = vld [vmem:[%s860_s11 + $0x20] sm:$0xff]   ;;  %v744_v23 = vunpack.c.l.bf16 %v743_v17  ;;  %v745_v24 = vunpack.c.h.bf16 %v743_v17  ;;  %vm523_vm6 = vcmask 125952   ;;  %vm557_vm7 = vcmask 130048  }
  0x19   : > { %v317_v8 = vsub.f32 %v315_v6, %v316_v7  ;;  %v331_v27 = vld [vmem:[%s1007_s4] sm:$0x1]  ;;  %v760_v29 = vunpack.c.l.bf16 %v777_v19  ;;  %v761_v30 = vunpack.c.h.bf16 %v777_v19  ;;  %vm596_vm8 = vcmask 122880  }
  0x1b   : > { %v319_v9 = vadd.f32 1e-05, %v317_v8 }
  0x1d   : > { %793 = vrsqrt.f32 %v319_v9  ;;  %vm326_vm2 = vweird.f32 %v319_v9 }
  0x23   : > { %v794_v10 = vpop.eup %793 }
  0x24   : > { %v321_v11 = vmul.f32 %v794_v10, %v319_v9  ;;  %vm327_vm3 = vweird.f32 %v794_v10 }
  0x25   : > { %vm328_vm4 = vmor %vm326_vm2, %vm327_vm3 }
  0x26   : > { %v322_v12 = vmul.f32 %v794_v10, %v321_v11 }
  0x28   : > { %v323_v13 = vmul.f32 0.5, %v322_v12 }
  0x2a   : > { %v324_v14 = vsub.f32 1.5, %v323_v13 }
  0x2c   : > { %v325_v16 = vmul.f32 %v794_v10, %v324_v14 }
  0x2e   : > { %v329_v21 = vsel %vm328_vm4, %v794_v10, %v325_v16 }
  0x2f   : > { %v330_v22 = vmul.f32 %v329_v21, %v318_v15 }
  0x31   : > { %v332_v32 = vmul.f32 %v330_v22, %v313_v4  ;;  %v367_v33 = vperm.slane %v330_v22, 0 }
  0x33   : > { %v333_v38 = vsub.f32 %v331_v27, %v332_v32  ;;  %v369_v39 = vmul.f32 %v744_v23, %v367_v33  ;;  %v370_v40 = vmul.f32 %v745_v24, %v367_v33  ;;  %v373_v41 = vmul.f32 %v752_v25, %v367_v33 }
  0x34   : > { %v374_v44 = vmul.f32 %v753_v28, %v367_v33  ;;  %v377_v45 = vmul.f32 %v760_v29, %v367_v33  ;;  %v378_v46 = vmul.f32 %v761_v30, %v367_v33  ;;  %v381_v47 = vmul.f32 %v768_v31, %v367_v33 }
  0x35   : > { %v386_v48 = vperm.slane %v333_v38, 0  ;;  %v382_v49 = vmul.f32 %v769_v34, %v367_v33  ;;  %v371_v12 = vmul.f32 %v748_v35, %v367_v33  ;;  %v372_v13 = vmul.f32 %v749_v36, %v367_v33 }
  0x36   : > { %v375_v14 = vmul.f32 %v756_v50, %v367_v33  ;;  %v376_v15 = vmul.f32 %v757_v51, %v367_v33  ;;  %v379_v16 = vmul.f32 %v764_v52, %v367_v33  ;;  %v380_v17 = vmul.f32 %v765_v53, %v367_v33 }
  0x37   : > { %v388_v56 = vadd.f32 %v386_v48, %v369_v39  ;;  %v389_v57 = vadd.f32 %v386_v48, %v370_v40  ;;  %v392_v58 = vadd.f32 %v386_v48, %v373_v41  ;;  %v393_v59 = vadd.f32 %v386_v48, %v374_v44 }
  0x38   : > { %v396_v60 = vadd.f32 %v386_v48, %v377_v45  ;;  %v397_v61 = vadd.f32 %v386_v48, %v378_v46  ;;  %v400_v62 = vadd.f32 %v386_v48, %v381_v47  ;;  %v401_v63 = vadd.f32 %v386_v48, %v382_v49 }
  0x39   : > { %v404_v0 = vmax.f32 %v388_v56, 0.0  ;;  %v405_v1 = vmax.f32 %v389_v57, 0.0  ;;  %v408_v2 = vmax.f32 %v392_v58, 0.0  ;;  %v409_v3 = vmax.f32 %v393_v59, 0.0 }
  0x3a   : > { %v412_v4 = vmax.f32 %v396_v60, 0.0  ;;  %v413_v5 = vmax.f32 %v397_v61, 0.0  ;;  %v416_v6 = vmax.f32 %v400_v62, 0.0  ;;  %v417_v7 = vmax.f32 %v401_v63, 0.0 }
  0x3b   : > { %v420_v8 = vpack.c.bf16 %v405_v1, %v404_v0  ;;  %v422_v9 = vpack.c.bf16 %v409_v3, %v408_v2  ;;  %v383_v18 = vmul.f32 %v772_v54, %v367_v33  ;;  %v384_v19 = vmul.f32 %v773_v55, %v367_v33 }
  0x3c   : > { %v424_v10 = vpack.c.bf16 %v413_v5, %v412_v4  ;;  %v426_v11 = vpack.c.bf16 %v417_v7, %v416_v6  ;;  %v390_v20 = vadd.f32 %v386_v48, %v371_v12  ;;  %v391_v21 = vadd.f32 %v386_v48, %v372_v13 }
  0x3d   : > { %732 = vmatmul.msk.bf16.vlgmr.msra.gmra.mxu0 %vm429_vm5, %v420_v8  ;;  %734 = vmatmul.msk.bf16.vlgmr.msra.gmra.mxu1 %vm429_vm5, %v422_v9  ;;  %v394_v22 = vadd.f32 %v386_v48, %v375_v14  ;;  %v395_v23 = vadd.f32 %v386_v48, %v376_v15  ;;  %v398_v24 = vadd.f32 %v386_v48, %v379_v16 }
  0x3e   : > { %736 = vmatmul.msk.bf16.vlgmr.msra.gmra.mxu2 %vm429_vm5, %v424_v10  ;;  %738 = vmatmul.msk.bf16.vlgmr.msra.gmra.mxu3 %vm429_vm5, %v426_v11  ;;  %v399_v25 = vadd.f32 %v386_v48, %v380_v17  ;;  %v402_v26 = vadd.f32 %v386_v48, %v383_v18  ;;  %v403_v27 = vadd.f32 %v386_v48, %v384_v19  ;;  %v406_v28 = vmax.f32 %v390_v20, 0.0 }
  0x3f   : > { %v407_v29 = vmax.f32 %v391_v21, 0.0  ;;  %v410_v30 = vmax.f32 %v394_v22, 0.0  ;;  %v411_v31 = vmax.f32 %v395_v23, 0.0  ;;  %v414_v32 = vmax.f32 %v398_v24, 0.0 }
  0x40   : > { %v415_v34 = vmax.f32 %v399_v25, 0.0  ;;  %v418_v35 = vmax.f32 %v402_v26, 0.0  ;;  %v419_v36 = vmax.f32 %v403_v27, 0.0 }
  0x41   : > { %v421_v37 = vpack.c.bf16 %v407_v29, %v406_v28  ;;  %v423_v33 = vpack.c.bf16 %v411_v31, %v410_v30 }
  0x42   : > { %v425_v38 = vpack.c.bf16 %v415_v34, %v414_v32  ;;  %v427_v39 = vpack.c.bf16 %v419_v36, %v418_v35 }
  0x4d   : > { %733 = vmatmul.msk.bf16.gmra.mxu0 %vm429_vm5, %v421_v37  ;;  %735 = vmatmul.msk.bf16.gmra.mxu1 %vm429_vm5, %v423_v33 }
  0x4e   : > { %737 = vmatmul.msk.bf16.gmra.mxu2 %vm429_vm5, %v425_v38  ;;  %739 = vmatmul.msk.bf16.gmra.mxu3 %vm429_vm5, %v427_v39 }
  0xba   : > { %v467_v40 = vpop.f32.mrf.mxu0  ;;  %v477_v41 = vpop.f32.mrf.mxu1 }
  0xbb   : > { %v507_v42 = vpack.c.bf16 %v467_v40, %v467_v40  ;;  %v511_v43 = vpack.c.bf16 %v477_v41, %v477_v41 }
  0xbd   : > { %524 = vst.msk [vmem:[%s865_s14] sm:$0xf] %vm523_vm6, %v507_v42  ;;  %v540_v61 = vunpack.c.l.bf16 %v507_v42  ;;  %v544_v6 = vunpack.c.l.bf16 %v511_v43 }
  0xbe   : > { %528 = vst.msk [vmem:[%s865_s14 + $0x10] sm:$0xf] %vm523_vm6, %v511_v43 }
  0xbf   : > { %v599_v0 = vmul.f32 %v540_v61, %v540_v61  ;;  %v558_v5 = vsel %vm557_vm7, %v540_v61, 0.0  ;;  %v603_v22 = vmul.f32 %v544_v6, %v544_v6  ;;  %v565_v28 = vsel %vm557_vm7, %v544_v6, 0.0 }
  0xc1   : > { %v487_v44 = vpop.f32.mrf.mxu2  ;;  %v497_v45 = vpop.f32.mrf.mxu3  ;;  %v615_v16 = vsel %vm557_vm7, %v599_v0, 0.0  ;;  %v622_v38 = vsel %vm557_vm7, %v603_v22, 0.0 }
  0xc2   : > { %v469_v46 = vpop.f32.mrf.mxu0  ;;  %v479_v47 = vpop.f32.mrf.mxu1  ;;  %v908_v48 = vpack.c.bf16 %v487_v44, %v487_v44  ;;  %v910_v51 = vpack.c.bf16 %v497_v45, %v497_v45 }
  0xc3   : > { %v508_v49 = vpack.c.bf16 %v469_v46, %v469_v46  ;;  %v512_v50 = vpack.c.bf16 %v479_v47, %v479_v47 }
  0xc4   : > { %532 = vst.msk [vmem:[%s865_s14 + $0x20] sm:$0xf] %vm523_vm6, %v908_v48  ;;  %v548_v40 = vunpack.c.l.bf16 %v908_v48 }
  0xc5   : > { %525 = vst.msk [vmem:[%s865_s14 + $0x4] sm:$0xf] %vm523_vm6, %v508_v49  ;;  %v541_v54 = vunpack.c.l.bf16 %v508_v49  ;;  %v545_v17 = vunpack.c.l.bf16 %v512_v50 }
  0xc6   : > { %529 = vst.msk [vmem:[%s865_s14 + $0x14] sm:$0xf] %vm523_vm6, %v512_v50 }
  0xc7   : > { %536 = vst.msk [vmem:[%s865_s14 + $0x30] sm:$0xf] %vm523_vm6, %v910_v51  ;;  %v600_v63 = vmul.f32 %v541_v54, %v541_v54  ;;  %v559_v1 = vsel %vm557_vm7, %v541_v54, 0.0  ;;  %v604_v29 = vmul.f32 %v545_v17, %v545_v17  ;;  %v567_v39 = vsel %vm557_vm7, %v545_v17, 0.0 }
  0xc8   : > { %v560_v15 = vadd.f32 %v559_v1, %v558_v5 }
  0xc9   : > { %v489_v52 = vpop.f32.mrf.mxu2  ;;  %v499_v53 = vpop.f32.mrf.mxu3  ;;  %v616_v7 = vsel %vm557_vm7, %v600_v63, 0.0  ;;  %v624_v44 = vsel %vm557_vm7, %v604_v29, 0.0 }
  0xca   : > { %v472_v55 = vpop.f32.mrf.mxu0  ;;  %v482_v56 = vpop.f32.mrf.mxu1  ;;  %v922_v57 = vpack.c.bf16 %v489_v52, %v489_v52  ;;  %v924_v60 = vpack.c.bf16 %v499_v53, %v499_v53  ;;  %v617_v20 = vadd.f32 %v616_v7, %v615_v16  ;;  %v607_v52 = vmul.f32 %v548_v40, %v548_v40 }
  0xcb   : > { %v509_v58 = vpack.c.bf16 %v472_v55, %v472_v55  ;;  %v513_v59 = vpack.c.bf16 %v482_v56, %v482_v56 }
  0xcc   : > { %533 = vst.msk [vmem:[%s865_s14 + $0x24] sm:$0xf] %vm523_vm6, %v922_v57  ;;  %v549_v46 = vunpack.c.l.bf16 %v922_v57  ;;  %v630_v0 = vsel %vm557_vm7, %v607_v52, 0.0  ;;  %v598_v52 = vld [vmem:[%s1011_s8] sm:$0x1] }
  0xcd   : > { %526 = vst.msk [vmem:[%s865_s14 + $0x8] sm:$0xf] %vm523_vm6, %v509_v58  ;;  %v542_v62 = vunpack.c.l.bf16 %v509_v58  ;;  %v546_v23 = vunpack.c.l.bf16 %v513_v59  ;;  %v573_v58 = vsel %vm557_vm7, %v548_v40, 0.0 }
  0xce   : > { %530 = vst.msk [vmem:[%s865_s14 + $0x18] sm:$0xf] %vm523_vm6, %v513_v59  ;;  %v608_v59 = vmul.f32 %v549_v46, %v549_v46  ;;  %v575_v1 = vsel %vm557_vm7, %v549_v46, 0.0 }
  0xcf   : > { %537 = vst.msk [vmem:[%s865_s14 + $0x34] sm:$0xf] %vm523_vm6, %v924_v60  ;;  %v601_v2 = vmul.f32 %v542_v62, %v542_v62  ;;  %v561_v11 = vsel %vm557_vm7, %v542_v62, 0.0  ;;  %v605_v41 = vmul.f32 %v546_v23, %v546_v23  ;;  %v569_v45 = vsel %vm557_vm7, %v546_v23, 0.0 }
  0xd0   : > { %v562_v21 = vadd.f32 %v561_v11, %v560_v15  ;;  %v632_v6 = vsel %vm557_vm7, %v608_v59, 0.0 }
  0xd1   : > { %v492_v3 = vpop.f32.mrf.mxu2  ;;  %v502_v4 = vpop.f32.mrf.mxu3  ;;  %v618_v18 = vsel %vm557_vm7, %v601_v2, 0.0  ;;  %v626_v53 = vsel %vm557_vm7, %v605_v41, 0.0  ;;  %v552_v2 = vunpack.c.l.bf16 %v910_v51 }
  0xd2   : > { %v474_v8 = vpop.f32.mrf.mxu0  ;;  %v484_v9 = vpop.f32.mrf.mxu1  ;;  %v517_v10 = vpack.c.bf16 %v492_v3, %v492_v3  ;;  %v940_v14 = vpack.c.bf16 %v502_v4, %v502_v4  ;;  %v619_v26 = vadd.f32 %v618_v18, %v617_v20 }
  0xd3   : > { %v510_v12 = vpack.c.bf16 %v474_v8, %v474_v8  ;;  %v514_v13 = vpack.c.bf16 %v484_v9, %v484_v9  ;;  %v553_v8 = vunpack.c.l.bf16 %v924_v60  ;;  %v581_v18 = vsel %vm557_vm7, %v552_v2, 0.0 }
  0xd4   : > { %534 = vst.msk [vmem:[%s865_s14 + $0x28] sm:$0xf] %vm523_vm6, %v517_v10  ;;  %v550_v54 = vunpack.c.l.bf16 %v517_v10  ;;  %v554_v16 = vunpack.c.l.bf16 %v940_v14 }
  0xd5   : > { %527 = vst.msk [vmem:[%s865_s14 + $0xc] sm:$0xf] %vm523_vm6, %v510_v12  ;;  %v543_v19 = vunpack.c.l.bf16 %v510_v12  ;;  %v547_v31 = vunpack.c.l.bf16 %v514_v13  ;;  %v611_v12 = vmul.f32 %v552_v2, %v552_v2 }
  0xd6   : > { %531 = vst.msk [vmem:[%s865_s14 + $0x1c] sm:$0xf] %vm523_vm6, %v514_v13  ;;  %v609_v3 = vmul.f32 %v550_v54, %v550_v54  ;;  %v577_v7 = vsel %vm557_vm7, %v550_v54, 0.0 }
  0xd7   : > { %v563_v24 = vsel %vm557_vm7, %v543_v19, 0.0  ;;  %v602_v25 = vmul.f32 %v543_v19, %v543_v19  ;;  %538 = vst.msk [vmem:[%s865_s14 + $0x38] sm:$0xf] %vm523_vm6, %v940_v14  ;;  %v606_v47 = vmul.f32 %v547_v31, %v547_v31  ;;  %v571_v48 = vsel %vm557_vm7, %v547_v31, 0.0 }
  0xd8   : > { %v564_v27 = vadd.f32 %v563_v24, %v562_v21  ;;  %v634_v13 = vsel %vm557_vm7, %v609_v3, 0.0  ;;  %v612_v19 = vmul.f32 %v553_v8, %v553_v8  ;;  %v638_v23 = vsel %vm557_vm7, %v611_v12, 0.0 }
  0xd9   : > { %v620_v30 = vsel %vm557_vm7, %v602_v25, 0.0  ;;  %v494_v32 = vpop.f32.mrf.mxu2  ;;  %v504_v34 = vpop.f32.mrf.mxu3  ;;  %v628_v61 = vsel %vm557_vm7, %v606_v47, 0.0  ;;  %v583_v24 = vsel %vm557_vm7, %v553_v8, 0.0  ;;  %v613_v25 = vmul.f32 %v554_v16, %v554_v16  ;;  %v556_v47 = vld [vmem:[%s1010_s7] sm:$0x1] }
  0xda   : > { %v566_v35 = vadd.f32 %v565_v28, %v564_v27  ;;  %v621_v36 = vadd.f32 %v620_v30, %v619_v26  ;;  %v518_v37 = vpack.c.bf16 %v494_v32, %v494_v32  ;;  %v522_v33 = vpack.c.bf16 %v504_v34, %v504_v34 }
  0xdb   : > { %v640_v28 = vsel %vm557_vm7, %v612_v19, 0.0  ;;  %v585_v14 = vsel %vm557_vm7, %v554_v16, 0.0  ;;  %v642_v32 = vsel %vm557_vm7, %v613_v25, 0.0 }
  0xdc   : > { %v623_v42 = vadd.f32 %v622_v38, %v621_v36  ;;  %v568_v43 = vadd.f32 %v567_v39, %v566_v35  ;;  %535 = vst.msk [vmem:[%s865_s14 + $0x2c] sm:$0xf] %vm523_vm6, %v518_v37  ;;  %v551_v62 = vunpack.c.l.bf16 %v518_v37  ;;  %v555_v21 = vunpack.c.l.bf16 %v522_v33 }
  0xdd   : > { %539 = vst.msk [vmem:[%s865_s14 + $0x3c] sm:$0xf] %vm523_vm6, %v522_v33 }
  0xde   : > { %v570_v49 = vadd.f32 %v569_v45, %v568_v43  ;;  %v625_v50 = vadd.f32 %v624_v44, %v623_v42  ;;  %v610_v9 = vmul.f32 %v551_v62, %v551_v62  ;;  %v579_v15 = vsel %vm557_vm7, %v551_v62, 0.0 }
  0xdf   : > { %v614_v29 = vmul.f32 %v555_v21, %v555_v21  ;;  %v587_v34 = vsel %vm557_vm7, %v555_v21, 0.0 }
  0xe0   : > { %v572_v55 = vadd.f32 %v571_v48, %v570_v49  ;;  %v627_v56 = vadd.f32 %v626_v53, %v625_v50  ;;  %v636_v20 = vsel %vm557_vm7, %v610_v9, 0.0 }
  0xe1   : > { %v644_v37 = vsel %vm557_vm7, %v614_v29, 0.0 }
  0xe2   : > { %v574_v57 = vadd.f32 %v573_v58, %v572_v55  ;;  %v629_v63 = vadd.f32 %v628_v61, %v627_v56 }
  0xe4   : > { %v631_v4 = vadd.f32 %v630_v0, %v629_v63  ;;  %v576_v5 = vadd.f32 %v575_v1, %v574_v57 }
  0xe6   : > { %v578_v10 = vadd.f32 %v577_v7, %v576_v5  ;;  %v633_v11 = vadd.f32 %v632_v6, %v631_v4 }
  0xe8   : > { %v635_v51 = vadd.f32 %v634_v13, %v633_v11  ;;  %v580_v17 = vadd.f32 %v579_v15, %v578_v10 }
  0xea   : > { %v582_v22 = vadd.f32 %v581_v18, %v580_v17  ;;  %v637_v60 = vadd.f32 %v636_v20, %v635_v51 }
  0xec   : > { %v639_v26 = vadd.f32 %v638_v23, %v637_v60  ;;  %v584_v27 = vadd.f32 %v583_v24, %v582_v22 }
  0xee   : > { %v586_v30 = vadd.f32 %v585_v14, %v584_v27  ;;  %v641_v31 = vadd.f32 %v640_v28, %v639_v26 }
  0xf0   : > { %v643_v35 = vadd.f32 %v642_v32, %v641_v31  ;;  %v588_v36 = vadd.f32 %v587_v34, %v586_v30 }
  0xf2   : > { %v589_v33 = vrot.slane %v588_v36, 4  ;;  %v645_v38 = vadd.f32 %v644_v37, %v643_v35 }
  0xf4   : > { %v590_v39 = vadd.f32 %v589_v33, %v588_v36  ;;  %v646_v40 = vrot.slane %v645_v38, 4 }
  0xf6   : > { %v591_v41 = vrot.slane %v590_v39, 2  ;;  %v647_v42 = vadd.f32 %v646_v40, %v645_v38 }
  0xf8   : > { %v592_v43 = vadd.f32 %v591_v41, %v590_v39  ;;  %v648_v44 = vrot.slane %v647_v42, 2 }
  0xfa   : > { %v593_v45 = vrot.slane %v592_v43, 1  ;;  %v649_v46 = vadd.f32 %v648_v44, %v647_v42 }
  0xfc   : > { %v594_v49 = vadd.f32 %v593_v45, %v592_v43  ;;  %v650_v50 = vrot.slane %v649_v46, 1 }
  0xfe   : > { %v595_v53 = vadd.f32 %v594_v49, %v556_v47  ;;  %v651_v48 = vadd.f32 %v650_v50, %v649_v46 }
 0x100   : > { %597 = vst.msk [vmem:[%s1010_s7] sm:$0x1] %vm596_vm8, %v595_v53  ;;  %v652_v54 = vadd.f32 %v651_v48, %v598_v52 }
 0x102   : > { %653 = vst.msk [vmem:[%s1011_s8] sm:$0x1] %vm596_vm8, %v652_v54 }
 0x103 PF: > { %s19_s27 = sadd.s32 1, %s801_s27  }
 0x104   : > { %p16_p5 = scmp.ge.s32.totalorder %s19_s27, 6  }
 0x106   :  { %18 = sbr.rel (!%p16_p5) target bundleno = 1 (0x1), region = 94 }

// kernel: bottleneck_forward.9
= control target key start
LH: loop header
LB: loop body
LE: loop exit
PB: predicated region body
PF: predicated region fallthrough
CT: control target
= control target key end

     0   :  { %s852_s13 = smov 0   ;;  %s1180_s0 = inlined_call_operand.vmem [shape: bf16[512,16], index: 0, kind: input, shape index: {}]   ;;  %s1181_s1 = inlined_call_operand.vmem [shape: f32[1,16], index: 1, kind: input, shape index: {}]   ;;  %s1182_s2 = inlined_call_operand.vmem [shape: f32[1,16], index: 2, kind: input, shape index: {}]   ;;  %s1183_s3 = inlined_call_operand.vmem [shape: f32[1,16], index: 3, kind: input, shape index: {}]   ;;  %s1184_s4 = inlined_call_operand.vmem [shape: f32[1,16], index: 4, kind: input, shape index: {}]   ;;  %s1185_s5 = inlined_call_operand.vmem [shape: bf16[512,16], index: 5, kind: input, shape index: {}]   ;;  %s1186_s6 = inlined_call_operand.vmem [shape: f32[1,16], index: 6, kind: input, shape index: {}]   ;;  %s1187_s7 = inlined_call_operand.vmem [shape: f32[1,16], index: 7, kind: input, shape index: {}]   ;;  %s1188_s8 = inlined_call_operand.vmem [shape: f32[1,16], index: 8, kind: input, shape index: {}]   ;;  %s1189_s9 = inlined_call_operand.vmem [shape: f32[1,16], index: 9, kind: input, shape index: {}]   ;;  %s1190_s10 = inlined_call_operand.vmem [shape: f32[512,16], index: 10, kind: output, shape index: {}]  }
   0x1 LB: > { %s686_s14 = sadd.s32 4294967295, %s795_s13   ;;  %p690_p0 = scmp.ge.s32.totalorder %s795_s13, 1  ;;  %s795_s13 = sphi %s852_s13, %s20_s13  }
   0x2   : > { %p324_p1 = scmp.lt.s32.totalorder %s795_s13, 5 }
   0x4   : > { %p325_p2 = pnand %p690_p0, %p324_p1 }
   0x5   : > { %s691_s15 = sshll.u32 (!%p325_p2), %s686_s14, 4 }
   0x6   : > { %328 = sbr.rel (%p325_p2) target bundleno = 75 (0x4b), region = 60  ;;  %p368_p3 = scmp.lt.s32.totalorder (!%p325_p2), %s691_s15, 63 }
   0xb   : > { %v385_v0 = vld [vmem:[%s1181_s1] sm:$0x1]  ;;  %s1196_s15 = smov (!%p368_p3, %s691_s15), 63  ;;  %vm601_vm6 = vcmask 130048  }
   0xc   : > { %v387_v1 = vld [vmem:[%s1182_s2] sm:$0x1]  ;;  %v866_v2 = vmul.f32 0.001953125, %v385_v0  ;;  %s692_s24 = sshll.u32 %s1196_s15, 2  ;;  %s696_s21 = sshll.u32 %s1196_s15, 3 }
   0xd   : > { %v388_v3 = vmul.f32 0.001953125, %v387_v1  ;;  %v407_v4 = vld [vmem:[%s1186_s6] sm:$0x1]  ;;  %s886_s27 = scalar_lea.vmem %s1180_s0, %s692_s24  ;;  %s891_s30 = scalar_lea.vmem %s1185_s5, %s692_s24 }
   0xe   : > { %v409_v5 = vld [vmem:[%s1187_s7] sm:$0x1]  ;;  %v389_v6 = vmul.f32 %v866_v2, %v866_v2  ;;  %v876_v7 = vmul.f32 0.001953125, %v407_v4  ;;  %v902_v19 = vld [vmem:[%s886_s27 + $0x8] sm:$0xff]   ;;  %v913_v27 = vld [vmem:[%s886_s27 + $0x10] sm:$0xff]   ;;  %s1067_s23 = scalar_lea.vmem %s1190_s10, %s696_s21 }
   0xf   : > { %v410_v8 = vmul.f32 0.001953125, %v409_v5  ;;  %v894_v15 = vld [vmem:[%s886_s27] sm:$0xff]   ;;  %v907_v23 = vld [vmem:[%s891_s30 + $0x8] sm:$0xff]   ;;  %v705_v30 = vunpack.c.l.bf16 %v902_v19  ;;  %v918_v31 = vld [vmem:[%s891_s30 + $0x10] sm:$0xff]   ;;  %v706_v34 = vunpack.c.h.bf16 %v902_v19  ;;  %v709_v39 = vunpack.c.l.bf16 %v913_v27 }
  0x10   : > { %v390_v9 = vsub.f32 %v388_v3, %v389_v6  ;;  %v411_v10 = vmul.f32 %v876_v7, %v876_v7  ;;  %v897_v17 = vld [vmem:[%s891_s30] sm:$0xff]   ;;  %v701_v22 = vunpack.c.l.bf16 %v894_v15  ;;  %v702_v25 = vunpack.c.h.bf16 %v894_v15  ;;  %v921_v32 = vld [vmem:[%s886_s27 + $0x18] sm:$0xff]   ;;  %v948_v47 = vld [vmem:[%s886_s27 + $0x28] sm:$0xff]  }
  0x11   : > { %v733_v24 = vunpack.c.l.bf16 %v897_v17  ;;  %v734_v26 = vunpack.c.h.bf16 %v897_v17  ;;  %v737_v33 = vunpack.c.l.bf16 %v907_v23  ;;  %v738_v35 = vunpack.c.h.bf16 %v907_v23  ;;  %v927_v36 = vld [vmem:[%s891_s30 + $0x18] sm:$0xff]   ;;  %v932_v40 = vld [vmem:[%s886_s27 + $0x20] sm:$0xff]   ;;  %v956_v53 = vld [vmem:[%s891_s30 + $0x28] sm:$0xff]  }
  0x12   : > { %v392_v11 = vadd.f32 1e-05, %v390_v9  ;;  %v412_v12 = vsub.f32 %v410_v8, %v411_v10  ;;  %v935_v41 = vld [vmem:[%s891_s30 + $0x20] sm:$0xff]   ;;  %v741_v43 = vunpack.c.l.bf16 %v918_v31  ;;  %v710_v44 = vunpack.c.h.bf16 %v913_v27  ;;  %v970_v59 = vld [vmem:[%s886_s27 + $0x30] sm:$0xff]   ;;  %v987_v8 = vld [vmem:[%s886_s27 + $0x38] sm:$0xff]  }
  0x13   : > { %v742_v45 = vunpack.c.h.bf16 %v918_v31  ;;  %v713_v46 = vunpack.c.l.bf16 %v921_v32  ;;  %v391_v48 = vld [vmem:[%s1183_s3] sm:$0x1]  ;;  %v745_v51 = vunpack.c.l.bf16 %v927_v36  ;;  %v714_v52 = vunpack.c.h.bf16 %v921_v32  ;;  %v973_v60 = vld [vmem:[%s891_s30 + $0x30] sm:$0xff]   ;;  %v990_v9 = vld [vmem:[%s891_s30 + $0x38] sm:$0xff]  }
  0x14   : > { %785 = vrsqrt.f32 %v392_v11  ;;  %v414_v13 = vadd.f32 1e-05, %v412_v12  ;;  %vm399_vm0 = vweird.f32 %v392_v11  ;;  %v746_v55 = vunpack.c.h.bf16 %v927_v36  ;;  %v413_v62 = vld [vmem:[%s1188_s8] sm:$0x1] }
  0x15   : > { %v717_v56 = vunpack.c.l.bf16 %v932_v40  ;;  %v749_v57 = vunpack.c.l.bf16 %v935_v41  ;;  %v718_v58 = vunpack.c.h.bf16 %v932_v40  ;;  %v750_v0 = vunpack.c.h.bf16 %v935_v41  ;;  %v404_v10 = vld [vmem:[%s1184_s4] sm:$0x1] }
  0x16   : > { %787 = vrsqrt.f32 %v414_v13  ;;  %vm421_vm2 = vweird.f32 %v414_v13  ;;  %v721_v1 = vunpack.c.l.bf16 %v948_v47  ;;  %v753_v4 = vunpack.c.l.bf16 %v956_v53 }
  0x17   : > { %v722_v5 = vunpack.c.h.bf16 %v948_v47  ;;  %v754_v6 = vunpack.c.h.bf16 %v956_v53  ;;  %v725_v12 = vunpack.c.l.bf16 %v970_v59  ;;  %v758_v27 = vunpack.c.h.bf16 %v973_v60 }
  0x1a   : > { %v786_v14 = vpop.eup %785 }
  0x1b   : > { %v394_v16 = vmul.f32 %v786_v14, %v392_v11  ;;  %vm400_vm1 = vweird.f32 %v786_v14 }
  0x1c   : > { %v899_v18 = vpop.eup %787  ;;  %vm939_vm4 = vmor %vm399_vm0, %vm400_vm1 }
  0x1d   : > { %v395_v20 = vmul.f32 %v786_v14, %v394_v16  ;;  %v416_v21 = vmul.f32 %v899_v18, %v414_v13  ;;  %vm422_vm3 = vweird.f32 %v899_v18  ;;  %v757_v13 = vunpack.c.l.bf16 %v973_v60 }
  0x1e   : > { %vm961_vm5 = vmor %vm421_vm2, %vm422_vm3 }
  0x1f   : > { %v396_v28 = vmul.f32 0.5, %v395_v20  ;;  %v417_v29 = vmul.f32 %v899_v18, %v416_v21 }
  0x21   : > { %v397_v37 = vsub.f32 1.5, %v396_v28  ;;  %v418_v38 = vmul.f32 0.5, %v417_v29  ;;  %v426_v28 = vld [vmem:[%s1189_s9] sm:$0x1]  ;;  %v729_v29 = vunpack.c.l.bf16 %v987_v8 }
  0x23   : > { %v398_v49 = vmul.f32 %v786_v14, %v397_v37  ;;  %v419_v50 = vsub.f32 1.5, %v418_v38  ;;  %v730_v37 = vunpack.c.h.bf16 %v987_v8  ;;  %v762_v38 = vunpack.c.h.bf16 %v990_v9 }
  0x25   : > { %v402_v61 = vsel %vm939_vm4, %v786_v14, %v398_v49  ;;  %v420_v63 = vmul.f32 %v899_v18, %v419_v50  ;;  %v726_v14 = vunpack.c.h.bf16 %v970_v59 }
  0x26   : > { %v403_v3 = vmul.f32 %v402_v61, %v391_v48 }
  0x27   : > { %v424_v11 = vsel %vm961_vm5, %v899_v18, %v420_v63  ;;  %v761_v18 = vunpack.c.l.bf16 %v990_v9 }
  0x28   : > { %v405_v16 = vmul.f32 %v403_v3, %v866_v2  ;;  %v425_v20 = vmul.f32 %v424_v11, %v413_v62  ;;  %v1002_v21 = vperm.slane %v403_v3, 0 }
  0x2a   : > { %v406_v42 = vsub.f32 %v404_v10, %v405_v16  ;;  %v427_v2 = vmul.f32 %v425_v20, %v876_v7  ;;  %v496_v48 = vmul.f32 %v701_v22, %v1002_v21  ;;  %v1016_v49 = vperm.slane %v425_v20, 0 }
  0x2b   : > { %v497_v50 = vmul.f32 %v702_v25, %v1002_v21  ;;  %v498_v54 = vmul.f32 %v705_v30, %v1002_v21  ;;  %v499_v61 = vmul.f32 %v706_v34, %v1002_v21  ;;  %v500_v62 = vmul.f32 %v709_v39, %v1002_v21 }
  0x2c   : > { %v428_v7 = vsub.f32 %v426_v28, %v427_v2  ;;  %v1026_v63 = vperm.slane %v406_v42, 0  ;;  %v534_v22 = vmul.f32 %v733_v24, %v1016_v49  ;;  %v535_v15 = vmul.f32 %v734_v26, %v1016_v49 }
  0x2d   : > { %v536_v19 = vmul.f32 %v737_v33, %v1016_v49  ;;  %v537_v25 = vmul.f32 %v738_v35, %v1016_v49  ;;  %v538_v30 = vmul.f32 %v741_v43, %v1016_v49  ;;  %v501_v34 = vmul.f32 %v710_v44, %v1002_v21 }
  0x2e   : > { %v515_v39 = vadd.f32 %v1026_v63, %v496_v48  ;;  %v1043_v3 = vperm.slane %v428_v7, 0  ;;  %v516_v24 = vadd.f32 %v1026_v63, %v497_v50  ;;  %v517_v17 = vadd.f32 %v1026_v63, %v498_v54 }
  0x2f   : > { %v518_v26 = vadd.f32 %v1026_v63, %v499_v61  ;;  %v519_v33 = vadd.f32 %v1026_v63, %v500_v62  ;;  %v520_v10 = vadd.f32 %v1026_v63, %v501_v34  ;;  %v539_v23 = vmul.f32 %v742_v45, %v1016_v49 }
  0x30   : > { %v550_v35 = vadd.f32 %v534_v22, %v515_v39  ;;  %v551_v43 = vadd.f32 %v535_v15, %v516_v24  ;;  %v552_v44 = vadd.f32 %v536_v19, %v517_v17  ;;  %v502_v11 = vmul.f32 %v713_v46, %v1002_v21 }
  0x31   : > { %v553_v16 = vadd.f32 %v537_v25, %v518_v26  ;;  %v554_v20 = vadd.f32 %v538_v30, %v519_v33  ;;  %v555_v28 = vadd.f32 %v539_v23, %v520_v10  ;;  %v540_v42 = vmul.f32 %v745_v51, %v1016_v49 }
  0x32   : > { %v569_v2 = vadd.f32 %v1043_v3, %v550_v35  ;;  %v570_v31 = vadd.f32 %v1043_v3, %v551_v43  ;;  %v571_v45 = vadd.f32 %v1043_v3, %v552_v44  ;;  %v521_v48 = vadd.f32 %v1026_v63, %v502_v11 }
  0x33   : > { %v572_v46 = vadd.f32 %v1043_v3, %v553_v16  ;;  %v573_v50 = vadd.f32 %v1043_v3, %v554_v20  ;;  %v574_v51 = vadd.f32 %v1043_v3, %v555_v28  ;;  %v503_v54 = vmul.f32 %v714_v52, %v1002_v21 }
  0x34   : > { %v585_v61 = vmax.f32 %v569_v2, 0.0  ;;  %v586_v62 = vmax.f32 %v570_v31, 0.0  ;;  %v587_v7 = vmax.f32 %v571_v45, 0.0  ;;  %v556_v22 = vadd.f32 %v540_v42, %v521_v48 }
  0x35   : > { %v588_v15 = vmax.f32 %v572_v46, 0.0  ;;  %v589_v19 = vmax.f32 %v573_v50, 0.0  ;;  %v590_v25 = vmax.f32 %v574_v51, 0.0  ;;  %v522_v30 = vadd.f32 %v1026_v63, %v503_v54 }
  0x36   : > { %602 = vst.msk [vmem:[%s1067_s23] sm:$0xff] %vm601_vm6, %v585_v61  ;;  %v575_v34 = vadd.f32 %v1043_v3, %v556_v22  ;;  %v541_v32 = vmul.f32 %v746_v55, %v1016_v49  ;;  %v504_v52 = vmul.f32 %v717_v56, %v1002_v21  ;;  %v542_v39 = vmul.f32 %v749_v57, %v1016_v49 }
  0x37   : > { %603 = vst.msk [vmem:[%s1067_s23 + $0x8] sm:$0xff] %vm601_vm6, %v586_v62  ;;  %v505_v24 = vmul.f32 %v718_v58, %v1002_v21  ;;  %v543_v36 = vmul.f32 %v750_v0, %v1016_v49  ;;  %v506_v55 = vmul.f32 %v721_v1, %v1002_v21  ;;  %v544_v56 = vmul.f32 %v753_v4, %v1016_v49 }
  0x38   : > { %604 = vst.msk [vmem:[%s1067_s23 + $0x10] sm:$0xff] %vm601_vm6, %v587_v7  ;;  %v591_v57 = vmax.f32 %v575_v34, 0.0  ;;  %v557_v17 = vadd.f32 %v541_v32, %v522_v30  ;;  %v523_v40 = vadd.f32 %v1026_v63, %v504_v52  ;;  %v507_v41 = vmul.f32 %v722_v5, %v1002_v21 }
  0x39   : > { %605 = vst.msk [vmem:[%s1067_s23 + $0x18] sm:$0xff] %vm601_vm6, %v588_v15  ;;  %v524_v58 = vadd.f32 %v1026_v63, %v505_v24  ;;  %v525_v0 = vadd.f32 %v1026_v63, %v506_v55  ;;  %v545_v1 = vmul.f32 %v754_v6, %v1016_v49  ;;  %v508_v4 = vmul.f32 %v725_v12, %v1002_v21 }
  0x3a   : > { %606 = vst.msk [vmem:[%s1067_s23 + $0x20] sm:$0xff] %vm601_vm6, %v589_v19  ;;  %v576_v47 = vadd.f32 %v1043_v3, %v557_v17  ;;  %v558_v5 = vadd.f32 %v542_v39, %v523_v40  ;;  %v526_v26 = vadd.f32 %v1026_v63, %v507_v41  ;;  %v546_v33 = vmul.f32 %v757_v13, %v1016_v49 }
  0x3b   : > { %607 = vst.msk [vmem:[%s1067_s23 + $0x28] sm:$0xff] %vm601_vm6, %v590_v25  ;;  %v559_v53 = vadd.f32 %v543_v36, %v524_v58  ;;  %v560_v6 = vadd.f32 %v544_v56, %v525_v0  ;;  %v527_v10 = vadd.f32 %v1026_v63, %v508_v4  ;;  %v509_v12 = vmul.f32 %v726_v14, %v1002_v21 }
  0x3c   : > { %608 = vst.msk [vmem:[%s1067_s23 + $0x30] sm:$0xff] %vm601_vm6, %v591_v57  ;;  %v592_v23 = vmax.f32 %v576_v47, 0.0  ;;  %v577_v35 = vadd.f32 %v1043_v3, %v558_v5  ;;  %v561_v43 = vadd.f32 %v545_v1, %v526_v26  ;;  %v547_v13 = vmul.f32 %v758_v27, %v1016_v49 }
  0x3d   : > { %v578_v44 = vadd.f32 %v1043_v3, %v559_v53  ;;  %v579_v11 = vadd.f32 %v1043_v3, %v560_v6  ;;  %v562_v16 = vadd.f32 %v546_v33, %v527_v10  ;;  %v528_v59 = vadd.f32 %v1026_v63, %v509_v12 }
  0x3e   : > { %609 = vst.msk [vmem:[%s1067_s23 + $0x38] sm:$0xff] %vm601_vm6, %v592_v23  ;;  %v593_v14 = vmax.f32 %v577_v35, 0.0  ;;  %v580_v20 = vadd.f32 %v1043_v3, %v561_v43  ;;  %v510_v28 = vmul.f32 %v729_v29, %v1002_v21  ;;  %v548_v60 = vmul.f32 %v761_v18, %v1016_v49 }
  0x3f   : > { %v594_v27 = vmax.f32 %v578_v44, 0.0  ;;  %v595_v42 = vmax.f32 %v579_v11, 0.0  ;;  %v581_v2 = vadd.f32 %v1043_v3, %v562_v16  ;;  %v563_v31 = vadd.f32 %v547_v13, %v528_v59 }
  0x40   : > { %610 = vst.msk [vmem:[%s1067_s23 + $0x40] sm:$0xff] %vm601_vm6, %v593_v14  ;;  %v596_v45 = vmax.f32 %v580_v20, 0.0  ;;  %v529_v48 = vadd.f32 %v1026_v63, %v510_v28  ;;  %v511_v29 = vmul.f32 %v730_v37, %v1002_v21  ;;  %v549_v18 = vmul.f32 %v762_v38, %v1016_v49 }
  0x41   : > { %611 = vst.msk [vmem:[%s1067_s23 + $0x48] sm:$0xff] %vm601_vm6, %v594_v27  ;;  %v597_v46 = vmax.f32 %v581_v2, 0.0  ;;  %v582_v50 = vadd.f32 %v1043_v3, %v563_v31 }
  0x42   : > { %612 = vst.msk [vmem:[%s1067_s23 + $0x50] sm:$0xff] %vm601_vm6, %v595_v42  ;;  %v564_v51 = vadd.f32 %v548_v60, %v529_v48  ;;  %v530_v54 = vadd.f32 %v1026_v63, %v511_v29 }
  0x43   : > { %613 = vst.msk [vmem:[%s1067_s23 + $0x58] sm:$0xff] %vm601_vm6, %v596_v45  ;;  %v598_v8 = vmax.f32 %v582_v50, 0.0 }
  0x44   : > { %614 = vst.msk [vmem:[%s1067_s23 + $0x60] sm:$0xff] %vm601_vm6, %v597_v46  ;;  %v583_v9 = vadd.f32 %v1043_v3, %v564_v51  ;;  %v565_v21 = vadd.f32 %v549_v18, %v530_v54 }
  0x45   : > { %615 = vst.msk [vmem:[%s1067_s23 + $0x68] sm:$0xff] %vm601_vm6, %v598_v8 }
  0x46   : > { %v599_v37 = vmax.f32 %v583_v9, 0.0  ;;  %v584_v38 = vadd.f32 %v1043_v3, %v565_v21 }
  0x48   : > { %616 = vst.msk [vmem:[%s1067_s23 + $0x70] sm:$0xff] %vm601_vm6, %v599_v37  ;;  %v600_v49 = vmax.f32 %v584_v38, 0.0 }
  0x4a   : > { %617 = vst.msk [vmem:[%s1067_s23 + $0x78] sm:$0xff] %vm601_vm6, %v600_v49 }
  0x4b PF: > { %s20_s13 = sadd.s32 1, %s795_s13  }
  0x4c   : > { %p17_p4 = scmp.ge.s32.totalorder %s20_s13, 6  }
  0x4e   :  { %19 = sbr.rel (!%p17_p4) target bundleno = 1 (0x1), region = 93 }

// kernel: bottleneck_forward.6
= control target key start
LH: loop header
LB: loop body
LE: loop exit
PB: predicated region body
PF: predicated region fallthrough
CT: control target
= control target key end

     0   :  { %s2874_s27 = smov 0   ;;  %s4148_s0 = inlined_call_operand.vmem [shape: bf16[2,16,16,4], index: 0, kind: input, shape index: {}]   ;;  %s4149_s1 = inlined_call_operand.vmem [shape: f32[1,4], index: 1, kind: input, shape index: {}]   ;;  %s4150_s2 = inlined_call_operand.vmem [shape: f32[1,4], index: 2, kind: input, shape index: {}]   ;;  %s4151_s3 = inlined_call_operand.vmem [shape: f32[1,4], index: 3, kind: input, shape index: {}]   ;;  %s4152_s4 = inlined_call_operand.vmem [shape: f32[1,4], index: 4, kind: input, shape index: {}]   ;;  %s4153_s5 = inlined_call_operand.vmem [shape: bf16[3,3,4,4], index: 5, kind: input, shape index: {}]   ;;  %s4154_s6 = inlined_call_operand.vmem [shape: bf16[512,4], index: 6, kind: output, shape index: {0}]   ;;  %s4155_s7 = inlined_call_operand.vmem [shape: f32[1,4], index: 7, kind: output, shape index: {1}]   ;;  %s4156_s8 = inlined_call_operand.vmem [shape: f32[1,4], index: 8, kind: output, shape index: {2}]  }
   0x1 LB: > { %s2570_s28 = sadd.s32 4294967295, %s2826_s27   ;;  %p2574_p0 = scmp.ge.s32.totalorder %s2826_s27, 1  ;;  %s2826_s27 = sphi %s2874_s27, %s19_s27  }
   0x2   : > { %p257_p1 = scmp.lt.s32.totalorder %s2826_s27, 3 }
   0x4   : > { %p258_p2 = pnand %p2574_p0, %p257_p1 }
   0x6   : > { %261 = sbr.rel (%p258_p2) target bundleno = 861 (0x35d), region = 44 }
   0xb   : > { %p291_p3 = scmp.lt.s32.totalorder %s2570_s28, 1  ;;  %s2577_s29 = sshll.u32 %s2570_s28, 5 }
   0xc   : > { %p297_p4 = scmp.lt.s32.totalorder %s2577_s29, 63  ;;  %p2579_p5 = scmp.ne.s32.totalorder %s2570_s28, 0 }
   0xd   : > { %s292_s30 = scalar_select %p291_p3, %s2570_s28, 1 }
   0xe   : > { %s4308_s29 = smov (!%p297_p4, %s2577_s29), 63  ;;  %306 = sbr.rel (%p2579_p5) target bundleno = 76 (0x4c), region = 48 }
   0xf   : > { %s2726_s9 = sshll.u32 %s292_s30, 7  ;;  %s2578_s13 = sshll.u32 %s4308_s29, 2 }
  0x10   : > { %s2885_s12 = scalar_lea.vmem %s4148_s0, %s2726_s9  ;;  %s2890_s16 = scalar_lea.vmem %s4154_s6, %s2578_s13 }
  0x13   : > { %vm307_vm0 = vcmask 24576   ;;  %vm310_vm1 = vcmask 31744   ;;  %v2828_v0 = vmov 0.0   ;;  %vm313_vm2 = vcmask 25600  }
  0x14   : > { %308 = vst.msk [vmem:[%s4155_s7] sm:$0x1] %vm307_vm0, %v2828_v0 }
  0x15   : > { %309 = vst.msk [vmem:[%s4156_s8] sm:$0x1] %vm307_vm0, %v2828_v0 }
  0x16   : > { %311 = vst.msk [vmem:[#allocation2] sm:$0xff] %vm310_vm1, %v2828_v0 }
  0x17   : > { %312 = vst.msk [vmem:[#allocation2 + $0x8] sm:$0xff] %vm310_vm1, %v2828_v0 }
  0x18   : > { %315 = vst.msk [vmem:[#allocation2 + $0x18] sm:$0xff] %vm310_vm1, %v2828_v0 }
  0x19   : > { %316 = vst.msk [vmem:[#allocation2 + $0x20] sm:$0xff] %vm310_vm1, %v2828_v0 }
  0x1a   : > { %318 = vst.msk [vmem:[#allocation2 + $0x30] sm:$0xff] %vm310_vm1, %v2828_v0 }
  0x1b   : > { %319 = vst.msk [vmem:[#allocation2 + $0x38] sm:$0xff] %vm310_vm1, %v2828_v0 }
  0x1c   : > { %321 = vst.msk [vmem:[#allocation2 + $0x48] sm:$0xff] %vm310_vm1, %v2828_v0 }
  0x1d   : > { %322 = vst.msk [vmem:[#allocation2 + $0x50] sm:$0xff] %vm310_vm1, %v2828_v0 }
  0x1e   : > { %324 = vst.msk [vmem:[#allocation2 + $0x60] sm:$0xff] %vm310_vm1, %v2828_v0 }
  0x1f   : > { %325 = vst.msk [vmem:[#allocation2 + $0x68] sm:$0xff] %vm310_vm1, %v2828_v0 }
  0x20   : > { %327 = vst.msk [vmem:[#allocation2 + $0x78] sm:$0xff] %vm310_vm1, %v2828_v0 }
  0x21   : > { %328 = vst.msk [vmem:[#allocation2 + $0x80] sm:$0xff] %vm310_vm1, %v2828_v0 }
  0x22   : > { %330 = vst.msk [vmem:[#allocation2 + $0x90] sm:$0xff] %vm310_vm1, %v2828_v0 }
  0x23   : > { %331 = vst.msk [vmem:[#allocation2 + $0x98] sm:$0xff] %vm310_vm1, %v2828_v0 }
  0x24   : > { %333 = vst.msk [vmem:[#allocation2 + $0xa8] sm:$0xff] %vm310_vm1, %v2828_v0 }
  0x25   : > { %334 = vst.msk [vmem:[#allocation2 + $0xb0] sm:$0xff] %vm310_vm1, %v2828_v0 }
  0x26   : > { %336 = vst.msk [vmem:[#allocation2 + $0xc0] sm:$0xff] %vm310_vm1, %v2828_v0 }
  0x27   : > { %337 = vst.msk [vmem:[#allocation2 + $0xc8] sm:$0xff] %vm310_vm1, %v2828_v0 }
  0x28   : > { %339 = vst.msk [vmem:[#allocation2 + $0xd8] sm:$0xff] %vm310_vm1, %v2828_v0 }
  0x29   : > { %340 = vst.msk [vmem:[#allocation2 + $0xe0] sm:$0xff] %vm310_vm1, %v2828_v0 }
  0x2a   : > { %342 = vst.msk [vmem:[#allocation2 + $0xf0] sm:$0xff] %vm310_vm1, %v2828_v0 }
  0x2b   : > { %343 = vst.msk [vmem:[#allocation2 + $0xf8] sm:$0xff] %vm310_vm1, %v2828_v0 }
  0x2c   : > { %345 = vst.msk [vmem:[#allocation2 + $0x108] sm:$0xff] %vm310_vm1, %v2828_v0 }
  0x2d   : > { %346 = vst.msk [vmem:[#allocation2 + $0x110] sm:$0xff] %vm310_vm1, %v2828_v0 }
  0x2e   : > { %348 = vst.msk [vmem:[#allocation2 + $0x120] sm:$0xff] %vm310_vm1, %v2828_v0 }
  0x2f   : > { %349 = vst.msk [vmem:[#allocation2 + $0x128] sm:$0xff] %vm310_vm1, %v2828_v0 }
  0x30   : > { %351 = vst.msk [vmem:[#allocation2 + $0x138] sm:$0xff] %vm310_vm1, %v2828_v0 }
  0x31   : > { %352 = vst.msk [vmem:[#allocation2 + $0x140] sm:$0xff] %vm310_vm1, %v2828_v0 }
  0x32   : > { %354 = vst.msk [vmem:[#allocation2 + $0x150] sm:$0xff] %vm310_vm1, %v2828_v0 }
  0x33   : > { %355 = vst.msk [vmem:[#allocation2 + $0x158] sm:$0xff] %vm310_vm1, %v2828_v0 }
  0x34   : > { %357 = vst.msk [vmem:[#allocation2 + $0x168] sm:$0xff] %vm310_vm1, %v2828_v0 }
  0x35   : > { %358 = vst.msk [vmem:[#allocation2 + $0x170] sm:$0xff] %vm310_vm1, %v2828_v0 }
  0x36   : > { %360 = vst.msk [vmem:[#allocation2 + $0x180] sm:$0xff] %vm310_vm1, %v2828_v0 }
  0x37   : > { %361 = vst.msk [vmem:[#allocation2 + $0x188] sm:$0xff] %vm310_vm1, %v2828_v0 }
  0x38   : > { %363 = vst.msk [vmem:[#allocation2 + $0x198] sm:$0xff] %vm310_vm1, %v2828_v0 }
  0x39   : > { %364 = vst.msk [vmem:[#allocation2 + $0x1a0] sm:$0xff] %vm310_vm1, %v2828_v0 }
  0x3a   : > { %314 = vst.msk [vmem:[#allocation2 + $0x10] sm:$0x3] %vm313_vm2, %v2828_v0 }
  0x3b   : > { %317 = vst.msk [vmem:[#allocation2 + $0x28] sm:$0x3] %vm313_vm2, %v2828_v0 }
  0x3c   : > { %320 = vst.msk [vmem:[#allocation2 + $0x40] sm:$0x3] %vm313_vm2, %v2828_v0 }
  0x3d   : > { %323 = vst.msk [vmem:[#allocation2 + $0x58] sm:$0x3] %vm313_vm2, %v2828_v0 }
  0x3e   : > { %326 = vst.msk [vmem:[#allocation2 + $0x70] sm:$0x3] %vm313_vm2, %v2828_v0 }
  0x3f   : > { %329 = vst.msk [vmem:[#allocation2 + $0x88] sm:$0x3] %vm313_vm2, %v2828_v0 }
  0x40   : > { %332 = vst.msk [vmem:[#allocation2 + $0xa0] sm:$0x3] %vm313_vm2, %v2828_v0 }
  0x41   : > { %335 = vst.msk [vmem:[#allocation2 + $0xb8] sm:$0x3] %vm313_vm2, %v2828_v0 }
  0x42   : > { %338 = vst.msk [vmem:[#allocation2 + $0xd0] sm:$0x3] %vm313_vm2, %v2828_v0 }
  0x43   : > { %341 = vst.msk [vmem:[#allocation2 + $0xe8] sm:$0x3] %vm313_vm2, %v2828_v0 }
  0x44   : > { %344 = vst.msk [vmem:[#allocation2 + $0x100] sm:$0x3] %vm313_vm2, %v2828_v0 }
  0x45   : > { %347 = vst.msk [vmem:[#allocation2 + $0x118] sm:$0x3] %vm313_vm2, %v2828_v0 }
  0x46   : > { %350 = vst.msk [vmem:[#allocation2 + $0x130] sm:$0x3] %vm313_vm2, %v2828_v0 }
  0x47   : > { %353 = vst.msk [vmem:[#allocation2 + $0x148] sm:$0x3] %vm313_vm2, %v2828_v0 }
  0x48   : > { %356 = vst.msk [vmem:[#allocation2 + $0x160] sm:$0x3] %vm313_vm2, %v2828_v0 }
  0x49   : > { %359 = vst.msk [vmem:[#allocation2 + $0x178] sm:$0x3] %vm313_vm2, %v2828_v0 }
  0x4a   : > { %362 = vst.msk [vmem:[#allocation2 + $0x190] sm:$0x3] %vm313_vm2, %v2828_v0 }
  0x4b   : > { %365 = vst.msk [vmem:[#allocation2 + $0x1a8] sm:$0x3] %vm313_vm2, %v2828_v0 }
  0x4c PF: > { %v643_v1 = vld [vmem:[%s4153_s5 + $0x2] sm:$0x3]  ;;  %vm892_vm3 = vcmask 1041408   ;;  %v366_v2 = vld [vmem:[%s4149_s1] sm:$0x1]  ;;  %v2964_v15 = vld [vmem:[#allocation2 + $0x8] sm:$0xff] }
  0x4d   : > { %v894_v3 = vsel %vm892_vm3, %v643_v1, 0  ;;  %v367_v4 = vmul.f32 0.001953125, %v366_v2  ;;  %v368_v5 = vld [vmem:[%s4150_s2] sm:$0x1]  ;;  %v2966_v16 = vld [vmem:[#allocation2 + $0x10] sm:$0x3] }
  0x4e   : > { %2806 = vmatpush.bf16.msra.mxu1 %v894_v3  ;;  %2807 = vmatpush.bf16.msra.mxu2 %v894_v3  ;;  %v369_v6 = vmul.f32 0.001953125, %v368_v5  ;;  %v2962_v14 = vld [vmem:[#allocation2] sm:$0xff]  ;;  %v2793_v18 = vld [vmem:[%s2885_s12 + $0x18] sm:$0xff]   ;;  %v717_v20 = vrot.slane %v2964_v15, 1  ;;  %v719_v21 = vrot.slane %v2966_v16, 1  ;;  %vm715_vm7 = vcmask 1046528  }
  0x4f   : > { %2808 = vmatpush.bf16.msra.mxu3 %v894_v3  ;;  %903 = vmatpush.bf16.msra.mxu0 %v894_v3  ;;  %v370_v7 = vmul.f32 %v367_v4, %v367_v4  ;;  %v716_v19 = vrot.slane %v2962_v14, 1  ;;  %v372_v23 = vld [vmem:[%s4151_s3] sm:$0x1]  ;;  %v2797_v25 = vld [vmem:[%s2885_s12 + $0x38] sm:$0xff]   ;;  %v2741_v29 = vunpack.c.l.bf16 %v2793_v18  ;;  %vm555_vm8 = vcmask 31744  }
  0x50   : > { %v2801_v26 = vld [vmem:[%s2885_s12 + $0x58] sm:$0xff]   ;;  %v720_v28 = vsel %vm715_vm7, %v717_v20, %v719_v21  ;;  %v644_v30 = vld [vmem:[%s4153_s5 + $0x4] sm:$0x3]  ;;  %v645_v32 = vld [vmem:[%s4153_s5 + $0x6] sm:$0x3]  ;;  %v2742_v35 = vunpack.c.h.bf16 %v2793_v18  ;;  %v2757_v41 = vunpack.c.l.bf16 %v2797_v25  ;;  %v2758_v47 = vunpack.c.h.bf16 %v2797_v25 }
  0x51   : > { %v371_v8 = vsub.f32 %v369_v6, %v370_v7  ;;  %v718_v27 = vsel %vm715_vm7, %v716_v19, %v717_v20  ;;  %v2794_v33 = vld [vmem:[%s2885_s12 + $0x20] sm:$0xff]   ;;  %v1303_v36 = vsel %vm892_vm3, %v644_v30, 0  ;;  %v1431_v37 = vsel %vm892_vm3, %v645_v32, 0  ;;  %v646_v39 = vld [vmem:[%s4153_s5 + $0x8] sm:$0x3] }
  0x52   : > { %v828_v31 = vpack.c.bf16 %v720_v28, %v718_v27  ;;  %v642_v38 = vld [vmem:[%s4153_s5] sm:$0x3]  ;;  %1312 = vmatpush.bf16.msrb.mxu2 %v1303_v36  ;;  %v1569_v43 = vsel %vm892_vm3, %v646_v39, 0  ;;  %v2773_v48 = vunpack.c.l.bf16 %v2801_v26  ;;  %v2774_v49 = vunpack.c.h.bf16 %v2801_v26  ;;  %v2795_v25 = vld [vmem:[%s2885_s12 + $0x28] sm:$0xff]  }
  0x53   : > { %v373_v9 = vadd.f32 1e-05, %v371_v8  ;;  %v1034_v42 = vsel %vm892_vm3, %v642_v38, 0  ;;  %v2798_v44 = vld [vmem:[%s2885_s12 + $0x40] sm:$0xff]   ;;  %1440 = vmatpush.bf16.msrb.mxu3 %v1431_v37  ;;  %v2745_v50 = vunpack.c.l.bf16 %v2794_v33  ;;  %1578 = vmatpush.bf16.msrb.mxu0 %v1569_v43  ;;  %v2746_v53 = vunpack.c.h.bf16 %v2794_v33  ;;  %v2799_v36 = vld [vmem:[%s2885_s12 + $0x48] sm:$0xff]  }
  0x54   : > { %2580 = vmatmul.msk.bf16.vlgmr.msra.gmra.mxu0 %vm555_vm8, %v828_v31  ;;  %v2802_v45 = vld [vmem:[%s2885_s12 + $0x60] sm:$0xff]   ;;  %1043 = vmatpush.bf16.msrb.mxu1 %v1034_v42  ;;  %v2761_v54 = vunpack.c.l.bf16 %v2798_v44  ;;  %v2762_v55 = vunpack.c.h.bf16 %v2798_v44  ;;  %v2803_v44 = vld [vmem:[%s2885_s12 + $0x68] sm:$0xff]   ;;  %vm1125_vm9 = vcmask 1045504   ;;  %vm2260_vm10 = vcmask 27648  }
  0x55   : > { %2818 = vrsqrt.f32 %v373_v9  ;;  %vm380_vm4 = vweird.f32 %v373_v9  ;;  %v385_v46 = vld [vmem:[%s4152_s4] sm:$0x1]  ;;  %v2777_v56 = vunpack.c.l.bf16 %v2802_v45  ;;  %v2778_v57 = vunpack.c.h.bf16 %v2802_v45 }
  0x56   : > { %v2728_v58 = vld [vmem:[%s2885_s12] sm:$0xff]   ;;  %vm2396_vm11 = vcmask 24576  }
  0x57   : > { %v2729_v5 = vunpack.c.l.bf16 %v2728_v58 }
  0x5b   : > { %v2819_v10 = vpop.eup %2818 }
  0x5c   : > { %v375_v11 = vmul.f32 %v2819_v10, %v373_v9  ;;  %vm381_vm5 = vweird.f32 %v2819_v10  ;;  %v2730_v9 = vunpack.c.h.bf16 %v2728_v58 }
  0x5d   : > { %vm2972_vm6 = vmor %vm380_vm4, %vm381_vm5 }
  0x5e   : > { %v376_v12 = vmul.f32 %v2819_v10, %v375_v11 }
  0x60   : > { %v377_v13 = vmul.f32 0.5, %v376_v12 }
  0x62   : > { %v378_v17 = vsub.f32 1.5, %v377_v13 }
  0x64   : > { %v379_v24 = vmul.f32 %v2819_v10, %v378_v17 }
  0x66   : > { %v383_v34 = vsel %vm2972_vm6, %v2819_v10, %v379_v24 }
  0x67   : > { %v384_v40 = vmul.f32 %v383_v34, %v372_v23  ;;  %v2749_v34 = vunpack.c.l.bf16 %v2795_v25 }
  0x69   : > { %v386_v51 = vmul.f32 %v384_v40, %v367_v4  ;;  %v3008_v52 = vperm.slane %v384_v40, 0 }
  0x6b   : > { %4207 = vst [vmem:[#allocation3_spill] sm:$0xff] %v3008_v52  ;;  %v387_v59 = vsub.f32 %v385_v46, %v386_v51  ;;  %v461_v60 = vmul.f32 %v2741_v29, %v3008_v52  ;;  %v462_v61 = vmul.f32 %v2742_v35, %v3008_v52  ;;  %v469_v62 = vmul.f32 %v2757_v41, %v3008_v52  ;;  %v3054_v51 = vld [vmem:[%s2885_s12 + $0x8] sm:$0xff]  }
  0x6c   : > { %v470_v63 = vmul.f32 %v2758_v47, %v3008_v52  ;;  %v477_v0 = vmul.f32 %v2773_v48, %v3008_v52  ;;  %v478_v1 = vmul.f32 %v2774_v49, %v3008_v52  ;;  %v463_v2 = vmul.f32 %v2745_v50, %v3008_v52 }
  0x6d   : > { %v3018_v3 = vperm.slane %v387_v59, 0  ;;  %v464_v4 = vmul.f32 %v2746_v53, %v3008_v52  ;;  %v471_v6 = vmul.f32 %v2761_v54, %v3008_v52  ;;  %v472_v7 = vmul.f32 %v2762_v55, %v3008_v52 }
  0x6e   : > { %v479_v8 = vmul.f32 %v2777_v56, %v3008_v52  ;;  %v480_v20 = vmul.f32 %v2778_v57, %v3008_v52  ;;  %v455_v27 = vmul.f32 %v2729_v5, %v3008_v52  ;;  %v456_v28 = vmul.f32 %v2730_v9, %v3008_v52 }
  0x6f   : > { %4208 = vst [vmem:[#allocation4_spill] sm:$0xff] %v3018_v3  ;;  %v496_v10 = vadd.f32 %v3018_v3, %v461_v60  ;;  %v497_v11 = vadd.f32 %v3018_v3, %v462_v61  ;;  %v504_v12 = vadd.f32 %v3018_v3, %v469_v62  ;;  %v505_v13 = vadd.f32 %v3018_v3, %v470_v63 }
  0x70   : > { %v512_v17 = vadd.f32 %v3018_v3, %v477_v0  ;;  %v513_v18 = vadd.f32 %v3018_v3, %v478_v1  ;;  %v498_v19 = vadd.f32 %v3018_v3, %v463_v2  ;;  %v499_v24 = vadd.f32 %v3018_v3, %v464_v4 }
  0x71   : > { %v528_v21 = vmax.f32 %v496_v10, 0.0  ;;  %v529_v22 = vmax.f32 %v497_v11, 0.0  ;;  %v536_v23 = vmax.f32 %v504_v12, 0.0  ;;  %v537_v26 = vmax.f32 %v505_v13, 0.0 }
  0x72   : > { %v544_v29 = vmax.f32 %v512_v17, 0.0  ;;  %v545_v30 = vmax.f32 %v513_v18, 0.0  ;;  %v506_v31 = vadd.f32 %v3018_v3, %v471_v6  ;;  %v507_v32 = vadd.f32 %v3018_v3, %v472_v7 }
  0x73   : > { %562 = vst.msk [vmem:[#allocation2 + $0x61] sm:$0xff] %vm555_vm8, %v528_v21  ;;  %v514_v33 = vadd.f32 %v3018_v3, %v479_v8  ;;  %v2750_v35 = vunpack.c.h.bf16 %v2795_v25  ;;  %v530_v37 = vmax.f32 %v498_v19, 0.0  ;;  %v531_v38 = vmax.f32 %v499_v24, 0.0 }
  0x74   : > { %563 = vst.msk [vmem:[#allocation2 + $0x69] sm:$0xff] %vm555_vm8, %v529_v22  ;;  %v515_v39 = vadd.f32 %v3018_v3, %v480_v20  ;;  %v490_v40 = vadd.f32 %v3018_v3, %v455_v27  ;;  %v491_v41 = vadd.f32 %v3018_v3, %v456_v28  ;;  %v465_v42 = vmul.f32 %v2749_v34, %v3008_v52  ;;  %v2796_v34 = vld [vmem:[%s2885_s12 + $0x30] sm:$0xff]  }
  0x75   : > { %570 = vst.msk [vmem:[#allocation2 + $0xc1] sm:$0xff] %vm555_vm8, %v536_v23  ;;  %v466_v43 = vmul.f32 %v2750_v35, %v3008_v52  ;;  %v538_v45 = vmax.f32 %v506_v31, 0.0  ;;  %v2765_v46 = vunpack.c.l.bf16 %v2799_v36  ;;  %v2766_v47 = vunpack.c.h.bf16 %v2799_v36 }
  0x76   : > { %571 = vst.msk [vmem:[#allocation2 + $0xc9] sm:$0xff] %vm555_vm8, %v537_v26  ;;  %v539_v48 = vmax.f32 %v507_v32, 0.0  ;;  %v546_v49 = vmax.f32 %v514_v33, 0.0  ;;  %v500_v50 = vadd.f32 %v3018_v3, %v465_v42  ;;  %v2781_v55 = vunpack.c.l.bf16 %v2803_v44 }
  0x77   : > { %578 = vst.msk [vmem:[#allocation2 + $0x121] sm:$0xff] %vm555_vm8, %v544_v29  ;;  %v501_v53 = vadd.f32 %v3018_v3, %v466_v43  ;;  %v473_v54 = vmul.f32 %v2765_v46, %v3008_v52  ;;  %v2782_v56 = vunpack.c.h.bf16 %v2803_v44  ;;  %v547_v58 = vmax.f32 %v515_v39, 0.0 }
  0x78   : > { %579 = vst.msk [vmem:[#allocation2 + $0x129] sm:$0xff] %vm555_vm8, %v545_v30  ;;  %v522_v59 = vmax.f32 %v490_v40, 0.0  ;;  %v523_v60 = vmax.f32 %v491_v41, 0.0  ;;  %v474_v0 = vmul.f32 %v2766_v47, %v3008_v52  ;;  %v2733_v2 = vunpack.c.l.bf16 %v3054_v51 }
  0x79   : > { %564 = vst.msk [vmem:[#allocation2 + $0x79] sm:$0xff] %vm555_vm8, %v530_v37  ;;  %v508_v1 = vadd.f32 %v3018_v3, %v473_v54  ;;  %v532_v7 = vmax.f32 %v500_v50, 0.0  ;;  %v2734_v8 = vunpack.c.h.bf16 %v3054_v51  ;;  %v533_v12 = vmax.f32 %v501_v53, 0.0 }
  0x7a   : > { %v3059_v57 = vld [vmem:[#allocation2 + $0x60] sm:$0xff]  ;;  %565 = vst.msk [vmem:[#allocation2 + $0x81] sm:$0xff] %vm555_vm8, %v531_v38  ;;  %v481_v13 = vmul.f32 %v2781_v55, %v3008_v52  ;;  %v482_v17 = vmul.f32 %v2782_v56, %v3008_v52  ;;  %v509_v27 = vadd.f32 %v3018_v3, %v474_v0  ;;  %v457_v40 = vmul.f32 %v2733_v2, %v3008_v52 }
  0x7b   : > { %v3062_v61 = vld [vmem:[#allocation2 + $0x68] sm:$0xff]  ;;  %v3064_v62 = vld [vmem:[#allocation2 + $0x70] sm:$0x3]  ;;  %v736_v63 = vrot.slane %v3059_v57, 1  ;;  %572 = vst.msk [vmem:[#allocation2 + $0xd9] sm:$0xff] %vm555_vm8, %v538_v45  ;;  %v540_v28 = vmax.f32 %v508_v1, 0.0  ;;  %v458_v46 = vmul.f32 %v2734_v8, %v3008_v52  ;;  %v2754_v55 = vunpack.c.h.bf16 %v2796_v34 }
  0x7c   : > { %v737_v4 = vrot.slane %v3062_v61, 1  ;;  %v739_v5 = vrot.slane %v3064_v62, 1  ;;  %v3073_v6 = vld [vmem:[#allocation2 + $0xc0] sm:$0xff]  ;;  %573 = vst.msk [vmem:[#allocation2 + $0xe1] sm:$0xff] %vm555_vm8, %v539_v48  ;;  %v541_v44 = vmax.f32 %v509_v27, 0.0  ;;  %v516_v45 = vadd.f32 %v3018_v3, %v481_v13 }
  0x7d   : > { %v3077_v9 = vld [vmem:[#allocation2 + $0xc8] sm:$0xff]  ;;  %v3079_v10 = vld [vmem:[#allocation2 + $0xd0] sm:$0x3]  ;;  %v756_v11 = vrot.slane %v3073_v6, 1  ;;  %580 = vst.msk [vmem:[#allocation2 + $0x139] sm:$0xff] %vm555_vm8, %v546_v49  ;;  %v517_v48 = vadd.f32 %v3018_v3, %v482_v17  ;;  %v2753_v49 = vunpack.c.l.bf16 %v2796_v34  ;;  %v492_v0 = vadd.f32 %v3018_v3, %v457_v40 }
  0x7e   : > { %v738_v18 = vsel %vm715_vm7, %v736_v63, %v737_v4  ;;  %v740_v19 = vsel %vm715_vm7, %v737_v4, %v739_v5  ;;  %v757_v20 = vrot.slane %v3077_v9, 1  ;;  %v759_v21 = vrot.slane %v3079_v10, 1  ;;  %v3089_v22 = vld [vmem:[#allocation2 + $0x120] sm:$0xff]  ;;  %581 = vst.msk [vmem:[#allocation2 + $0x141] sm:$0xff] %vm555_vm8, %v547_v58  ;;  %v2800_v34 = vld [vmem:[%s2885_s12 + $0x50] sm:$0xff]  }
  0x7f   : > { %4209 = vst [vmem:[#allocation5_spill] sm:$0xff] %v3089_v22  ;;  %v3092_v23 = vpack.c.bf16 %v740_v19, %v738_v18  ;;  %v3094_v24 = vld [vmem:[#allocation2 + $0x128] sm:$0xff]  ;;  %v3096_v25 = vld [vmem:[#allocation2 + $0x130] sm:$0x3]  ;;  %v776_v26 = vrot.slane %v3089_v22, 1  ;;  %v493_v8 = vadd.f32 %v3018_v3, %v458_v46  ;;  %v467_v17 = vmul.f32 %v2753_v49, %v3008_v52 }
  0x80   : > { %4210 = vst [vmem:[#allocation6_spill] sm:$0xff] %v3094_v24  ;;  %v758_v29 = vsel %vm715_vm7, %v756_v11, %v757_v20  ;;  %v760_v30 = vsel %vm715_vm7, %v757_v20, %v759_v21  ;;  %v777_v31 = vrot.slane %v3094_v24, 1  ;;  %v779_v32 = vrot.slane %v3096_v25, 1  ;;  %v3114_v37 = vld [vmem:[#allocation2 + $0x78] sm:$0xff] }
  0x81   : > { %4211 = vst [vmem:[#allocation7_spill] sm:$0xff] %v3096_v25  ;;  %2584 = vmatmul.msk.bf16.vlgmr.msra.gmra.mxu1 %vm555_vm8, %v3092_v23  ;;  %v3108_v33 = vpack.c.bf16 %v760_v30, %v758_v29  ;;  %v3116_v38 = vld [vmem:[#allocation2 + $0x80] sm:$0xff]  ;;  %v3118_v39 = vld [vmem:[#allocation2 + $0x88] sm:$0x3]  ;;  %v741_v50 = vrot.slane %v3114_v37, 1  ;;  %v549_v20 = vmax.f32 %v517_v48, 0.0  ;;  %v468_v21 = vmul.f32 %v2754_v55, %v3008_v52 }
  0x82   : > { %556 = vst.msk [vmem:[#allocation2 + $0x19] sm:$0xff] %vm555_vm8, %v522_v59  ;;  %v778_v35 = vsel %vm715_vm7, %v776_v26, %v777_v31  ;;  %v780_v36 = vsel %vm715_vm7, %v777_v31, %v779_v32  ;;  %v3126_v42 = vld [vmem:[#allocation2 + $0xd8] sm:$0xff]  ;;  %v742_v51 = vrot.slane %v3116_v38, 1  ;;  %v744_v53 = vrot.slane %v3118_v39, 1 }
  0x83   : > { %557 = vst.msk [vmem:[#allocation2 + $0x21] sm:$0xff] %vm555_vm8, %v523_v60  ;;  %2588 = vmatmul.msk.bf16.vlgmr.msra.gmra.mxu2 %vm555_vm8, %v3108_v33  ;;  %v3124_v41 = vpack.c.bf16 %v780_v36, %v778_v35  ;;  %v3128_v43 = vld [vmem:[#allocation2 + $0xe0] sm:$0xff]  ;;  %v3133_v47 = vld [vmem:[#allocation2 + $0xe8] sm:$0x3]  ;;  %v761_v56 = vrot.slane %v3126_v42, 1  ;;  %v524_v31 = vmax.f32 %v492_v0, 0.0  ;;  %v502_v40 = vadd.f32 %v3018_v3, %v467_v17 }
  0x84   : > { %4212 = vst [vmem:[#allocation8_spill] sm:$0xff] %v3108_v33  ;;  %v3141_v54 = vld [vmem:[#allocation2 + $0x138] sm:$0xff]  ;;  %v762_v58 = vrot.slane %v3128_v43, 1  ;;  %v764_v1 = vrot.slane %v3133_v47, 1  ;;  %v743_v26 = vsel %vm715_vm7, %v741_v50, %v742_v51  ;;  %v745_v27 = vsel %vm715_vm7, %v742_v51, %v744_v53  ;;  %v2792_v50 = vld [vmem:[%s2885_s12 + $0x10] sm:$0xff]  }
  0x85   : > { %566 = vst.msk [vmem:[#allocation2 + $0x91] sm:$0xff] %vm555_vm8, %v532_v7  ;;  %2592 = vmatmul.msk.bf16.vlgmr.msra.gmra.mxu3 %vm555_vm8, %v3124_v41  ;;  %v3146_v59 = vld [vmem:[#allocation2 + $0x140] sm:$0xff]  ;;  %v3148_v60 = vld [vmem:[#allocation2 + $0x148] sm:$0x3]  ;;  %v548_v7 = vmax.f32 %v516_v45, 0.0  ;;  %v781_v11 = vrot.slane %v3141_v54, 1  ;;  %v3181_v46 = vpack.c.bf16 %v745_v27, %v743_v26  ;;  %v2769_v55 = vunpack.c.l.bf16 %v2800_v34 }
  0x86   : > { %567 = vst.msk [vmem:[#allocation2 + $0x99] sm:$0xff] %vm555_vm8, %v533_v12  ;;  %v782_v18 = vrot.slane %v3146_v59, 1  ;;  %v784_v19 = vrot.slane %v3148_v60, 1  ;;  %v525_v32 = vmax.f32 %v493_v8, 0.0  ;;  %v763_v35 = vsel %vm715_vm7, %v761_v56, %v762_v58  ;;  %v2804_v45 = vld [vmem:[%s2885_s12 + $0x70] sm:$0xff]  }
  0x87   : > { %4213 = vst [vmem:[#allocation9_spill] sm:$0xff] %v3124_v41  ;;  %v765_v36 = vsel %vm715_vm7, %v762_v58, %v764_v1  ;;  %v534_v51 = vmax.f32 %v502_v40, 0.0  ;;  %v2770_v56 = vunpack.c.h.bf16 %v2800_v34  ;;  %v2785_v1 = vunpack.c.l.bf16 %v2804_v45 }
  0x88   : > { %574 = vst.msk [vmem:[#allocation2 + $0xf1] sm:$0xff] %vm555_vm8, %v540_v28  ;;  %v783_v48 = vsel %vm715_vm7, %v781_v11, %v782_v18  ;;  %v785_v49 = vsel %vm715_vm7, %v782_v18, %v784_v19  ;;  %v3190_v58 = vpack.c.bf16 %v765_v36, %v763_v35  ;;  %v475_v11 = vmul.f32 %v2769_v55, %v3008_v52 }
  0x89   : > { %4214 = vst [vmem:[#allocation10_spill] sm:$0xff] %v3141_v54  ;;  %v3150_v63 = vld [vmem:[#allocation2 + $0x18] sm:$0xff]  ;;  %v3203_v17 = vpack.c.bf16 %v785_v49, %v783_v48  ;;  %v483_v18 = vmul.f32 %v2785_v1, %v3008_v52 }
  0x8a   : > { %575 = vst.msk [vmem:[#allocation2 + $0xf9] sm:$0xff] %vm555_vm8, %v541_v44  ;;  %v3154_v2 = vld [vmem:[#allocation2 + $0x20] sm:$0xff]  ;;  %v3156_v4 = vld [vmem:[#allocation2 + $0x28] sm:$0x3]  ;;  %v721_v5 = vrot.slane %v3150_v63, 1  ;;  %v503_v44 = vadd.f32 %v3018_v3, %v468_v21  ;;  %v510_v26 = vadd.f32 %v3018_v3, %v475_v11 }
  0x8b   : > { %4215 = vst [vmem:[#allocation11_spill] sm:$0xff] %v3146_v59  ;;  %v722_v12 = vrot.slane %v3154_v2, 1  ;;  %v724_v13 = vrot.slane %v3156_v4, 1  ;;  %v647_v59 = vld [vmem:[%s4153_s5 + $0xa] sm:$0x3] }
  0x8c   : > { %4216 = vst [vmem:[#allocation12_spill] sm:$0xff] %v3148_v60  ;;  %v535_v53 = vmax.f32 %v503_v44, 0.0  ;;  %v3192_v0 = vld [vmem:[#allocation2 + $0x90] sm:$0xff]  ;;  %v542_v40 = vmax.f32 %v510_v26, 0.0 }
  0x8d   : > { %582 = vst.msk [vmem:[#allocation2 + $0x151] sm:$0xff] %vm555_vm8, %v548_v7  ;;  %v723_v28 = vsel %vm715_vm7, %v721_v5, %v722_v12  ;;  %v725_v29 = vsel %vm715_vm7, %v722_v12, %v724_v13  ;;  %v2786_v5 = vunpack.c.h.bf16 %v2804_v45  ;;  %v3194_v7 = vld [vmem:[#allocation2 + $0x98] sm:$0xff]  ;;  %v3196_v8 = vld [vmem:[#allocation2 + $0xa0] sm:$0x3]  ;;  %v476_v12 = vmul.f32 %v2770_v56, %v3008_v52 }
  0x8e   : > { %v3172_v30 = vpack.c.bf16 %v725_v29, %v723_v28  ;;  %583 = vst.msk [vmem:[#allocation2 + $0x159] sm:$0xff] %vm555_vm8, %v549_v20  ;;  %v2737_v13 = vunpack.c.l.bf16 %v2792_v50  ;;  %v2738_v20 = vunpack.c.h.bf16 %v2792_v50  ;;  %v746_v21 = vrot.slane %v3192_v0, 1 }
  0x8f   : > { %4217 = vst [vmem:[#allocation13_spill] sm:$0xff] %v3181_v46  ;;  %v484_v19 = vmul.f32 %v2786_v5, %v3008_v52  ;;  %v511_v27 = vadd.f32 %v3018_v3, %v476_v12  ;;  %v747_v28 = vrot.slane %v3194_v7, 1  ;;  %v749_v29 = vrot.slane %v3196_v8, 1  ;;  %v3217_v34 = vld [vmem:[#allocation2 + $0xf0] sm:$0xff] }
  0x90   : > { %2581 = vmatmul.msk.bf16.gmra.mxu0 %vm555_vm8, %v3172_v30  ;;  %558 = vst.msk [vmem:[#allocation2 + $0x31] sm:$0xff] %vm555_vm8, %v524_v31  ;;  %v518_v31 = vadd.f32 %v3018_v3, %v483_v18  ;;  %v460_v48 = vmul.f32 %v2738_v20, %v3008_v52  ;;  %v766_v11 = vrot.slane %v3217_v34, 1 }
  0x91   : > { %559 = vst.msk [vmem:[#allocation2 + $0x39] sm:$0xff] %vm555_vm8, %v525_v32  ;;  %2585 = vmatmul.msk.bf16.gmra.mxu1 %vm555_vm8, %v3181_v46  ;;  %v459_v32 = vmul.f32 %v2737_v13, %v3008_v52  ;;  %v3219_v35 = vld [vmem:[#allocation2 + $0x100] sm:$0x3]  ;;  %v543_v44 = vmax.f32 %v511_v27, 0.0  ;;  %v519_v45 = vadd.f32 %v3018_v3, %v484_v19  ;;  %v3227_v49 = vld [vmem:[#allocation2 + $0xf8] sm:$0xff]  ;;  %v748_v60 = vsel %vm715_vm7, %v746_v21, %v747_v28 }
  0x92   : > { %4218 = vst [vmem:[#allocation14_spill] sm:$0xff] %v3190_v58  ;;  %v550_v55 = vmax.f32 %v518_v31, 0.0  ;;  %v495_v20 = vadd.f32 %v3018_v3, %v460_v48  ;;  %v767_v27 = vrot.slane %v3227_v49, 1  ;;  %v769_v31 = vrot.slane %v3219_v35, 1 }
  0x93   : > { %568 = vst.msk [vmem:[#allocation2 + $0xa9] sm:$0xff] %vm555_vm8, %v534_v51  ;;  %2589 = vmatmul.msk.bf16.gmra.mxu2 %vm555_vm8, %v3190_v58  ;;  %v551_v5 = vmax.f32 %v519_v45, 0.0  ;;  %v494_v19 = vadd.f32 %v3018_v3, %v459_v32 }
  0x94   : > { %4219 = vst [vmem:[#allocation15_spill] sm:$0xff] %v3203_v17  ;;  %v3238_v12 = vld [vmem:[#allocation2 + $0x150] sm:$0xff]  ;;  %v770_v21 = vsel %vm715_vm7, %v767_v27, %v769_v31 }
  0x95   : > { %569 = vst.msk [vmem:[#allocation2 + $0xb1] sm:$0xff] %vm555_vm8, %v535_v53  ;;  %2593 = vmatmul.msk.bf16.gmra.mxu3 %vm555_vm8, %v3203_v17  ;;  %v3240_v13 = vld [vmem:[#allocation2 + $0x158] sm:$0xff]  ;;  %v3242_v18 = vld [vmem:[#allocation2 + $0x160] sm:$0x3]  ;;  %v526_v48 = vmax.f32 %v494_v19, 0.0  ;;  %v786_v26 = vrot.slane %v3238_v12, 1 }
  0x96   : > { %576 = vst.msk [vmem:[#allocation2 + $0x109] sm:$0xff] %vm555_vm8, %v542_v40  ;;  %v787_v3 = vrot.slane %v3240_v13, 1  ;;  %v789_v52 = vrot.slane %v3242_v18, 1  ;;  %v1129_v19 = vrot.slane %v2966_v16, 2 }
  0x97   : > { %v3221_v36 = vld [vmem:[#allocation2 + $0x30] sm:$0xff]  ;;  %4220 = vst [vmem:[#allocation16_spill] sm:$0xff] %v3238_v12  ;;  %v649_v12 = vld [vmem:[%s4153_s5 + $0xe] sm:$0x3] }
  0x98   : > { %v3229_v50 = vld [vmem:[#allocation2 + $0x38] sm:$0xff]  ;;  %v3231_v51 = vld [vmem:[#allocation2 + $0x40] sm:$0x3]  ;;  %v726_v53 = vrot.slane %v3221_v36, 1  ;;  %4221 = vst [vmem:[#allocation17_spill] sm:$0xff] %v3240_v13 }
  0x99   : > { %v727_v56 = vrot.slane %v3229_v50, 1  ;;  %v729_v1 = vrot.slane %v3231_v51, 1  ;;  %4222 = vst [vmem:[#allocation18_spill] sm:$0xff] %v3242_v18 }
  0x9a   : > { %577 = vst.msk [vmem:[#allocation2 + $0x111] sm:$0xff] %vm555_vm8, %v543_v44  ;;  %v750_v44 = vsel %vm715_vm7, %v747_v28, %v749_v29  ;;  %v788_v29 = vsel %vm715_vm7, %v786_v26, %v787_v3 }
  0x9b   : > { %v728_v40 = vsel %vm715_vm7, %v726_v53, %v727_v56  ;;  %v730_v45 = vsel %vm715_vm7, %v727_v56, %v729_v1  ;;  %584 = vst.msk [vmem:[#allocation2 + $0x169] sm:$0xff] %vm555_vm8, %v550_v55  ;;  %v527_v53 = vmax.f32 %v495_v20, 0.0  ;;  %v768_v55 = vsel %vm715_vm7, %v766_v11, %v767_v27 }
  0x9c   : > { %v3256_v32 = vpack.c.bf16 %v730_v45, %v728_v40  ;;  %585 = vst.msk [vmem:[#allocation2 + $0x171] sm:$0xff] %vm555_vm8, %v551_v5  ;;  %v3266_v28 = vpack.c.bf16 %v750_v44, %v748_v60  ;;  %v790_v56 = vsel %vm715_vm7, %v787_v3, %v789_v52  ;;  %v3272_v1 = vpack.c.bf16 %v770_v21, %v768_v55  ;;  %v3274_v5 = vld [vmem:[#allocation2 + $0xa8] sm:$0xff]  ;;  %v3277_v11 = vld [vmem:[#allocation2 + $0xb0] sm:$0xff]  ;;  %v3279_v20 = vld [vmem:[#allocation2 + $0xb8] sm:$0x3] }
  0x9d   : > { %560 = vst.msk [vmem:[#allocation2 + $0x49] sm:$0xff] %vm555_vm8, %v526_v48  ;;  %v1126_v60 = vrot.slane %v2962_v14, 2  ;;  %v1127_v27 = vrot.slane %v2964_v15, 2  ;;  %v3285_v26 = vpack.c.bf16 %v790_v56, %v788_v29  ;;  %v751_v52 = vrot.slane %v3274_v5, 1 }
  0x9e   : > { %561 = vst.msk [vmem:[#allocation2 + $0x51] sm:$0xff] %vm555_vm8, %v527_v53  ;;  %v752_v16 = vrot.slane %v3277_v11, 1  ;;  %v754_v31 = vrot.slane %v3279_v20, 1  ;;  %v3300_v53 = vld [vmem:[#allocation2 + $0x108] sm:$0xff] }
  0x9f   : > { %4223 = vst [vmem:[#allocation19_spill] sm:$0xff] %v3266_v28  ;;  %v1128_v48 = vsel %vm1125_vm9, %v1126_v60, %v1127_v27  ;;  %v1130_v18 = vsel %vm1125_vm9, %v1127_v27, %v1129_v19  ;;  %v648_v60 = vld [vmem:[%s4153_s5 + $0xc] sm:$0x3] }
  0xa0   : > { %2582 = vmatmul.msk.bf16.gmra.mxu0 %vm555_vm8, %v3256_v32  ;;  %4224 = vst [vmem:[#allocation20_spill] sm:$0xff] %v3285_v26  ;;  %v1238_v13 = vpack.c.bf16 %v1130_v18, %v1128_v48  ;;  %v1832_v27 = vsel %vm892_vm3, %v648_v60, 0  ;;  %v1970_v18 = vsel %vm892_vm3, %v649_v12, 0  ;;  %v650_v48 = vld [vmem:[%s4153_s5 + $0x10] sm:$0x3]  ;;  %v753_v24 = vsel %vm715_vm7, %v751_v52, %v752_v16 }
  0xa1   : > { %2586 = vmatmul.msk.bf16.gmra.mxu1 %vm555_vm8, %v3266_v28  ;;  %4225 = vst [vmem:[#allocation21_spill] sm:$0xff] %v3300_v53  ;;  %v3302_v55 = vld [vmem:[#allocation2 + $0x110] sm:$0xff]  ;;  %v3304_v21 = vld [vmem:[#allocation2 + $0x118] sm:$0x3]  ;;  %1841 = vmatpush.bf16.msra.mxu2 %v1832_v27  ;;  %v755_v41 = vsel %vm715_vm7, %v752_v16, %v754_v31  ;;  %v1131_v31 = vrot.slane %v3150_v63, 2 }
  0xa2   : > { %4226 = vst [vmem:[#allocation22_spill] sm:$0xff] %v3302_v55  ;;  %1979 = vmatpush.bf16.msra.mxu3 %v1970_v18  ;;  %v772_v12 = vrot.slane %v3302_v55, 1  ;;  %v774_v60 = vrot.slane %v3304_v21, 1 }
  0xa3   : > { %2590 = vmatmul.msk.bf16.gmra.mxu2 %vm555_vm8, %v3272_v1  ;;  %v3329_v17 = vld [vmem:[#allocation2 + $0x170] sm:$0xff]  ;;  %v3331_v25 = vld [vmem:[#allocation2 + $0x178] sm:$0x3] }
  0xa4   : > { %v3288_v3 = vld [vmem:[#allocation2 + $0x48] sm:$0xff]  ;;  %v794_v18 = vrot.slane %v3331_v25, 1  ;;  %v775_v55 = vsel %vm715_vm7, %v772_v12, %v774_v60  ;;  %v4230_v60 = vpack.c.bf16 %v2964_v15, %v2962_v14 }
  0xa5   : > { %v3294_v40 = vld [vmem:[#allocation2 + $0x50] sm:$0xff]  ;;  %v3296_v45 = vld [vmem:[#allocation2 + $0x58] sm:$0x3]  ;;  %v731_v44 = vrot.slane %v3288_v3, 1  ;;  %2594 = vmatmul.msk.bf16.gmra.mxu3 %vm555_vm8, %v3285_v26  ;;  %v3327_v26 = vld [vmem:[#allocation2 + $0x168] sm:$0xff]  ;;  %v1141_v14 = vrot.slane %v3288_v3, 2 }
  0xa6   : > { %v732_v29 = vrot.slane %v3294_v40, 1  ;;  %v734_v56 = vrot.slane %v3296_v45, 1  ;;  %v791_v27 = vrot.slane %v3327_v26, 1  ;;  %v1142_v15 = vrot.slane %v3294_v40, 2 }
  0xa8   : > { %v733_v54 = vsel %vm715_vm7, %v731_v44, %v732_v29  ;;  %v735_v19 = vsel %vm715_vm7, %v732_v29, %v734_v56  ;;  %v1704_v44 = vsel %vm892_vm3, %v647_v59, 0  ;;  %v2105_v29 = vsel %vm892_vm3, %v650_v48, 0 }
  0xa9   : > { %v771_v56 = vrot.slane %v3300_v53, 1  ;;  %1713 = vmatpush.bf16.msra.mxu1 %v1704_v44  ;;  %2114 = vmatpush.bf16.msra.mxu0 %v2105_v29  ;;  %v3339_v22 = vpack.c.bf16 %v735_v19, %v733_v54  ;;  %v792_v59 = vrot.slane %v3329_v17, 1  ;;  %v3347_v53 = vpack.c.bf16 %v755_v41, %v753_v24 }
  0xaa   : > { %v1132_v19 = vrot.slane %v3154_v2, 2  ;;  %v1134_v44 = vrot.slane %v3156_v4, 2  ;;  %v1136_v4 = vrot.slane %v3221_v36, 2 }
  0xab   : > { %v773_v48 = vsel %vm715_vm7, %v771_v56, %v772_v12  ;;  %4227 = vst [vmem:[#allocation23_spill] sm:$0xff] %v3347_v53  ;;  %v793_v54 = vsel %vm715_vm7, %v791_v27, %v792_v59  ;;  %v795_v52 = vsel %vm715_vm7, %v792_v59, %v794_v18  ;;  %v1137_v56 = vrot.slane %v3229_v50, 2 }
  0xac   : > { %v3353_v16 = vpack.c.bf16 %v775_v55, %v773_v48  ;;  %v3360_v24 = vpack.c.bf16 %v795_v52, %v793_v54  ;;  %v1133_v41 = vsel %vm1125_vm9, %v1131_v31, %v1132_v19  ;;  %v1135_v29 = vsel %vm1125_vm9, %v1132_v19, %v1134_v44 }
  0xad   : > { %v3366_v55 = vpack.c.bf16 %v1135_v29, %v1133_v41  ;;  %v1139_v12 = vrot.slane %v3231_v51, 2  ;;  %v652_v27 = vpack.c.bf16 %v3154_v2, %v3150_v63  ;;  %v1138_v59 = vsel %vm1125_vm9, %v1136_v4, %v1137_v56 }
  0xae   : > { %4228 = vst [vmem:[#allocation24_spill] sm:$0xff] %v3353_v16  ;;  %v1144_v51 = vrot.slane %v3296_v45, 2  ;;  %v3395_v63 = vpack.c.bf16 %v3229_v50, %v3221_v36  ;;  %v1143_v2 = vsel %vm1125_vm9, %v1141_v14, %v1142_v15  ;;  %v3411_v36 = vpack.c.bf16 %v3294_v40, %v3288_v3 }
  0xaf   : > { %4229 = vst [vmem:[#allocation25_spill] sm:$0xff] %v3360_v24  ;;  %v1140_v18 = vsel %vm1125_vm9, %v1137_v56, %v1139_v12  ;;  %v3423_v50 = vpack.c.bf16 %v3062_v61, %v3059_v57  ;;  %v1146_v40 = vrot.slane %v3059_v57, 2  ;;  %v1147_v45 = vrot.slane %v3062_v61, 2 }
  0xb0   : > { %2583 = vmatmul.msk.bf16.gmra.mxu0 %vm555_vm8, %v3339_v22  ;;  %v1149_v54 = vrot.slane %v3064_v62, 2  ;;  %v3448_v57 = vpack.c.bf16 %v3116_v38, %v3114_v37  ;;  %v1151_v4 = vrot.slane %v3114_v37, 2  ;;  %v1152_v56 = vrot.slane %v3116_v38, 2 }
  0xb1   : > { %2587 = vmatmul.msk.bf16.gmra.mxu1 %vm555_vm8, %v3347_v53  ;;  %v1148_v52 = vsel %vm1125_vm9, %v1146_v40, %v1147_v45  ;;  %v1154_v12 = vrot.slane %v3118_v39, 2  ;;  %v3481_v38 = vpack.c.bf16 %v3194_v7, %v3192_v0  ;;  %v1156_v40 = vrot.slane %v3192_v0, 2 }
  0xb2   : > { %v1150_v31 = vsel %vm1125_vm9, %v1147_v45, %v1149_v54  ;;  %v1157_v45 = vrot.slane %v3194_v7, 2  ;;  %v1159_v54 = vrot.slane %v3196_v8, 2  ;;  %v3516_v7 = vpack.c.bf16 %v3277_v11, %v3274_v5 }
  0xb3   : > { %2591 = vmatmul.msk.bf16.gmra.mxu2 %vm555_vm8, %v3353_v16  ;;  %v3440_v44 = vpack.c.bf16 %v1150_v31, %v1148_v52  ;;  %4233 = vst [vmem:[#allocation28_spill] sm:$0xff] %v3481_v38 }
  0xb4   : > { %v1158_v31 = vsel %vm1125_vm9, %v1156_v40, %v1157_v45  ;;  %4237 = vst [vmem:[#allocation32_spill] sm:$0xff] %v3516_v7 }
  0xb5   : > { %2595 = vmatmul.msk.bf16.gmra.mxu3 %vm555_vm8, %v3360_v24 }
  0xc0   : > { %2644 = vmatmul.msk.bf16.vlgmr.msrb.gmra.mxu0 %vm555_vm8, %v3172_v30  ;;  %v3384_v30 = vpack.c.bf16 %v1140_v18, %v1138_v59  ;;  %v1155_v59 = vsel %vm1125_vm9, %v1152_v56, %v1154_v12 }
  0xc1   : > { %2596 = vmatmul.msk.bf16.vlgmr.msrb.gmra.mxu1 %vm555_vm8, %v4230_v60 }
  0xc3   : > { %2612 = vmatmul.msk.bf16.vlgmr.msrb.gmra.mxu2 %vm555_vm8, %v1238_v13  ;;  %v1145_v13 = vsel %vm1125_vm9, %v1142_v15, %v1144_v51 }
  0xc4   : > { %v3401_v48 = vpack.c.bf16 %v1145_v13, %v1143_v2 }
  0xc5   : > { %2628 = vmatmul.msk.bf16.vlgmr.msrb.gmra.mxu3 %vm555_vm8, %v652_v27 }
  0xd0   : > { %2645 = vmatmul.msk.bf16.gmra.mxu0 %vm555_vm8, %v3256_v32 }
  0xd1   : > { %2597 = vmatmul.msk.bf16.gmra.mxu1 %vm555_vm8, %v652_v27  ;;  %v3429_v3 = vpop.f32.mrf.mxu0  ;;  %v1153_v27 = vsel %vm1125_vm9, %v1151_v4, %v1152_v56  ;;  %v1160_v4 = vsel %vm1125_vm9, %v1157_v45, %v1159_v54  ;;  %v1161_v54 = vrot.slane %v3274_v5, 2 }
  0xd2   : > { %v3473_v15 = vpack.c.bf16 %v1155_v59, %v1153_v27  ;;  %v3508_v27 = vpack.c.bf16 %v1160_v4, %v1158_v31  ;;  %v1162_v31 = vrot.slane %v3277_v11, 2  ;;  %v1164_v4 = vrot.slane %v3279_v20, 2 }
  0xd3   : > { %2613 = vmatmul.msk.bf16.gmra.mxu2 %vm555_vm8, %v3366_v55  ;;  %v3551_v11 = vpack.c.bf16 %v3077_v9, %v3073_v6 }
  0xd4   : > { %4235 = vst [vmem:[#allocation30_spill] sm:$0xff] %v3508_v27 }
  0xd5   : > { %2629 = vmatmul.msk.bf16.gmra.mxu3 %vm555_vm8, %v3395_v63  ;;  %4241 = vst [vmem:[#allocation36_spill] sm:$0xff] %v3551_v11 }
  0xd9   : > { %v3442_v41 = vpop.f32.mrf.mxu0 }
  0xe0   : > { %2646 = vmatmul.msk.bf16.gmra.mxu0 %vm555_vm8, %v3339_v22 }
  0xe1   : > { %2598 = vmatmul.msk.bf16.gmra.mxu1 %vm555_vm8, %v3395_v63 }
  0xe3   : > { %2614 = vmatmul.msk.bf16.gmra.mxu2 %vm555_vm8, %v3384_v30 }
  0xe5   : > { %2630 = vmatmul.msk.bf16.gmra.mxu3 %vm555_vm8, %v3411_v36 }
  0xf0   : > { %2647 = vmatmul.msk.bf16.gmra.mxu0 %vm555_vm8, %v3092_v23 }
  0xf1   : > { %2599 = vmatmul.msk.bf16.gmra.mxu1 %vm555_vm8, %v3411_v36 }
  0xf3   : > { %2615 = vmatmul.msk.bf16.gmra.mxu2 %vm555_vm8, %v3401_v48 }
  0xf5   : > { %2631 = vmatmul.msk.bf16.gmra.mxu3 %vm555_vm8, %v3423_v50 }
  0xfe   : > { %v3438_v19 = vpop.f32.mrf.mxu1 }
 0x100   : > { %2648 = vmatmul.msk.bf16.gmra.mxu0 %vm555_vm8, %v3181_v46 }
 0x101   : > { %2600 = vmatmul.msk.bf16.gmra.mxu1 %vm555_vm8, %v3423_v50 }
 0x103   : > { %2616 = vmatmul.msk.bf16.gmra.mxu2 %vm555_vm8, %v3440_v44 }
 0x105   : > { %2632 = vmatmul.msk.bf16.gmra.mxu3 %vm555_vm8, %v3448_v57 }
 0x106   : > { %v3454_v61 = vpop.f32.mrf.mxu2  ;;  %v3456_v62 = vpop.f32.mrf.mxu1 }
 0x108   : > { %v3458_v29 = vpop.f32.mrf.mxu3 }
 0x109   : > { %4231 = vst [vmem:[#allocation26_spill] sm:$0xff] %v3458_v29 }
 0x10d   : > { %v3463_v60 = vpop.f32.mrf.mxu0 }
 0x10e   : > { %v3469_v18 = vpop.f32.mrf.mxu2  ;;  %v3471_v14 = vpop.f32.mrf.mxu1 }
 0x110   : > { %2649 = vmatmul.msk.bf16.gmra.mxu0 %vm555_vm8, %v3266_v28  ;;  %v3475_v37 = vpop.f32.mrf.mxu3 }
 0x111   : > { %4232 = vst [vmem:[#allocation27_spill] sm:$0xff] %v3475_v37  ;;  %2601 = vmatmul.msk.bf16.gmra.mxu1 %vm555_vm8, %v3448_v57 }
 0x113   : > { %2617 = vmatmul.msk.bf16.gmra.mxu2 %vm555_vm8, %v3473_v15 }
 0x115   : > { %v3483_v39 = vpop.f32.mrf.mxu0  ;;  %2633 = vmatmul.msk.bf16.gmra.mxu3 %vm555_vm8, %v3481_v38 }
 0x116   : > { %v3489_v51 = vpop.f32.mrf.mxu2  ;;  %v3491_v2 = vpop.f32.mrf.mxu1 }
 0x118   : > { %v3493_v13 = vpop.f32.mrf.mxu3 }
 0x119   : > { %4234 = vst [vmem:[#allocation29_spill] sm:$0xff] %v3493_v13  ;;  %v1165_v13 = vsel %vm1125_vm9, %v1162_v31, %v1164_v4  ;;  %v1166_v4 = vrot.slane %v3073_v6, 2  ;;  %v3582_v6 = vpack.c.bf16 %v3128_v43, %v3126_v42 }
 0x11d   : > { %v3498_v52 = vpop.f32.mrf.mxu0 }
 0x11e   : > { %v3504_v56 = vpop.f32.mrf.mxu2  ;;  %v3506_v12 = vpop.f32.mrf.mxu1 }
 0x120   : > { %2650 = vmatmul.msk.bf16.gmra.mxu0 %vm555_vm8, %v3347_v53  ;;  %v3510_v0 = vpop.f32.mrf.mxu3  ;;  %v1163_v53 = vsel %vm1125_vm9, %v1161_v54, %v1162_v31 }
 0x121   : > { %4236 = vst [vmem:[#allocation31_spill] sm:$0xff] %v3510_v0  ;;  %2602 = vmatmul.msk.bf16.gmra.mxu1 %vm555_vm8, %v3481_v38 }
 0x123   : > { %2618 = vmatmul.msk.bf16.gmra.mxu2 %vm555_vm8, %v3508_v27 }
 0x125   : > { %v3518_v8 = vpop.f32.mrf.mxu0  ;;  %2634 = vmatmul.msk.bf16.gmra.mxu3 %vm555_vm8, %v3516_v7 }
 0x126   : > { %v3524_v59 = vpop.f32.mrf.mxu2  ;;  %v3526_v40 = vpop.f32.mrf.mxu1 }
 0x128   : > { %v3528_v45 = vpop.f32.mrf.mxu3 }
 0x129   : > { %4238 = vst [vmem:[#allocation33_spill] sm:$0xff] %v3528_v45  ;;  %v3543_v45 = vpack.c.bf16 %v1165_v13, %v1163_v53  ;;  %v1169_v13 = vrot.slane %v3079_v10, 2 }
 0x12b   : > { %4239 = vst [vmem:[#allocation34_spill] sm:$0xff] %v3543_v45 }
 0x12d   : > { %v3533_v0 = vpop.f32.mrf.mxu0 }
 0x12e   : > { %v3539_v37 = vpop.f32.mrf.mxu2  ;;  %v3541_v28 = vpop.f32.mrf.mxu1 }
 0x130   : > { %2651 = vmatmul.msk.bf16.gmra.mxu0 %vm555_vm8, %v3108_v33  ;;  %v3545_v5 = vpop.f32.mrf.mxu3 }
 0x131   : > { %4240 = vst [vmem:[#allocation35_spill] sm:$0xff] %v3545_v5  ;;  %2603 = vmatmul.msk.bf16.gmra.mxu1 %vm555_vm8, %v3516_v7  ;;  %v1167_v5 = vrot.slane %v3077_v9, 2 }
 0x133   : > { %2619 = vmatmul.msk.bf16.gmra.mxu2 %vm555_vm8, %v3543_v45  ;;  %v1168_v7 = vsel %vm1125_vm9, %v1166_v4, %v1167_v5  ;;  %v1170_v45 = vsel %vm1125_vm9, %v1167_v5, %v1169_v13 }
 0x134   : > { %v3574_v27 = vpack.c.bf16 %v1170_v45, %v1168_v7 }
 0x135   : > { %v3553_v20 = vpop.f32.mrf.mxu0  ;;  %2635 = vmatmul.msk.bf16.gmra.mxu3 %vm555_vm8, %v3551_v11 }
 0x136   : > { %v3559_v54 = vpop.f32.mrf.mxu2  ;;  %v3561_v53 = vpop.f32.mrf.mxu1  ;;  %4244 = vst [vmem:[#allocation39_spill] sm:$0xff] %v3574_v27 }
 0x138   : > { %v3564_v31 = vpop.f32.mrf.mxu3 }
 0x139   : > { %4242 = vst [vmem:[#allocation37_spill] sm:$0xff] %v3564_v31  ;;  %v1171_v31 = vrot.slane %v3126_v42, 2 }
 0x13d   : > { %v1580_v33 = vpop.f32.mrf.mxu0 }
 0x13e   : > { %v3572_v29 = vpop.f32.mrf.mxu2  ;;  %v1045_v38 = vpop.f32.mrf.mxu1 }
 0x13f   : > { %4243 = vst [vmem:[#allocation38_spill] sm:$0xff] %v3572_v29  ;;  %v1046_v5 = vadd.f32 %v1045_v38, %v3429_v3 }
 0x140   : > { %2652 = vmatmul.msk.bf16.gmra.mxu0 %vm555_vm8, %v3190_v58  ;;  %v3576_v10 = vpop.f32.mrf.mxu3 }
 0x141   : > { %4245 = vst [vmem:[#allocation40_spill] sm:$0xff] %v3576_v10  ;;  %2604 = vmatmul.msk.bf16.gmra.mxu1 %vm555_vm8, %v3551_v11  ;;  %v1174_v10 = vrot.slane %v3133_v47, 2  ;;  %v1172_v11 = vrot.slane %v3128_v43, 2 }
 0x143   : > { %2620 = vmatmul.msk.bf16.gmra.mxu2 %vm555_vm8, %v3574_v27  ;;  %v1173_v3 = vsel %vm1125_vm9, %v1171_v31, %v1172_v11  ;;  %v1175_v38 = vsel %vm1125_vm9, %v1172_v11, %v1174_v10 }
 0x145   : > { %v1582_v9 = vpop.f32.mrf.mxu0  ;;  %2636 = vmatmul.msk.bf16.gmra.mxu3 %vm555_vm8, %v3582_v6 }
 0x146   : > { %v1314_v7 = vpop.f32.mrf.mxu2  ;;  %v1047_v45 = vpop.f32.mrf.mxu1 }
 0x147   : > { %v1394_v13 = vadd.f32 %v1314_v7, %v1046_v5  ;;  %v1048_v4 = vadd.f32 %v1047_v45, %v3442_v41  ;;  %v3600_v45 = vpack.c.bf16 %v1175_v38, %v1173_v3  ;;  %v1176_v3 = vrot.slane %v3217_v34, 2 }
 0x148   : > { %v1442_v58 = vpop.f32.mrf.mxu3  ;;  %v1177_v38 = vrot.slane %v3227_v49, 2 }
 0x149   : > { %v1522_v29 = vadd.f32 %v1442_v58, %v1394_v13  ;;  %v1179_v13 = vrot.slane %v3219_v35, 2 }
 0x14b   : > { %v3593_v27 = vadd.f32 %v1580_v33, %v1522_v29  ;;  %v3606_v33 = vpack.c.bf16 %v3227_v49, %v3217_v34 }
 0x14d   : > { %v1585_v46 = vpop.f32.mrf.mxu0 }
 0x14e   : > { %v1316_v5 = vpop.f32.mrf.mxu2  ;;  %v1050_v41 = vpop.f32.mrf.mxu1 }
 0x14f   : > { %v1395_v7 = vadd.f32 %v1316_v5, %v1048_v4  ;;  %v1051_v47 = vadd.f32 %v1050_v41, %v3463_v60 }
 0x150   : > { %2653 = vmatmul.msk.bf16.gmra.mxu0 %vm555_vm8, %v3272_v1  ;;  %v1444_v42 = vpop.f32.mrf.mxu3 }
 0x151   : > { %v1523_v43 = vadd.f32 %v1444_v42, %v1395_v7  ;;  %2605 = vmatmul.msk.bf16.gmra.mxu1 %vm555_vm8, %v3582_v6  ;;  %v1180_v42 = vsel %vm1125_vm9, %v1177_v38, %v1179_v13 }
 0x153   : > { %2621 = vmatmul.msk.bf16.gmra.mxu2 %vm555_vm8, %v3600_v45  ;;  %v3610_v29 = vadd.f32 %v1582_v9, %v1523_v43  ;;  %v1178_v9 = vsel %vm1125_vm9, %v1176_v3, %v1177_v38 }
 0x155   : > { %v1587_v58 = vpop.f32.mrf.mxu0  ;;  %2637 = vmatmul.msk.bf16.gmra.mxu3 %vm555_vm8, %v3606_v33 }
 0x156   : > { %v1319_v60 = vpop.f32.mrf.mxu2  ;;  %v1052_v11 = vpop.f32.mrf.mxu1 }
 0x157   : > { %v1396_v31 = vadd.f32 %v1319_v60, %v1051_v47  ;;  %v1053_v10 = vadd.f32 %v1052_v11, %v3483_v39  ;;  %v3625_v60 = vpack.c.bf16 %v1180_v42, %v1178_v9  ;;  %v4247_v11 = vld [vmem:[#allocation22_spill] sm:$0xff] }
 0x158   : > { %v1447_v4 = vpop.f32.mrf.mxu3 }
 0x159   : > { %v1524_v5 = vadd.f32 %v1447_v4, %v1396_v31 }
 0x15b   : > { %v3618_v7 = vadd.f32 %v1585_v46, %v1524_v5  ;;  %v4246_v46 = vld [vmem:[#allocation21_spill] sm:$0xff]  ;;  %v1184_v5 = vrot.slane %v3304_v21, 2 }
 0x15c   : > { %v3631_v31 = vpack.c.bf16 %v4247_v11, %v4246_v46  ;;  %v1181_v42 = vrot.slane %v4246_v46, 2 }
 0x15d   : > { %v1590_v41 = vpop.f32.mrf.mxu0 }
 0x15e   : > { %v1321_v47 = vpop.f32.mrf.mxu2  ;;  %v1055_v39 = vpop.f32.mrf.mxu1 }
 0x15f   : > { %v1397_v43 = vadd.f32 %v1321_v47, %v1053_v10  ;;  %v1056_v35 = vadd.f32 %v1055_v39, %v3498_v52  ;;  %v1182_v47 = vrot.slane %v4247_v11, 2 }
 0x160   : > { %2654 = vmatmul.msk.bf16.gmra.mxu0 %vm555_vm8, %v3353_v16  ;;  %v1449_v34 = vpop.f32.mrf.mxu3 }
 0x161   : > { %v1525_v49 = vadd.f32 %v1449_v34, %v1397_v43  ;;  %2606 = vmatmul.msk.bf16.gmra.mxu1 %vm555_vm8, %v3606_v33 }
 0x163   : > { %2622 = vmatmul.msk.bf16.gmra.mxu2 %vm555_vm8, %v3625_v60  ;;  %v3635_v4 = vadd.f32 %v1587_v58, %v1525_v49  ;;  %v1183_v58 = vsel %vm1125_vm9, %v1181_v42, %v1182_v47  ;;  %v1185_v49 = vsel %vm1125_vm9, %v1182_v47, %v1184_v5 }
 0x165   : > { %v1592_v13 = vpop.f32.mrf.mxu0  ;;  %4248 = vst [vmem:[#allocation21_spill] sm:$0xff] %v3635_v4  ;;  %2638 = vmatmul.msk.bf16.gmra.mxu3 %vm555_vm8, %v3631_v31  ;;  %v4250_v4 = vld [vmem:[#allocation9_spill] sm:$0xff] }
 0x166   : > { %v1324_v52 = vpop.f32.mrf.mxu2  ;;  %v1057_v10 = vpop.f32.mrf.mxu1 }
 0x167   : > { %v1398_v3 = vadd.f32 %v1324_v52, %v1056_v35  ;;  %v1058_v38 = vadd.f32 %v1057_v10, %v3518_v8  ;;  %v3650_v10 = vpack.c.bf16 %v1185_v49, %v1183_v58  ;;  %v4255_v58 = vld [vmem:[#allocation7_spill] sm:$0xff] }
 0x168   : > { %v1452_v9 = vpop.f32.mrf.mxu3  ;;  %v1189_v49 = vrot.slane %v4255_v58, 2 }
 0x169   : > { %v1526_v39 = vadd.f32 %v1452_v9, %v1398_v3  ;;  %v4252_v3 = vld [vmem:[#allocation6_spill] sm:$0xff] }
 0x16b   : > { %v3643_v34 = vadd.f32 %v1590_v41, %v1526_v39  ;;  %v4251_v41 = vld [vmem:[#allocation5_spill] sm:$0xff] }
 0x16c   : > { %v3656_v9 = vpack.c.bf16 %v4252_v3, %v4251_v41 }
 0x16d   : > { %v1595_v43 = vpop.f32.mrf.mxu0  ;;  %4249 = vst [vmem:[#allocation22_spill] sm:$0xff] %v3643_v34  ;;  %v4257_v34 = vld [vmem:[#allocation15_spill] sm:$0xff] }
 0x16e   : > { %v1326_v35 = vpop.f32.mrf.mxu2  ;;  %v1060_v8 = vpop.f32.mrf.mxu1  ;;  %4253 = vst [vmem:[#allocation5_spill] sm:$0xff] %v3656_v9 }
 0x16f   : > { %v1399_v52 = vadd.f32 %v1326_v35, %v1058_v38  ;;  %v1061_v21 = vadd.f32 %v1060_v8, %v3533_v0  ;;  %v1186_v8 = vrot.slane %v4251_v41, 2 }
 0x170   : > { %2655 = vmatmul.msk.bf16.gmra.mxu0 %vm555_vm8, %v4250_v4  ;;  %v1454_v46 = vpop.f32.mrf.mxu3 }
 0x171   : > { %v1527_v11 = vadd.f32 %v1454_v46, %v1399_v52  ;;  %2607 = vmatmul.msk.bf16.gmra.mxu1 %vm555_vm8, %v3631_v31  ;;  %v1187_v52 = vrot.slane %v4252_v3, 2  ;;  %v4259_v3 = vld [vmem:[#allocation10_spill] sm:$0xff] }
 0x173   : > { %2623 = vmatmul.msk.bf16.gmra.mxu2 %vm555_vm8, %v3650_v10  ;;  %v3660_v42 = vadd.f32 %v1592_v13, %v1527_v11  ;;  %v1188_v11 = vsel %vm1125_vm9, %v1186_v8, %v1187_v52 }
 0x175   : > { %v1597_v5 = vpop.f32.mrf.mxu0  ;;  %4254 = vst [vmem:[#allocation6_spill] sm:$0xff] %v3660_v42  ;;  %2639 = vmatmul.msk.bf16.gmra.mxu3 %vm555_vm8, %v3656_v9  ;;  %v1190_v42 = vsel %vm1125_vm9, %v1187_v52, %v1189_v49 }
 0x176   : > { %v1329_v0 = vpop.f32.mrf.mxu2  ;;  %v1062_v38 = vpop.f32.mrf.mxu1 }
 0x177   : > { %v1400_v47 = vadd.f32 %v1329_v0, %v1061_v21  ;;  %v1063_v39 = vadd.f32 %v1062_v38, %v3553_v20  ;;  %v3674_v38 = vpack.c.bf16 %v1190_v42, %v1188_v11  ;;  %v4262_v42 = vld [vmem:[#allocation3_spill] sm:$0xff] }
 0x178   : > { %v1457_v35 = vpop.f32.mrf.mxu3 }
 0x179   : > { %v1528_v46 = vadd.f32 %v1457_v35, %v1400_v47  ;;  %4258 = vst [vmem:[#allocation41_spill] sm:$0xff] %v3674_v38  ;;  %v2805_v35 = vld [vmem:[%s2885_s12 + $0x78] sm:$0xff]  }
 0x17a   : > { %v2789_v49 = vunpack.c.l.bf16 %v2805_v35  ;;  %v2790_v52 = vunpack.c.h.bf16 %v2805_v35 }
 0x17b   : > { %v3668_v13 = vadd.f32 %v1595_v43, %v1528_v46  ;;  %v4260_v43 = vld [vmem:[#allocation11_spill] sm:$0xff] }
 0x17c   : > { %v3680_v47 = vpack.c.bf16 %v4260_v43, %v4259_v3  ;;  %v486_v11 = vmul.f32 %v2790_v52, %v4262_v42 }
 0x17d   : > { %v1600_v4 = vpop.f32.mrf.mxu0  ;;  %4256 = vst [vmem:[#allocation7_spill] sm:$0xff] %v3668_v13 }
 0x17e   : > { %v1331_v20 = vpop.f32.mrf.mxu2  ;;  %v1065_v21 = vpop.f32.mrf.mxu1 }
 0x17f   : > { %v1401_v0 = vadd.f32 %v1331_v20, %v1063_v39  ;;  %v485_v39 = vmul.f32 %v2789_v49, %v4262_v42  ;;  %v1066_v20 = vadd.f32 %v1065_v21, %v3438_v19  ;;  %v1192_v49 = vrot.slane %v4260_v43, 2 }
 0x180   : > { %2656 = vmatmul.msk.bf16.gmra.mxu0 %vm555_vm8, %v4257_v34  ;;  %v1459_v41 = vpop.f32.mrf.mxu3  ;;  %v4263_v34 = vld [vmem:[#allocation4_spill] sm:$0xff] }
 0x181   : > { %v1529_v58 = vadd.f32 %v1459_v41, %v1401_v0  ;;  %2608 = vmatmul.msk.bf16.gmra.mxu1 %vm555_vm8, %v3656_v9  ;;  %v520_v13 = vadd.f32 %v4263_v34, %v485_v39  ;;  %v521_v35 = vadd.f32 %v4263_v34, %v486_v11  ;;  %v4264_v9 = vld [vmem:[#allocation12_spill] sm:$0xff] }
 0x182   : > { %v1194_v16 = vrot.slane %v4264_v9, 2  ;;  %v4265_v11 = vld [vmem:[#allocation20_spill] sm:$0xff] }
 0x183   : > { %2624 = vmatmul.msk.bf16.gmra.mxu2 %vm555_vm8, %v3674_v38  ;;  %v3685_v46 = vadd.f32 %v1597_v5, %v1529_v58  ;;  %v1191_v58 = vrot.slane %v4259_v3, 2  ;;  %v552_v52 = vmax.f32 %v520_v13, 0.0  ;;  %v553_v42 = vmax.f32 %v521_v35, 0.0  ;;  %v4267_v35 = vld [vmem:[#allocation17_spill] sm:$0xff] }
 0x184   : > { %v1195_v9 = vsel %vm1125_vm9, %v1192_v49, %v1194_v16 }
 0x185   : > { %v1602_v8 = vpop.f32.mrf.mxu0  ;;  %4261 = vst [vmem:[#allocation10_spill] sm:$0xff] %v3685_v46  ;;  %2640 = vmatmul.msk.bf16.gmra.mxu3 %vm555_vm8, %v3680_v47  ;;  %v1193_v34 = vsel %vm1125_vm9, %v1191_v58, %v1192_v49 }
 0x186   : > { %v1334_v0 = vpop.f32.mrf.mxu2  ;;  %v1067_v41 = vpop.f32.mrf.mxu1  ;;  %586 = vst.msk [vmem:[#allocation2 + $0x181] sm:$0xff] %vm555_vm8, %v552_v52 }
 0x187   : > { %v1402_v38 = vadd.f32 %v1334_v0, %v1066_v20  ;;  %587 = vst.msk [vmem:[#allocation2 + $0x189] sm:$0xff] %vm555_vm8, %v553_v42  ;;  %v1068_v39 = vadd.f32 %v1067_v41, %v3456_v62  ;;  %v4269_v42 = vld [vmem:[#allocation18_spill] sm:$0xff] }
 0x188   : > { %v1462_v5 = vpop.f32.mrf.mxu3 }
 0x189   : > { %v1530_v19 = vadd.f32 %v1462_v5, %v1402_v38  ;;  %v3706_v38 = vpack.c.bf16 %v1195_v9, %v1193_v34 }
 0x18b   : > { %v3699_v46 = vadd.f32 %v1600_v4, %v1530_v19  ;;  %v4266_v4 = vld [vmem:[#allocation16_spill] sm:$0xff]  ;;  %v1199_v19 = vrot.slane %v4269_v42, 2 }
 0x18c   : > { %v3712_v5 = vpack.c.bf16 %v4267_v35, %v4266_v4  ;;  %v1196_v9 = vrot.slane %v4266_v4, 2 }
 0x18d   : > { %v1605_v21 = vpop.f32.mrf.mxu0  ;;  %v3733_v4 = vld [vmem:[#allocation2 + $0x180] sm:$0xff] }
 0x18e   : > { %v1336_v3 = vpop.f32.mrf.mxu2  ;;  %v1070_v13 = vpop.f32.mrf.mxu1 }
 0x18f   : > { %v1403_v43 = vadd.f32 %v1336_v3, %v1068_v39  ;;  %v1071_v41 = vadd.f32 %v1070_v13, %v3471_v14  ;;  %v1197_v39 = vrot.slane %v4267_v35, 2  ;;  %v3735_v35 = vld [vmem:[#allocation2 + $0x188] sm:$0xff] }
 0x190   : > { %2657 = vmatmul.msk.bf16.gmra.mxu0 %vm555_vm8, %v4265_v11  ;;  %v1464_v20 = vpop.f32.mrf.mxu3 }
 0x191   : > { %v1531_v0 = vadd.f32 %v1464_v20, %v1403_v43  ;;  %2609 = vmatmul.msk.bf16.gmra.mxu1 %vm555_vm8, %v3680_v47  ;;  %v1200_v14 = vsel %vm1125_vm9, %v1197_v39, %v1199_v19  ;;  %v1557_v19 = vrot.slane %v3733_v4, 1 }
 0x193   : > { %2625 = vmatmul.msk.bf16.gmra.mxu2 %vm555_vm8, %v3706_v38  ;;  %v3716_v62 = vadd.f32 %v1602_v8, %v1531_v0  ;;  %v1198_v8 = vsel %vm1125_vm9, %v1196_v9, %v1197_v39  ;;  %v1558_v9 = vrot.slane %v3735_v35, 1 }
 0x194   : > { %v3731_v42 = vpack.c.bf16 %v1200_v14, %v1198_v8 }
 0x195   : > { %v1607_v16 = vpop.f32.mrf.mxu0  ;;  %4268 = vst [vmem:[#allocation11_spill] sm:$0xff] %v3716_v62  ;;  %2641 = vmatmul.msk.bf16.gmra.mxu3 %vm555_vm8, %v3712_v5  ;;  %v1201_v62 = vrot.slane %v3327_v26, 2 }
 0x196   : > { %v1339_v58 = vpop.f32.mrf.mxu2  ;;  %v1072_v49 = vpop.f32.mrf.mxu1 }
 0x197   : > { %v1404_v52 = vadd.f32 %v1339_v58, %v1071_v41  ;;  %v1073_v13 = vadd.f32 %v1072_v49, %v3491_v2  ;;  %v3743_v2 = vpack.c.bf16 %v3329_v17, %v3327_v26 }
 0x198   : > { %v1467_v34 = vpop.f32.mrf.mxu3 }
 0x199   : > { %v1532_v3 = vadd.f32 %v1467_v34, %v1404_v52 }
 0x19b   : > { %v3724_v20 = vadd.f32 %v1605_v21, %v1532_v3  ;;  %v3737_v21 = vld [vmem:[#allocation2 + $0x190] sm:$0x3] }
 0x19c   : > { %v1560_v39 = vrot.slane %v3737_v21, 1 }
 0x19d   : > { %v1610_v43 = vpop.f32.mrf.mxu0  ;;  %4270 = vst [vmem:[#allocation3_spill] sm:$0xff] %v3724_v20 }
 0x19e   : > { %v1341_v0 = vpop.f32.mrf.mxu2  ;;  %v1075_v41 = vpop.f32.mrf.mxu1 }
 0x19f   : > { %v1405_v58 = vadd.f32 %v1341_v0, %v1073_v13  ;;  %v1076_v8 = vadd.f32 %v1075_v41, %v3506_v12  ;;  %v1559_v0 = vsel %vm715_vm7, %v1557_v19, %v1558_v9 }
 0x1a0   : > { %2658 = vmatmul.msk.bf16.gmra.mxu0 %vm555_vm8, %v3360_v24  ;;  %v1469_v52 = vpop.f32.mrf.mxu3  ;;  %v1204_v24 = vrot.slane %v3331_v25, 2 }
 0x1a1   : > { %v1533_v34 = vadd.f32 %v1469_v52, %v1405_v58  ;;  %2610 = vmatmul.msk.bf16.gmra.mxu1 %vm555_vm8, %v3712_v5  ;;  %v1561_v58 = vsel %vm715_vm7, %v1558_v9, %v1560_v39 }
 0x1a3   : > { %2626 = vmatmul.msk.bf16.gmra.mxu2 %vm555_vm8, %v3731_v42  ;;  %v3750_v3 = vadd.f32 %v1607_v16, %v1533_v34  ;;  %v1202_v16 = vrot.slane %v3329_v17, 2 }
 0x1a5   : > { %v1612_v49 = vpop.f32.mrf.mxu0  ;;  %4271 = vst [vmem:[#allocation4_spill] sm:$0xff] %v3750_v3  ;;  %2642 = vmatmul.msk.bf16.gmra.mxu3 %vm555_vm8, %v3743_v2  ;;  %v3760_v3 = vpack.c.bf16 %v1561_v58, %v1559_v0  ;;  %v1203_v11 = vsel %vm1125_vm9, %v1201_v62, %v1202_v16  ;;  %v1205_v19 = vsel %vm1125_vm9, %v1202_v16, %v1204_v24 }
 0x1a6   : > { %v1344_v14 = vpop.f32.mrf.mxu2  ;;  %v1077_v13 = vpop.f32.mrf.mxu1  ;;  %v3775_v62 = vpack.c.bf16 %v3735_v35, %v3733_v4 }
 0x1a7   : > { %v1406_v52 = vadd.f32 %v1344_v14, %v1076_v8  ;;  %v1078_v9 = vadd.f32 %v1077_v13, %v3526_v40  ;;  %v3769_v8 = vpack.c.bf16 %v1205_v19, %v1203_v11 }
 0x1a8   : > { %v1472_v20 = vpop.f32.mrf.mxu3 }
 0x1a9   : > { %v1534_v34 = vadd.f32 %v1472_v20, %v1406_v52 }
 0x1ab   : > { %v3762_v41 = vadd.f32 %v1610_v43, %v1534_v34 }
 0x1ad   : > { %v1615_v12 = vpop.f32.mrf.mxu0 }
 0x1ae   : > { %v1346_v25 = vpop.f32.mrf.mxu2  ;;  %v1080_v39 = vpop.f32.mrf.mxu1 }
 0x1af   : > { %v1407_v26 = vadd.f32 %v1346_v25, %v1078_v9  ;;  %v1081_v43 = vadd.f32 %v1080_v39, %v3541_v28 }
 0x1b0   : > { %2659 = vmatmul.msk.bf16.gmra.mxu0 %vm555_vm8, %v3760_v3  ;;  %v1474_v17 = vpop.f32.mrf.mxu3 }
 0x1b1   : > { %v1535_v20 = vadd.f32 %v1474_v17, %v1407_v26  ;;  %2611 = vmatmul.msk.bf16.gmra.mxu1 %vm555_vm8, %v3743_v2 }
 0x1b3   : > { %2627 = vmatmul.msk.bf16.gmra.mxu2 %vm555_vm8, %v3769_v8  ;;  %v3779_v40 = vadd.f32 %v1612_v49, %v1535_v20 }
 0x1b5   : > { %v1617_v24 = vpop.f32.mrf.mxu0  ;;  %2643 = vmatmul.msk.bf16.gmra.mxu3 %vm555_vm8, %v3775_v62 }
 0x1b6   : > { %v1349_v11 = vpop.f32.mrf.mxu2  ;;  %v1082_v14 = vpop.f32.mrf.mxu1 }
 0x1b7   : > { %v1408_v13 = vadd.f32 %v1349_v11, %v1081_v43  ;;  %v1083_v34 = vadd.f32 %v1082_v14, %v3561_v53 }
 0x1b8   : > { %v1477_v0 = vpop.f32.mrf.mxu3 }
 0x1b9   : > { %v1536_v58 = vadd.f32 %v1477_v0, %v1408_v13 }
 0x1bb   : > { %v3784_v16 = vadd.f32 %v1615_v12, %v1536_v58 }
 0x1bd   : > { %v1620_v52 = vpop.f32.mrf.mxu0 }
 0x1be   : > { %v1351_v49 = vpop.f32.mrf.mxu2  ;;  %v1085_v19 = vpop.f32.mrf.mxu1 }
 0x1bf   : > { %v1409_v9 = vadd.f32 %v1351_v49, %v1083_v34  ;;  %v1086_v12 = vadd.f32 %v1085_v19, %v3454_v61 }
 0x1c0   : > { %2708 = vmatmul.msk.bf16.vlgmr.msra.gmra.mxu0 %vm555_vm8, %v3384_v30  ;;  %v1479_v28 = vpop.f32.mrf.mxu3 }
 0x1c1   : > { %v1537_v25 = vadd.f32 %v1479_v28, %v1409_v9  ;;  %2660 = vmatmul.msk.bf16.vlgmr.msra.gmra.mxu1 %vm555_vm8, %v3366_v55 }
 0x1c3   : > { %2676 = vmatmul.msk.bf16.vlgmr.msra.gmra.mxu2 %vm555_vm8, %v3395_v63  ;;  %v3793_v26 = vadd.f32 %v1617_v24, %v1537_v25 }
 0x1c5   : > { %v1622_v39 = vpop.f32.mrf.mxu0  ;;  %2692 = vmatmul.msk.bf16.vlgmr.msra.gmra.mxu3 %vm555_vm8, %v3256_v32 }
 0x1c6   : > { %v1354_v53 = vpop.f32.mrf.mxu2  ;;  %v1087_v17 = vpop.f32.mrf.mxu1 }
 0x1c7   : > { %v1410_v20 = vadd.f32 %v1354_v53, %v1086_v12  ;;  %v1088_v55 = vadd.f32 %v1087_v17, %v3469_v18 }
 0x1c8   : > { %v1482_v43 = vpop.f32.mrf.mxu3 }
 0x1c9   : > { %v1538_v11 = vadd.f32 %v1482_v43, %v1410_v20 }
 0x1cb   : > { %v3798_v13 = vadd.f32 %v1620_v52, %v1538_v11 }
 0x1cd   : > { %v1625_v14 = vpop.f32.mrf.mxu0 }
 0x1ce   : > { %v1356_v63 = vpop.f32.mrf.mxu2  ;;  %v1090_v24 = vpop.f32.mrf.mxu1 }
 0x1cf   : > { %v1411_v0 = vadd.f32 %v1356_v63, %v1088_v55  ;;  %v1091_v52 = vadd.f32 %v1090_v24, %v3489_v51 }
 0x1d0   : > { %2709 = vmatmul.msk.bf16.gmra.mxu0 %vm555_vm8, %v3401_v48  ;;  %v1484_v61 = vpop.f32.mrf.mxu3 }
 0x1d1   : > { %v1539_v58 = vadd.f32 %v1484_v61, %v1411_v0  ;;  %2661 = vmatmul.msk.bf16.gmra.mxu1 %vm555_vm8, %v3384_v30 }
 0x1d3   : > { %2677 = vmatmul.msk.bf16.gmra.mxu2 %vm555_vm8, %v3411_v36  ;;  %v3807_v34 = vadd.f32 %v1622_v39, %v1539_v58 }
 0x1d5   : > { %v1627_v32 = vpop.f32.mrf.mxu0  ;;  %2693 = vmatmul.msk.bf16.gmra.mxu3 %vm555_vm8, %v3339_v22 }
 0x1d6   : > { %v1359_v18 = vpop.f32.mrf.mxu2  ;;  %v1092_v49 = vpop.f32.mrf.mxu1 }
 0x1d7   : > { %v1412_v19 = vadd.f32 %v1359_v18, %v1091_v52  ;;  %v1093_v30 = vadd.f32 %v1092_v49, %v3504_v56 }
 0x1d8   : > { %v1487_v9 = vpop.f32.mrf.mxu3 }
 0x1d9   : > { %v1540_v28 = vadd.f32 %v1487_v9, %v1412_v19 }
 0x1db   : > { %v3812_v12 = vadd.f32 %v1625_v14, %v1540_v28 }
 0x1dd   : > { %v1630_v25 = vpop.f32.mrf.mxu0 }
 0x1de   : > { %v1361_v36 = vpop.f32.mrf.mxu2  ;;  %v1095_v39 = vpop.f32.mrf.mxu1 }
 0x1df   : > { %v1413_v53 = vadd.f32 %v1361_v36, %v1093_v30  ;;  %v1096_v43 = vadd.f32 %v1095_v39, %v3524_v59 }
 0x1e0   : > { %2710 = vmatmul.msk.bf16.gmra.mxu0 %vm555_vm8, %v3440_v44  ;;  %v1489_v51 = vpop.f32.mrf.mxu3 }
 0x1e1   : > { %v1541_v17 = vadd.f32 %v1489_v51, %v1413_v53  ;;  %2662 = vmatmul.msk.bf16.gmra.mxu1 %vm555_vm8, %v3401_v48  ;;  %v4274_v53 = vld [vmem:[#allocation30_spill] sm:$0xff] }
 0x1e3   : > { %2678 = vmatmul.msk.bf16.gmra.mxu2 %vm555_vm8, %v3423_v50  ;;  %v3821_v20 = vadd.f32 %v1627_v32, %v1541_v17 }
 0x1e5   : > { %v1632_v22 = vpop.f32.mrf.mxu0  ;;  %2694 = vmatmul.msk.bf16.gmra.mxu3 %vm555_vm8, %v3092_v23 }
 0x1e6   : > { %v1364_v56 = vpop.f32.mrf.mxu2  ;;  %v1097_v11 = vpop.f32.mrf.mxu1 }
 0x1e7   : > { %v1414_v14 = vadd.f32 %v1364_v56, %v1096_v43  ;;  %v1098_v48 = vadd.f32 %v1097_v11, %v3539_v37  ;;  %v4272_v37 = vld [vmem:[#allocation13_spill] sm:$0xff]  ;;  %v4275_v56 = vld [vmem:[#allocation28_spill] sm:$0xff] }
 0x1e8   : > { %v1492_v55 = vpop.f32.mrf.mxu3 }
 0x1e9   : > { %v1542_v63 = vadd.f32 %v1492_v55, %v1414_v14  ;;  %v4276_v14 = vld [vmem:[#allocation26_spill] sm:$0xff] }
 0x1eb   : > { %v3826_v0 = vadd.f32 %v1630_v25, %v1542_v63  ;;  %v4277_v63 = vld [vmem:[#allocation19_spill] sm:$0xff] }
 0x1ed   : > { %v1635_v24 = vpop.f32.mrf.mxu0 }
 0x1ee   : > { %v1366_v50 = vpop.f32.mrf.mxu2  ;;  %v1100_v61 = vpop.f32.mrf.mxu1 }
 0x1ef   : > { %v1415_v58 = vadd.f32 %v1366_v50, %v1098_v48  ;;  %v1101_v18 = vadd.f32 %v1100_v61, %v3559_v54 }
 0x1f0   : > { %2711 = vmatmul.msk.bf16.gmra.mxu0 %vm555_vm8, %v3473_v15  ;;  %v1494_v59 = vpop.f32.mrf.mxu3 }
 0x1f1   : > { %v1543_v32 = vadd.f32 %v1494_v59, %v1415_v58  ;;  %2663 = vmatmul.msk.bf16.gmra.mxu1 %vm555_vm8, %v3440_v44  ;;  %v4273_v44 = vld [vmem:[#allocation38_spill] sm:$0xff] }
 0x1f3   : > { %2679 = vmatmul.msk.bf16.gmra.mxu2 %vm555_vm8, %v3448_v57  ;;  %v3835_v52 = vadd.f32 %v1632_v22, %v1543_v32 }
 0x1f5   : > { %v1637_v23 = vpop.f32.mrf.mxu0  ;;  %2695 = vmatmul.msk.bf16.gmra.mxu3 %vm555_vm8, %v4272_v37  ;;  %v4279_v37 = vld [vmem:[#allocation34_spill] sm:$0xff] }
 0x1f6   : > { %v1369_v49 = vpop.f32.mrf.mxu2  ;;  %v1102_v19 = vpop.f32.mrf.mxu1 }
 0x1f7   : > { %v1416_v9 = vadd.f32 %v1369_v49, %v1101_v18  ;;  %v1103_v39 = vadd.f32 %v1102_v19, %v4273_v44  ;;  %v4280_v44 = vld [vmem:[#allocation32_spill] sm:$0xff] }
 0x1f8   : > { %v1497_v28 = vpop.f32.mrf.mxu3 }
 0x1f9   : > { %v1544_v25 = vadd.f32 %v1497_v28, %v1416_v9 }
 0x1fb   : > { %v3840_v36 = vadd.f32 %v1635_v24, %v1544_v25 }
 0x1fd   : > { %v1640_v30 = vpop.f32.mrf.mxu0 }
 0x1fe   : > { %v1371_v57 = vpop.f32.mrf.mxu2  ;;  %v1105_v51 = vpop.f32.mrf.mxu1 }
 0x1ff   : > { %v1417_v17 = vadd.f32 %v1371_v57, %v1103_v39  ;;  %v1106_v55 = vadd.f32 %v1105_v51, %v4276_v14  ;;  %v4282_v51 = vld [vmem:[#allocation23_spill] sm:$0xff] }
 0x200   : > { %2712 = vmatmul.msk.bf16.gmra.mxu0 %vm555_vm8, %v4274_v53  ;;  %v1499_v54 = vpop.f32.mrf.mxu3 }
 0x201   : > { %v1545_v22 = vadd.f32 %v1499_v54, %v1417_v17  ;;  %2664 = vmatmul.msk.bf16.gmra.mxu1 %vm555_vm8, %v3473_v15  ;;  %v4278_v15 = vld [vmem:[#allocation27_spill] sm:$0xff] }
 0x203   : > { %2680 = vmatmul.msk.bf16.gmra.mxu2 %vm555_vm8, %v4275_v56  ;;  %v3849_v11 = vadd.f32 %v1637_v23, %v1545_v22 }
 0x205   : > { %v1642_v43 = vpop.f32.mrf.mxu0  ;;  %2696 = vmatmul.msk.bf16.gmra.mxu3 %vm555_vm8, %v4277_v63 }
 0x206   : > { %v1374_v24 = vpop.f32.mrf.mxu2  ;;  %v1107_v48 = vpop.f32.mrf.mxu1 }
 0x207   : > { %v1418_v50 = vadd.f32 %v1374_v24, %v1106_v55  ;;  %v1108_v18 = vadd.f32 %v1107_v48, %v4278_v15  ;;  %v4284_v48 = vld [vmem:[#allocation39_spill] sm:$0xff] }
 0x208   : > { %v1502_v61 = vpop.f32.mrf.mxu3 }
 0x209   : > { %v1546_v58 = vadd.f32 %v1502_v61, %v1418_v50 }
 0x20b   : > { %v3854_v32 = vadd.f32 %v1640_v30, %v1546_v58  ;;  %v4281_v30 = vld [vmem:[#allocation29_spill] sm:$0xff] }
 0x20d   : > { %v1645_v59 = vpop.f32.mrf.mxu0 }
 0x20e   : > { %v1376_v23 = vpop.f32.mrf.mxu2  ;;  %v1110_v49 = vpop.f32.mrf.mxu1 }
 0x20f   : > { %v1419_v19 = vadd.f32 %v1376_v23, %v1108_v18  ;;  %v1111_v57 = vadd.f32 %v1110_v49, %v4281_v30  ;;  %v4285_v23 = vld [vmem:[#allocation36_spill] sm:$0xff] }
 0x210   : > { %2713 = vmatmul.msk.bf16.gmra.mxu0 %vm555_vm8, %v4279_v37  ;;  %v1504_v9 = vpop.f32.mrf.mxu3 }
 0x211   : > { %v1547_v28 = vadd.f32 %v1504_v9, %v1419_v19  ;;  %2665 = vmatmul.msk.bf16.gmra.mxu1 %vm555_vm8, %v4274_v53  ;;  %v4283_v53 = vld [vmem:[#allocation31_spill] sm:$0xff]  ;;  %v4287_v9 = vld [vmem:[#allocation8_spill] sm:$0xff] }
 0x213   : > { %2681 = vmatmul.msk.bf16.gmra.mxu2 %vm555_vm8, %v4280_v44  ;;  %v3863_v39 = vadd.f32 %v1642_v43, %v1547_v28 }
 0x215   : > { %v1647_v25 = vpop.f32.mrf.mxu0  ;;  %2697 = vmatmul.msk.bf16.gmra.mxu3 %vm555_vm8, %v4282_v51 }
 0x216   : > { %v1379_v17 = vpop.f32.mrf.mxu2  ;;  %v1112_v54 = vpop.f32.mrf.mxu1 }
 0x217   : > { %v1420_v22 = vadd.f32 %v1379_v17, %v1111_v57  ;;  %v1113_v24 = vadd.f32 %v1112_v54, %v4283_v53 }
 0x218   : > { %v1507_v56 = vpop.f32.mrf.mxu3 }
 0x219   : > { %v1548_v14 = vadd.f32 %v1507_v56, %v1420_v22 }
 0x21b   : > { %v3868_v63 = vadd.f32 %v1645_v59, %v1548_v14  ;;  %v4286_v59 = vld [vmem:[#allocation33_spill] sm:$0xff] }
 0x21d   : > { %v1650_v55 = vpop.f32.mrf.mxu0 }
 0x21e   : > { %v1381_v43 = vpop.f32.mrf.mxu2  ;;  %v1115_v50 = vpop.f32.mrf.mxu1 }
 0x21f   : > { %v1421_v61 = vadd.f32 %v1381_v43, %v1113_v24  ;;  %v1116_v19 = vadd.f32 %v1115_v50, %v4286_v59 }
 0x220   : > { %2714 = vmatmul.msk.bf16.gmra.mxu0 %vm555_vm8, %v4284_v48  ;;  %v1509_v58 = vpop.f32.mrf.mxu3 }
 0x221   : > { %v1549_v15 = vadd.f32 %v1509_v58, %v1421_v61  ;;  %2666 = vmatmul.msk.bf16.gmra.mxu1 %vm555_vm8, %v4279_v37  ;;  %v4288_v37 = vld [vmem:[#allocation35_spill] sm:$0xff]  ;;  %v4290_v58 = vld [vmem:[#allocation14_spill] sm:$0xff] }
 0x223   : > { %2682 = vmatmul.msk.bf16.gmra.mxu2 %vm555_vm8, %v4285_v23  ;;  %v3877_v49 = vadd.f32 %v1647_v25, %v1549_v15 }
 0x225   : > { %v1652_v18 = vpop.f32.mrf.mxu0  ;;  %2698 = vmatmul.msk.bf16.gmra.mxu3 %vm555_vm8, %v4287_v9 }
 0x226   : > { %v1384_v28 = vpop.f32.mrf.mxu2  ;;  %v1117_v44 = vpop.f32.mrf.mxu1 }
 0x227   : > { %v1422_v30 = vadd.f32 %v1384_v28, %v1116_v19  ;;  %v1118_v22 = vadd.f32 %v1117_v44, %v4288_v37 }
 0x228   : > { %v1512_v57 = vpop.f32.mrf.mxu3 }
 0x229   : > { %v1550_v51 = vadd.f32 %v1512_v57, %v1422_v30 }
 0x22b   : > { %v3882_v54 = vadd.f32 %v1650_v55, %v1550_v51  ;;  %v4289_v55 = vld [vmem:[#allocation37_spill] sm:$0xff] }
 0x22d   : > { %v1655_v17 = vpop.f32.mrf.mxu0 }
 0x22e   : > { %v1386_v25 = vpop.f32.mrf.mxu2  ;;  %v1120_v56 = vpop.f32.mrf.mxu1 }
 0x22f   : > { %v1423_v14 = vadd.f32 %v1386_v25, %v1118_v22  ;;  %v1121_v61 = vadd.f32 %v1120_v56, %v4289_v55 }
 0x230   : > { %2715 = vmatmul.msk.bf16.gmra.mxu0 %vm555_vm8, %v3600_v45  ;;  %v1514_v53 = vpop.f32.mrf.mxu3 }
 0x231   : > { %v1551_v24 = vadd.f32 %v1514_v53, %v1423_v14  ;;  %2667 = vmatmul.msk.bf16.gmra.mxu1 %vm555_vm8, %v4284_v48  ;;  %v4291_v48 = vld [vmem:[#allocation40_spill] sm:$0xff] }
 0x233   : > { %2683 = vmatmul.msk.bf16.gmra.mxu2 %vm555_vm8, %v3582_v6  ;;  %v3891_v50 = vadd.f32 %v1652_v18, %v1551_v24 }
 0x235   : > { %v1657_v43 = vpop.f32.mrf.mxu0  ;;  %2699 = vmatmul.msk.bf16.gmra.mxu3 %vm555_vm8, %v4290_v58 }
 0x236   : > { %v1389_v15 = vpop.f32.mrf.mxu2  ;;  %v1122_v23 = vpop.f32.mrf.mxu1 }
 0x237   : > { %v1424_v59 = vadd.f32 %v1389_v15, %v1121_v61  ;;  %v1123_v30 = vadd.f32 %v1122_v23, %v4291_v48  ;;  %v4292_v48 = vld [vmem:[#allocation24_spill] sm:$0xff] }
 0x238   : > { %v1517_v19 = vpop.f32.mrf.mxu3 }
 0x239   : > { %v1552_v9 = vadd.f32 %v1517_v19, %v1424_v59 }
 0x23b   : > { %v3896_v44 = vadd.f32 %v1655_v17, %v1552_v9 }
 0x23d   : > { %v2116_v28 = vpop.f32.mrf.mxu0 }
 0x23e   : > { %v1391_v6 = vpop.f32.mrf.mxu2  ;;  %v1715_v18 = vpop.f32.mrf.mxu1 }
 0x23f   : > { %v1425_v57 = vadd.f32 %v1391_v6, %v1123_v30  ;;  %v1795_v17 = vadd.f32 %v1715_v18, %v3593_v27 }
 0x240   : > { %2716 = vmatmul.msk.bf16.gmra.mxu0 %vm555_vm8, %v3625_v60  ;;  %v1519_v51 = vpop.f32.mrf.mxu3 }
 0x241   : > { %v1553_v37 = vadd.f32 %v1519_v51, %v1425_v57  ;;  %2668 = vmatmul.msk.bf16.gmra.mxu1 %vm555_vm8, %v3600_v45 }
 0x243   : > { %2684 = vmatmul.msk.bf16.gmra.mxu2 %vm555_vm8, %v3606_v33  ;;  %v3905_v25 = vadd.f32 %v1657_v43, %v1553_v37 }
 0x245   : > { %v2118_v22 = vpop.f32.mrf.mxu0  ;;  %2700 = vmatmul.msk.bf16.gmra.mxu3 %vm555_vm8, %v3272_v1 }
 0x246   : > { %v1843_v56 = vpop.f32.mrf.mxu2  ;;  %v1717_v14 = vpop.f32.mrf.mxu1 }
 0x247   : > { %v1923_v53 = vadd.f32 %v1843_v56, %v1795_v17  ;;  %v1796_v15 = vadd.f32 %v1717_v14, %v3610_v29 }
 0x248   : > { %v1981_v24 = vpop.f32.mrf.mxu3 }
 0x249   : > { %v2061_v55 = vadd.f32 %v1981_v24, %v1923_v53 }
 0x24b   : > { %v2196_v58 = vadd.f32 %v2116_v28, %v2061_v55 }
 0x24d   : > { %v2121_v61 = vpop.f32.mrf.mxu0  ;;  %v2228_v45 = vpack.c.bf16 %v2196_v58, %v2196_v58 }
 0x24e   : > { %v1845_v33 = vpop.f32.mrf.mxu2  ;;  %v1720_v43 = vpop.f32.mrf.mxu1 }
 0x24f   : > { %2261 = vst.msk [vmem:[%s2890_s16] sm:$0xf] %vm2260_vm10, %v2228_v45  ;;  %v1924_v1 = vadd.f32 %v1845_v33, %v1796_v15  ;;  %v2293_v19 = vunpack.c.l.bf16 %v2228_v45  ;;  %v1797_v28 = vadd.f32 %v1720_v43, %v3618_v7  ;;  %v4293_v45 = vld [vmem:[#allocation21_spill] sm:$0xff] }
 0x250   : > { %2717 = vmatmul.msk.bf16.gmra.mxu0 %vm555_vm8, %v3650_v10  ;;  %v1983_v27 = vpop.f32.mrf.mxu3  ;;  %v4294_v33 = vld [vmem:[#allocation41_spill] sm:$0xff] }
 0x251   : > { %v2062_v23 = vadd.f32 %v1983_v27, %v1924_v1  ;;  %2669 = vmatmul.msk.bf16.gmra.mxu1 %vm555_vm8, %v3625_v60  ;;  %v2399_v18 = vmul.f32 %v2293_v19, %v2293_v19  ;;  %v2326_v37 = vsel %vm555_vm8, %v2293_v19, 0.0 }
 0x253   : > { %v2197_v9 = vadd.f32 %v2118_v22, %v2062_v23  ;;  %2685 = vmatmul.msk.bf16.gmra.mxu2 %vm555_vm8, %v3631_v31  ;;  %v2431_v14 = vsel %vm555_vm8, %v2399_v18, 0.0  ;;  %v4295_v18 = vld [vmem:[#allocation5_spill] sm:$0xff] }
 0x255   : > { %v2123_v59 = vpop.f32.mrf.mxu0  ;;  %v2229_v29 = vpack.c.bf16 %v2197_v9, %v2197_v9  ;;  %2701 = vmatmul.msk.bf16.gmra.mxu3 %vm555_vm8, %v4292_v48 }
 0x256   : > { %v1848_v30 = vpop.f32.mrf.mxu2  ;;  %v1722_v6 = vpop.f32.mrf.mxu1 }
 0x257   : > { %2262 = vst.msk [vmem:[%s2890_s16 + $0x4] sm:$0xf] %vm2260_vm10, %v2229_v29  ;;  %v2294_v57 = vunpack.c.l.bf16 %v2229_v29  ;;  %v1925_v51 = vadd.f32 %v1848_v30, %v1797_v28  ;;  %v1798_v15 = vadd.f32 %v1722_v6, %v4293_v45 }
 0x258   : > { %v1986_v60 = vpop.f32.mrf.mxu3 }
 0x259   : > { %v2327_v22 = vsel %vm555_vm8, %v2294_v57, 0.0  ;;  %v2400_v31 = vmul.f32 %v2294_v57, %v2294_v57  ;;  %v2063_v17 = vadd.f32 %v1986_v60, %v1925_v51  ;;  %v4296_v60 = vld [vmem:[#allocation22_spill] sm:$0xff] }
 0x25a   : > { %v2328_v56 = vadd.f32 %v2327_v22, %v2326_v37  ;;  %v4297_v22 = vld [vmem:[#allocation9_spill] sm:$0xff] }
 0x25b   : > { %v2432_v53 = vsel %vm555_vm8, %v2400_v31, 0.0  ;;  %v2198_v24 = vadd.f32 %v2121_v61, %v2063_v17 }
 0x25c   : > { %v2433_v55 = vadd.f32 %v2432_v53, %v2431_v14 }
 0x25d   : > { %v2126_v7 = vpop.f32.mrf.mxu0  ;;  %v2230_v58 = vpack.c.bf16 %v2198_v24, %v2198_v24 }
 0x25e   : > { %v1850_v43 = vpop.f32.mrf.mxu2  ;;  %v1725_v1 = vpop.f32.mrf.mxu1 }
 0x25f   : > { %2263 = vst.msk [vmem:[%s2890_s16 + $0x8] sm:$0xf] %vm2260_vm10, %v2230_v58  ;;  %v2295_v27 = vunpack.c.l.bf16 %v2230_v58  ;;  %v1926_v23 = vadd.f32 %v1850_v43, %v1798_v15  ;;  %v1799_v37 = vadd.f32 %v1725_v1, %v4296_v60 }
 0x260   : > { %2718 = vmatmul.msk.bf16.gmra.mxu0 %vm555_vm8, %v4294_v33  ;;  %v1988_v19 = vpop.f32.mrf.mxu3 }
 0x261   : > { %v2329_v9 = vsel %vm555_vm8, %v2295_v27, 0.0  ;;  %v2401_v29 = vmul.f32 %v2295_v27, %v2295_v27  ;;  %v2064_v28 = vadd.f32 %v1988_v19, %v1926_v23  ;;  %2670 = vmatmul.msk.bf16.gmra.mxu1 %vm555_vm8, %v3650_v10  ;;  %v4298_v27 = vld [vmem:[#allocation6_spill] sm:$0xff] }
 0x262   : > { %v2330_v61 = vadd.f32 %v2329_v9, %v2328_v56 }
 0x263   : > { %v2434_v30 = vsel %vm555_vm8, %v2401_v29, 0.0  ;;  %v2199_v6 = vadd.f32 %v2123_v59, %v2064_v28  ;;  %2686 = vmatmul.msk.bf16.gmra.mxu2 %vm555_vm8, %v4295_v18 }
 0x264   : > { %v2435_v57 = vadd.f32 %v2434_v30, %v2433_v55 }
 0x265   : > { %v2128_v48 = vpop.f32.mrf.mxu0  ;;  %v2231_v51 = vpack.c.bf16 %v2199_v6, %v2199_v6  ;;  %2702 = vmatmul.msk.bf16.gmra.mxu3 %vm555_vm8, %v4297_v22 }
 0x266   : > { %v1853_v31 = vpop.f32.mrf.mxu2  ;;  %v1727_v17 = vpop.f32.mrf.mxu1 }
 0x267   : > { %2264 = vst.msk [vmem:[%s2890_s16 + $0xc] sm:$0xf] %vm2260_vm10, %v2231_v51  ;;  %v2296_v10 = vunpack.c.l.bf16 %v2231_v51  ;;  %v1927_v56 = vadd.f32 %v1853_v31, %v1799_v37  ;;  %v1800_v23 = vadd.f32 %v1727_v17, %v4298_v27  ;;  %v4299_v31 = vld [vmem:[#allocation7_spill] sm:$0xff] }
 0x268   : > { %v1991_v14 = vpop.f32.mrf.mxu3 }
 0x269   : > { %v2331_v59 = vsel %vm555_vm8, %v2296_v10, 0.0  ;;  %v2402_v53 = vmul.f32 %v2296_v10, %v2296_v10  ;;  %v2065_v24 = vadd.f32 %v1991_v14, %v1927_v56  ;;  %v4300_v10 = vld [vmem:[#allocation15_spill] sm:$0xff] }
 0x26a   : > { %v2332_v58 = vadd.f32 %v2331_v59, %v2330_v61 }
 0x26b   : > { %v2436_v45 = vsel %vm555_vm8, %v2402_v53, 0.0  ;;  %v2200_v15 = vadd.f32 %v2126_v7, %v2065_v24 }
 0x26c   : > { %v2437_v43 = vadd.f32 %v2436_v45, %v2435_v57 }
 0x26d   : > { %v2131_v55 = vpop.f32.mrf.mxu0  ;;  %v2232_v1 = vpack.c.bf16 %v2200_v15, %v2200_v15 }
 0x26e   : > { %v1855_v19 = vpop.f32.mrf.mxu2  ;;  %v1730_v9 = vpop.f32.mrf.mxu1 }
 0x26f   : > { %2265 = vst.msk [vmem:[%s2890_s16 + $0x10] sm:$0xf] %vm2260_vm10, %v2232_v1  ;;  %v2297_v29 = vunpack.c.l.bf16 %v2232_v1  ;;  %v1928_v28 = vadd.f32 %v1855_v19, %v1800_v23  ;;  %v1801_v17 = vadd.f32 %v1730_v9, %v4299_v31  ;;  %v4301_v23 = vld [vmem:[#allocation10_spill] sm:$0xff] }
 0x270   : > { %2719 = vmatmul.msk.bf16.gmra.mxu0 %vm555_vm8, %v3706_v38  ;;  %v1993_v30 = vpop.f32.mrf.mxu3 }
 0x271   : > { %v2333_v61 = vsel %vm555_vm8, %v2297_v29, 0.0  ;;  %v2403_v6 = vmul.f32 %v2297_v29, %v2297_v29  ;;  %v2066_v18 = vadd.f32 %v1993_v30, %v1928_v28  ;;  %2671 = vmatmul.msk.bf16.gmra.mxu1 %vm555_vm8, %v4294_v33 }
 0x272   : > { %v2334_v7 = vadd.f32 %v2333_v61, %v2332_v58  ;;  %v1692_v61 = vrot.slane %v3733_v4, 2 }
 0x273   : > { %v2438_v51 = vsel %vm555_vm8, %v2403_v6, 0.0  ;;  %v2201_v60 = vadd.f32 %v2128_v48, %v2066_v18  ;;  %2687 = vmatmul.msk.bf16.gmra.mxu2 %vm555_vm8, %v3680_v47  ;;  %v1693_v6 = vrot.slane %v3735_v35, 2 }
 0x274   : > { %v2439_v37 = vadd.f32 %v2438_v51, %v2437_v43 }
 0x275   : > { %v2133_v57 = vpop.f32.mrf.mxu0  ;;  %v2233_v22 = vpack.c.bf16 %v2201_v60, %v2201_v60  ;;  %2703 = vmatmul.msk.bf16.gmra.mxu3 %vm555_vm8, %v4300_v10  ;;  %v1694_v35 = vsel %vm1125_vm9, %v1692_v61, %v1693_v6 }
 0x276   : > { %v1858_v56 = vpop.f32.mrf.mxu2  ;;  %v1732_v14 = vpop.f32.mrf.mxu1 }
 0x277   : > { %2266 = vst.msk [vmem:[%s2890_s16 + $0x14] sm:$0xf] %vm2260_vm10, %v2233_v22  ;;  %v2298_v33 = vunpack.c.l.bf16 %v2233_v22  ;;  %v1929_v59 = vadd.f32 %v1858_v56, %v1801_v17  ;;  %v1802_v19 = vadd.f32 %v1732_v14, %v4301_v23  ;;  %v1695_v22 = vrot.slane %v3737_v21, 2  ;;  %v4303_v23 = vld [vmem:[#allocation11_spill] sm:$0xff] }
 0x278   : > { %v1996_v53 = vpop.f32.mrf.mxu3 }
 0x279   : > { %v2335_v48 = vsel %vm555_vm8, %v2298_v33, 0.0  ;;  %v2404_v24 = vmul.f32 %v2298_v33, %v2298_v33  ;;  %v2067_v58 = vadd.f32 %v1996_v53, %v1929_v59  ;;  %v1696_v10 = vsel %vm1125_vm9, %v1693_v6, %v1695_v22 }
 0x27a   : > { %v2336_v47 = vadd.f32 %v2335_v48, %v2334_v7  ;;  %v3983_v33 = vpack.c.bf16 %v1696_v10, %v1694_v35  ;;  %v4305_v35 = vld [vmem:[#allocation25_spill] sm:$0xff] }
 0x27b   : > { %v2440_v15 = vsel %vm555_vm8, %v2404_v24, 0.0  ;;  %v2202_v43 = vadd.f32 %v2131_v55, %v2067_v58 }
 0x27c   : > { %v2441_v1 = vadd.f32 %v2440_v15, %v2439_v37 }
 0x27d   : > { %v2136_v45 = vpop.f32.mrf.mxu0  ;;  %v2234_v27 = vpack.c.bf16 %v2202_v43, %v2202_v43 }
 0x27e   : > { %v1860_v9 = vpop.f32.mrf.mxu2  ;;  %v1735_v29 = vpop.f32.mrf.mxu1 }
 0x27f   : > { %2267 = vst.msk [vmem:[%s2890_s16 + $0x18] sm:$0xf] %vm2260_vm10, %v2234_v27  ;;  %v2299_v28 = vunpack.c.l.bf16 %v2234_v27  ;;  %v1930_v30 = vadd.f32 %v1860_v9, %v1802_v19  ;;  %v1803_v14 = vadd.f32 %v1735_v29, %v3699_v46 }
 0x280   : > { %2720 = vmatmul.msk.bf16.gmra.mxu0 %vm555_vm8, %v3731_v42  ;;  %v1998_v18 = vpop.f32.mrf.mxu3 }
 0x281   : > { %v2337_v55 = vsel %vm555_vm8, %v2299_v28, 0.0  ;;  %v2405_v7 = vmul.f32 %v2299_v28, %v2299_v28  ;;  %v2068_v51 = vadd.f32 %v1998_v18, %v1930_v30  ;;  %2672 = vmatmul.msk.bf16.gmra.mxu1 %vm555_vm8, %v3706_v38  ;;  %v4302_v38 = vld [vmem:[#allocation20_spill] sm:$0xff] }
 0x282   : > { %v2338_v60 = vadd.f32 %v2337_v55, %v2336_v47 }
 0x283   : > { %v2442_v31 = vsel %vm555_vm8, %v2405_v7, 0.0  ;;  %v2203_v17 = vadd.f32 %v2133_v57, %v2068_v51  ;;  %2688 = vmatmul.msk.bf16.gmra.mxu2 %vm555_vm8, %v3712_v5 }
 0x284   : > { %v2443_v4 = vadd.f32 %v2442_v31, %v2441_v1 }
 0x285   : > { %v2138_v37 = vpop.f32.mrf.mxu0  ;;  %v2235_v56 = vpack.c.bf16 %v2203_v17, %v2203_v17  ;;  %2704 = vmatmul.msk.bf16.gmra.mxu3 %vm555_vm8, %v4302_v38  ;;  %v4304_v17 = vld [vmem:[#allocation3_spill] sm:$0xff] }
 0x286   : > { %v1863_v21 = vpop.f32.mrf.mxu2  ;;  %v1737_v59 = vpop.f32.mrf.mxu1 }
 0x287   : > { %2268 = vst.msk [vmem:[%s2890_s16 + $0x1c] sm:$0xf] %vm2260_vm10, %v2235_v56  ;;  %v2300_v57 = vunpack.c.l.bf16 %v2235_v56  ;;  %v1931_v5 = vadd.f32 %v1863_v21, %v1803_v14  ;;  %v1804_v19 = vadd.f32 %v1737_v59, %v4303_v23 }
 0x288   : > { %v2001_v53 = vpop.f32.mrf.mxu3 }
 0x289   : > { %v2339_v48 = vsel %vm555_vm8, %v2300_v57, 0.0  ;;  %v2406_v24 = vmul.f32 %v2300_v57, %v2300_v57  ;;  %v2069_v58 = vadd.f32 %v2001_v53, %v1931_v5 }
 0x28a   : > { %v2340_v47 = vadd.f32 %v2339_v48, %v2338_v60 }
 0x28b   : > { %v2444_v46 = vsel %vm555_vm8, %v2406_v24, 0.0  ;;  %v2204_v43 = vadd.f32 %v2136_v45, %v2069_v58  ;;  %v4306_v58 = vld [vmem:[#allocation4_spill] sm:$0xff] }
 0x28c   : > { %v2445_v1 = vadd.f32 %v2444_v46, %v2443_v4 }
 0x28d   : > { %v2141_v15 = vpop.f32.mrf.mxu0  ;;  %v2236_v27 = vpack.c.bf16 %v2204_v43, %v2204_v43 }
 0x28e   : > { %v1865_v9 = vpop.f32.mrf.mxu2  ;;  %v1740_v29 = vpop.f32.mrf.mxu1 }
 0x28f   : > { %2269 = vst.msk [vmem:[%s2890_s16 + $0x20] sm:$0xf] %vm2260_vm10, %v2236_v27  ;;  %v2301_v28 = vunpack.c.l.bf16 %v2236_v27  ;;  %v1932_v30 = vadd.f32 %v1865_v9, %v1804_v19  ;;  %v1805_v4 = vadd.f32 %v1740_v29, %v4304_v17 }
 0x290   : > { %2721 = vmatmul.msk.bf16.gmra.mxu0 %vm555_vm8, %v3769_v8  ;;  %v2003_v61 = vpop.f32.mrf.mxu3 }
 0x291   : > { %v2341_v6 = vsel %vm555_vm8, %v2301_v28, 0.0  ;;  %v2407_v18 = vmul.f32 %v2301_v28, %v2301_v28  ;;  %v2070_v55 = vadd.f32 %v2003_v61, %v1932_v30  ;;  %2673 = vmatmul.msk.bf16.gmra.mxu1 %vm555_vm8, %v3731_v42  ;;  %v640_v28 = vld [vmem:[#allocation2 + $0x1a0] sm:$0xff]  ;;  %v641_v30 = vld [vmem:[#allocation2 + $0x1a8] sm:$0x3] }
 0x292   : > { %v2342_v45 = vadd.f32 %v2341_v6, %v2340_v47 }
 0x293   : > { %v2446_v51 = vsel %vm555_vm8, %v2407_v18, 0.0  ;;  %v2205_v60 = vadd.f32 %v2138_v37, %v2070_v55  ;;  %2689 = vmatmul.msk.bf16.gmra.mxu2 %vm555_vm8, %v3743_v2  ;;  %v2094_v55 = vrot.slane %v640_v28, 2 }
 0x294   : > { %v2447_v22 = vadd.f32 %v2446_v51, %v2445_v1 }
 0x295   : > { %v2143_v7 = vpop.f32.mrf.mxu0  ;;  %v2237_v31 = vpack.c.bf16 %v2205_v60, %v2205_v60  ;;  %2705 = vmatmul.msk.bf16.gmra.mxu3 %vm555_vm8, %v4305_v35 }
 0x296   : > { %v1868_v10 = vpop.f32.mrf.mxu2  ;;  %v1742_v56 = vpop.f32.mrf.mxu1 }
 0x297   : > { %2270 = vst.msk [vmem:[%s2890_s16 + $0x24] sm:$0xf] %vm2260_vm10, %v2237_v31  ;;  %v2302_v42 = vunpack.c.l.bf16 %v2237_v31  ;;  %v1933_v14 = vadd.f32 %v1868_v10, %v1805_v4  ;;  %v1806_v47 = vadd.f32 %v1742_v56, %v4306_v58 }
 0x298   : > { %v2006_v38 = vpop.f32.mrf.mxu3 }
 0x299   : > { %v2343_v37 = vsel %vm555_vm8, %v2302_v42, 0.0  ;;  %v2408_v21 = vmul.f32 %v2302_v42, %v2302_v42  ;;  %v2071_v59 = vadd.f32 %v2006_v38, %v1933_v14 }
 0x29a   : > { %v2344_v2 = vadd.f32 %v2343_v37, %v2342_v45  ;;  %v2096_v45 = vrot.slane %v641_v30, 2 }
 0x29b   : > { %v2448_v5 = vsel %vm555_vm8, %v2408_v21, 0.0  ;;  %v2206_v53 = vadd.f32 %v2141_v15, %v2071_v59  ;;  %v639_v15 = vld [vmem:[#allocation2 + $0x198] sm:$0xff]  ;;  %v1959_v59 = vrot.slane %v640_v28, 1 }
 0x29c   : > { %v2449_v48 = vadd.f32 %v2448_v5, %v2447_v22  ;;  %v2093_v18 = vrot.slane %v639_v15, 2  ;;  %v2097_v10 = vsel %vm1125_vm9, %v2094_v55, %v2096_v45 }
 0x29d   : > { %v2146_v57 = vpop.f32.mrf.mxu0  ;;  %v2238_v24 = vpack.c.bf16 %v2206_v53, %v2206_v53 }
 0x29e   : > { %v1870_v46 = vpop.f32.mrf.mxu2  ;;  %v1745_v43 = vpop.f32.mrf.mxu1  ;;  %v2095_v35 = vsel %vm1125_vm9, %v2093_v18, %v2094_v55 }
 0x29f   : > { %2271 = vst.msk [vmem:[%s2890_s16 + $0x28] sm:$0xf] %vm2260_vm10, %v2238_v24  ;;  %v2303_v1 = vunpack.c.l.bf16 %v2238_v24  ;;  %v1934_v27 = vadd.f32 %v1870_v46, %v1806_v47  ;;  %v1807_v17 = vadd.f32 %v1745_v43, %v3762_v41  ;;  %v2100_v37 = vpack.c.bf16 %v2097_v10, %v2095_v35 }
 0x2a0   : > { %2722 = vmatmul.msk.bf16.gmra.mxu0 %vm555_vm8, %v3983_v33  ;;  %v2008_v23 = vpop.f32.mrf.mxu3 }
 0x2a1   : > { %v2345_v19 = vsel %vm555_vm8, %v2303_v1, 0.0  ;;  %v2409_v9 = vmul.f32 %v2303_v1, %v2303_v1  ;;  %v2072_v29 = vadd.f32 %v2008_v23, %v1934_v27  ;;  %2674 = vmatmul.msk.bf16.gmra.mxu1 %vm555_vm8, %v3769_v8 }
 0x2a2   : > { %v2346_v61 = vadd.f32 %v2345_v19, %v2344_v2  ;;  %v1961_v2 = vrot.slane %v641_v30, 1  ;;  %v1827_v19 = vpack.c.bf16 %v640_v28, %v639_v15 }
 0x2a3   : > { %v2450_v51 = vsel %vm555_vm8, %v2409_v9, 0.0  ;;  %v2207_v60 = vadd.f32 %v2143_v7, %v2072_v29  ;;  %2690 = vmatmul.msk.bf16.gmra.mxu2 %vm555_vm8, %v3775_v62 }
 0x2a4   : > { %v2451_v22 = vadd.f32 %v2450_v51, %v2449_v48  ;;  %v1962_v1 = vsel %vm715_vm7, %v1959_v59, %v1961_v2 }
 0x2a5   : > { %v2148_v6 = vpop.f32.mrf.mxu0  ;;  %v2239_v31 = vpack.c.bf16 %v2207_v60, %v2207_v60  ;;  %2706 = vmatmul.msk.bf16.gmra.mxu3 %vm555_vm8, %v3760_v3  ;;  %v1958_v3 = vrot.slane %v639_v15, 1 }
 0x2a6   : > { %v1873_v8 = vpop.f32.mrf.mxu2  ;;  %v1747_v4 = vpop.f32.mrf.mxu1 }
 0x2a7   : > { %2272 = vst.msk [vmem:[%s2890_s16 + $0x2c] sm:$0xf] %vm2260_vm10, %v2239_v31  ;;  %v2304_v56 = vunpack.c.l.bf16 %v2239_v31  ;;  %v1935_v7 = vadd.f32 %v1873_v8, %v1807_v17  ;;  %v1808_v58 = vadd.f32 %v1747_v4, %v3779_v40  ;;  %v1960_v43 = vsel %vm715_vm7, %v1958_v3, %v1959_v59 }
 0x2a8   : > { %v2011_v42 = vpop.f32.mrf.mxu3  ;;  %v1965_v40 = vpack.c.bf16 %v1962_v1, %v1960_v43 }
 0x2a9   : > { %v2347_v62 = vsel %vm555_vm8, %v2304_v56, 0.0  ;;  %v2410_v14 = vmul.f32 %v2304_v56, %v2304_v56  ;;  %v2073_v38 = vadd.f32 %v2011_v42, %v1935_v7 }
 0x2aa   : > { %v2348_v41 = vadd.f32 %v2347_v62, %v2346_v61 }
 0x2ab   : > { %v2452_v5 = vsel %vm555_vm8, %v2410_v14, 0.0  ;;  %v2208_v53 = vadd.f32 %v2146_v57, %v2073_v38 }
 0x2ac   : > { %v2453_v48 = vadd.f32 %v2452_v5, %v2451_v22 }
 0x2ad   : > { %v2151_v21 = vpop.f32.mrf.mxu0  ;;  %v2240_v24 = vpack.c.bf16 %v2208_v53, %v2208_v53 }
 0x2ae   : > { %v1875_v47 = vpop.f32.mrf.mxu2  ;;  %v1750_v46 = vpop.f32.mrf.mxu1 }
 0x2af   : > { %2273 = vst.msk [vmem:[%s2890_s16 + $0x30] sm:$0xf] %vm2260_vm10, %v2240_v24  ;;  %v2305_v27 = vunpack.c.l.bf16 %v2240_v24  ;;  %v1936_v23 = vadd.f32 %v1875_v47, %v1808_v58  ;;  %v1809_v15 = vadd.f32 %v1750_v46, %v3784_v16 }
 0x2b0   : > { %2723 = vmatmul.msk.bf16.gmra.mxu0 %vm555_vm8, %v2100_v37  ;;  %v2013_v9 = vpop.f32.mrf.mxu3 }
 0x2b1   : > { %v2349_v57 = vsel %vm555_vm8, %v2305_v27, 0.0  ;;  %v2411_v29 = vmul.f32 %v2305_v27, %v2305_v27  ;;  %v2074_v30 = vadd.f32 %v2013_v9, %v1936_v23  ;;  %2675 = vmatmul.msk.bf16.gmra.mxu1 %vm555_vm8, %v3983_v33 }
 0x2b2   : > { %v2350_v61 = vadd.f32 %v2349_v57, %v2348_v41 }
 0x2b3   : > { %v2454_v55 = vsel %vm555_vm8, %v2411_v29, 0.0  ;;  %v2209_v45 = vadd.f32 %v2148_v6, %v2074_v30  ;;  %2691 = vmatmul.msk.bf16.gmra.mxu2 %vm555_vm8, %v1827_v19 }
 0x2b4   : > { %v2455_v51 = vadd.f32 %v2454_v55, %v2453_v48 }
 0x2b5   : > { %v2153_v18 = vpop.f32.mrf.mxu0  ;;  %v2241_v60 = vpack.c.bf16 %v2209_v45, %v2209_v45  ;;  %2707 = vmatmul.msk.bf16.gmra.mxu3 %vm555_vm8, %v1965_v40 }
 0x2b6   : > { %v1878_v28 = vpop.f32.mrf.mxu2  ;;  %v1752_v22 = vpop.f32.mrf.mxu1 }
 0x2b7   : > { %2274 = vst.msk [vmem:[%s2890_s16 + $0x34] sm:$0xf] %vm2260_vm10, %v2241_v60  ;;  %v2306_v33 = vunpack.c.l.bf16 %v2241_v60  ;;  %v1937_v31 = vadd.f32 %v1878_v28, %v1809_v15  ;;  %v1810_v62 = vadd.f32 %v1752_v22, %v3793_v26 }
 0x2b8   : > { %v2016_v17 = vpop.f32.mrf.mxu3 }
 0x2b9   : > { %v2351_v8 = vsel %vm555_vm8, %v2306_v33, 0.0  ;;  %v2412_v4 = vmul.f32 %v2306_v33, %v2306_v33  ;;  %v2075_v6 = vadd.f32 %v2016_v17, %v1937_v31 }
 0x2ba   : > { %v2352_v35 = vadd.f32 %v2351_v8, %v2350_v61 }
 0x2bb   : > { %v2456_v56 = vsel %vm555_vm8, %v2412_v4, 0.0  ;;  %v2210_v7 = vadd.f32 %v2151_v21, %v2075_v6 }
 0x2bc   : > { %v2457_v16 = vadd.f32 %v2456_v56, %v2455_v51 }
 0x2bd   : > { %v2156_v10 = vpop.f32.mrf.mxu0  ;;  %v2242_v42 = vpack.c.bf16 %v2210_v7, %v2210_v7 }
 0x2be   : > { %v1880_v14 = vpop.f32.mrf.mxu2  ;;  %v1755_v38 = vpop.f32.mrf.mxu1 }
 0x2bf   : > { %2275 = vst.msk [vmem:[%s2890_s16 + $0x38] sm:$0xf] %vm2260_vm10, %v2242_v42  ;;  %v2307_v37 = vunpack.c.l.bf16 %v2242_v42  ;;  %v1938_v41 = vadd.f32 %v1880_v14, %v1810_v62  ;;  %v1811_v26 = vadd.f32 %v1755_v38, %v3798_v13 }
 0x2c0   : > { %v2018_v3 = vpop.f32.mrf.mxu3 }
 0x2c1   : > { %v2353_v59 = vsel %vm555_vm8, %v2307_v37, 0.0  ;;  %v2413_v2 = vmul.f32 %v2307_v37, %v2307_v37  ;;  %v2076_v5 = vadd.f32 %v2018_v3, %v1938_v41 }
 0x2c2   : > { %v2354_v53 = vadd.f32 %v2353_v59, %v2352_v35 }
 0x2c3   : > { %v2458_v21 = vsel %vm555_vm8, %v2413_v2, 0.0  ;;  %v2211_v24 = vadd.f32 %v2153_v18, %v2076_v5 }
 0x2c4   : > { %v2459_v58 = vadd.f32 %v2458_v21, %v2457_v16 }
 0x2c5   : > { %v2158_v48 = vpop.f32.mrf.mxu0  ;;  %v2243_v47 = vpack.c.bf16 %v2211_v24, %v2211_v24 }
 0x2c6   : > { %v1883_v46 = vpop.f32.mrf.mxu2  ;;  %v1757_v43 = vpop.f32.mrf.mxu1 }
 0x2c7   : > { %2276 = vst.msk [vmem:[%s2890_s16 + $0x3c] sm:$0xf] %vm2260_vm10, %v2243_v47  ;;  %v2308_v1 = vunpack.c.l.bf16 %v2243_v47  ;;  %v1939_v27 = vadd.f32 %v1883_v46, %v1811_v26  ;;  %v1812_v13 = vadd.f32 %v1757_v43, %v3807_v34 }
 0x2c8   : > { %v2021_v23 = vpop.f32.mrf.mxu3 }
 0x2c9   : > { %v2355_v19 = vsel %vm555_vm8, %v2308_v1, 0.0  ;;  %v2414_v9 = vmul.f32 %v2308_v1, %v2308_v1  ;;  %v2077_v57 = vadd.f32 %v2021_v23, %v1939_v27 }
 0x2ca   : > { %v2356_v29 = vadd.f32 %v2355_v19, %v2354_v53 }
 0x2cb   : > { %v2460_v40 = vsel %vm555_vm8, %v2414_v9, 0.0  ;;  %v2212_v61 = vadd.f32 %v2156_v10, %v2077_v57 }
 0x2cc   : > { %v2461_v18 = vadd.f32 %v2460_v40, %v2459_v58 }
 0x2cd   : > { %v2161_v30 = vpop.f32.mrf.mxu0  ;;  %v2244_v55 = vpack.c.bf16 %v2212_v61, %v2212_v61 }
 0x2ce   : > { %v1885_v45 = vpop.f32.mrf.mxu2  ;;  %v1760_v51 = vpop.f32.mrf.mxu1 }
 0x2cf   : > { %2277 = vst.msk [vmem:[%s2890_s16 + $0x40] sm:$0xf] %vm2260_vm10, %v2244_v55  ;;  %v2309_v60 = vunpack.c.l.bf16 %v2244_v55  ;;  %v1940_v15 = vadd.f32 %v1885_v45, %v1812_v13  ;;  %v1813_v34 = vadd.f32 %v1760_v51, %v3812_v12 }
 0x2d0   : > { %v2023_v28 = vpop.f32.mrf.mxu3 }
 0x2d1   : > { %v2357_v22 = vsel %vm555_vm8, %v2309_v60, 0.0  ;;  %v2415_v33 = vmul.f32 %v2309_v60, %v2309_v60  ;;  %v2078_v31 = vadd.f32 %v2023_v28, %v1940_v15 }
 0x2d2   : > { %v2358_v17 = vadd.f32 %v2357_v22, %v2356_v29 }
 0x2d3   : > { %v2462_v4 = vsel %vm555_vm8, %v2415_v33, 0.0  ;;  %v2213_v6 = vadd.f32 %v2158_v48, %v2078_v31 }
 0x2d4   : > { %v2463_v35 = vadd.f32 %v2462_v4, %v2461_v18 }
 0x2d5   : > { %v2163_v8 = vpop.f32.mrf.mxu0  ;;  %v2245_v10 = vpack.c.bf16 %v2213_v6, %v2213_v6 }
 0x2d6   : > { %v1888_v56 = vpop.f32.mrf.mxu2  ;;  %v1762_v7 = vpop.f32.mrf.mxu1 }
 0x2d7   : > { %2278 = vst.msk [vmem:[%s2890_s16 + $0x44] sm:$0xf] %vm2260_vm10, %v2245_v10  ;;  %v2310_v16 = vunpack.c.l.bf16 %v2245_v10  ;;  %v1941_v42 = vadd.f32 %v1888_v56, %v1813_v34  ;;  %v1814_v12 = vadd.f32 %v1762_v7, %v3821_v20 }
 0x2d8   : > { %v2026_v62 = vpop.f32.mrf.mxu3 }
 0x2d9   : > { %v2359_v14 = vsel %vm555_vm8, %v2310_v16, 0.0  ;;  %v2416_v38 = vmul.f32 %v2310_v16, %v2310_v16  ;;  %v2079_v37 = vadd.f32 %v2026_v62, %v1941_v42 }
 0x2da   : > { %v2360_v41 = vadd.f32 %v2359_v14, %v2358_v17 }
 0x2db   : > { %v2464_v59 = vsel %vm555_vm8, %v2416_v38, 0.0  ;;  %v2214_v2 = vadd.f32 %v2161_v30, %v2079_v37 }
 0x2dc   : > { %v2465_v5 = vadd.f32 %v2464_v59, %v2463_v35 }
 0x2dd   : > { %v2166_v3 = vpop.f32.mrf.mxu0  ;;  %v2246_v53 = vpack.c.bf16 %v2214_v2, %v2214_v2 }
 0x2de   : > { %v1890_v48 = vpop.f32.mrf.mxu2  ;;  %v1765_v21 = vpop.f32.mrf.mxu1 }
 0x2df   : > { %2279 = vst.msk [vmem:[%s2890_s16 + $0x48] sm:$0xf] %vm2260_vm10, %v2246_v53  ;;  %v2311_v24 = vunpack.c.l.bf16 %v2246_v53  ;;  %v1942_v58 = vadd.f32 %v1890_v48, %v1814_v12  ;;  %v1815_v20 = vadd.f32 %v1765_v21, %v3826_v0 }
 0x2e0   : > { %v2028_v47 = vpop.f32.mrf.mxu3 }
 0x2e1   : > { %v2361_v26 = vsel %vm555_vm8, %v2311_v24, 0.0  ;;  %v2417_v46 = vmul.f32 %v2311_v24, %v2311_v24  ;;  %v2080_v43 = vadd.f32 %v2028_v47, %v1942_v58 }
 0x2e2   : > { %v2362_v1 = vadd.f32 %v2361_v26, %v2360_v41 }
 0x2e3   : > { %v2466_v23 = vsel %vm555_vm8, %v2417_v46, 0.0  ;;  %v2215_v19 = vadd.f32 %v2163_v8, %v2080_v43 }
 0x2e4   : > { %v2467_v9 = vadd.f32 %v2466_v23, %v2465_v5 }
 0x2e5   : > { %v2168_v27 = vpop.f32.mrf.mxu0  ;;  %v2247_v57 = vpack.c.bf16 %v2215_v19, %v2215_v19 }
 0x2e6   : > { %v1893_v29 = vpop.f32.mrf.mxu2  ;;  %v1767_v30 = vpop.f32.mrf.mxu1 }
 0x2e7   : > { %2280 = vst.msk [vmem:[%s2890_s16 + $0x4c] sm:$0xf] %vm2260_vm10, %v2247_v57  ;;  %v2312_v40 = vunpack.c.l.bf16 %v2247_v57  ;;  %v1943_v61 = vadd.f32 %v1893_v29, %v1815_v20  ;;  %v1816_v0 = vadd.f32 %v1767_v30, %v3835_v52 }
 0x2e8   : > { %v2031_v18 = vpop.f32.mrf.mxu3 }
 0x2e9   : > { %v2363_v55 = vsel %vm555_vm8, %v2312_v40, 0.0  ;;  %v2418_v13 = vmul.f32 %v2312_v40, %v2312_v40  ;;  %v2081_v45 = vadd.f32 %v2031_v18, %v1943_v61 }
 0x2ea   : > { %v2364_v51 = vadd.f32 %v2363_v55, %v2362_v1 }
 0x2eb   : > { %v2468_v15 = vsel %vm555_vm8, %v2418_v13, 0.0  ;;  %v2216_v28 = vadd.f32 %v2166_v3, %v2081_v45 }
 0x2ec   : > { %v2469_v22 = vadd.f32 %v2468_v15, %v2467_v9 }
 0x2ed   : > { %v2171_v60 = vpop.f32.mrf.mxu0  ;;  %v2248_v33 = vpack.c.bf16 %v2216_v28, %v2216_v28 }
 0x2ee   : > { %v1895_v31 = vpop.f32.mrf.mxu2  ;;  %v1770_v17 = vpop.f32.mrf.mxu1 }
 0x2ef   : > { %2281 = vst.msk [vmem:[%s2890_s16 + $0x50] sm:$0xf] %vm2260_vm10, %v2248_v33  ;;  %v2313_v8 = vunpack.c.l.bf16 %v2248_v33  ;;  %v1944_v4 = vadd.f32 %v1895_v31, %v1816_v0  ;;  %v1817_v52 = vadd.f32 %v1770_v17, %v3840_v36 }
 0x2f0   : > { %v2033_v6 = vpop.f32.mrf.mxu3 }
 0x2f1   : > { %v2365_v35 = vsel %vm555_vm8, %v2313_v8, 0.0  ;;  %v2419_v10 = vmul.f32 %v2313_v8, %v2313_v8  ;;  %v2082_v34 = vadd.f32 %v2033_v6, %v1944_v4 }
 0x2f2   : > { %v2366_v56 = vadd.f32 %v2365_v35, %v2364_v51 }
 0x2f3   : > { %v2470_v16 = vsel %vm555_vm8, %v2419_v10, 0.0  ;;  %v2217_v42 = vadd.f32 %v2168_v27, %v2082_v34 }
 0x2f4   : > { %v2471_v62 = vadd.f32 %v2470_v16, %v2469_v22 }
 0x2f5   : > { %v2173_v7 = vpop.f32.mrf.mxu0  ;;  %v2249_v14 = vpack.c.bf16 %v2217_v42, %v2217_v42 }
 0x2f6   : > { %v1898_v38 = vpop.f32.mrf.mxu2  ;;  %v1772_v37 = vpop.f32.mrf.mxu1 }
 0x2f7   : > { %2282 = vst.msk [vmem:[%s2890_s16 + $0x54] sm:$0xf] %vm2260_vm10, %v2249_v14  ;;  %v2314_v41 = vunpack.c.l.bf16 %v2249_v14  ;;  %v1945_v3 = vadd.f32 %v1898_v38, %v1817_v52  ;;  %v1818_v36 = vadd.f32 %v1772_v37, %v3849_v11 }
 0x2f8   : > { %v2036_v59 = vpop.f32.mrf.mxu3 }
 0x2f9   : > { %v2367_v2 = vsel %vm555_vm8, %v2314_v41, 0.0  ;;  %v2420_v5 = vmul.f32 %v2314_v41, %v2314_v41  ;;  %v2083_v53 = vadd.f32 %v2036_v59, %v1945_v3 }
 0x2fa   : > { %v2368_v12 = vadd.f32 %v2367_v2, %v2366_v56 }
 0x2fb   : > { %v2472_v48 = vsel %vm555_vm8, %v2420_v5, 0.0  ;;  %v2218_v21 = vadd.f32 %v2171_v60, %v2083_v53 }
 0x2fc   : > { %v2473_v58 = vadd.f32 %v2472_v48, %v2471_v62 }
 0x2fd   : > { %v2176_v24 = vpop.f32.mrf.mxu0  ;;  %v2250_v47 = vpack.c.bf16 %v2218_v21, %v2218_v21 }
 0x2fe   : > { %v1900_v26 = vpop.f32.mrf.mxu2  ;;  %v1775_v46 = vpop.f32.mrf.mxu1 }
 0x2ff   : > { %2283 = vst.msk [vmem:[%s2890_s16 + $0x58] sm:$0xf] %vm2260_vm10, %v2250_v47  ;;  %v2315_v43 = vunpack.c.l.bf16 %v2250_v47  ;;  %v1946_v1 = vadd.f32 %v1900_v26, %v1818_v36  ;;  %v1819_v11 = vadd.f32 %v1775_v46, %v3854_v32 }
 0x300   : > { %v2038_v27 = vpop.f32.mrf.mxu3 }
 0x301   : > { %v2369_v23 = vsel %vm555_vm8, %v2315_v43, 0.0  ;;  %v2421_v19 = vmul.f32 %v2315_v43, %v2315_v43  ;;  %v2084_v9 = vadd.f32 %v2038_v27, %v1946_v1 }
 0x302   : > { %v2370_v57 = vadd.f32 %v2369_v23, %v2368_v12 }
 0x303   : > { %v2474_v20 = vsel %vm555_vm8, %v2421_v19, 0.0  ;;  %v2219_v29 = vadd.f32 %v2173_v7, %v2084_v9 }
 0x304   : > { %v2475_v30 = vadd.f32 %v2474_v20, %v2473_v58 }
 0x305   : > { %v2251_v40 = vpack.c.bf16 %v2219_v29, %v2219_v29  ;;  %v2178_v61 = vpop.f32.mrf.mxu0 }
 0x306   : > { %v1903_v18 = vpop.f32.mrf.mxu2  ;;  %v1777_v55 = vpop.f32.mrf.mxu1 }
 0x307   : > { %2284 = vst.msk [vmem:[%s2890_s16 + $0x5c] sm:$0xf] %vm2260_vm10, %v2251_v40  ;;  %v2316_v13 = vunpack.c.l.bf16 %v2251_v40  ;;  %v1947_v45 = vadd.f32 %v1903_v18, %v1819_v11  ;;  %v1820_v32 = vadd.f32 %v1777_v55, %v3863_v39 }
 0x308   : > { %v2041_v51 = vpop.f32.mrf.mxu3 }
 0x309   : > { %v2371_v60 = vsel %vm555_vm8, %v2316_v13, 0.0  ;;  %v2422_v15 = vmul.f32 %v2316_v13, %v2316_v13  ;;  %v2085_v28 = vadd.f32 %v2041_v51, %v1947_v45 }
 0x30a   : > { %v2372_v22 = vadd.f32 %v2371_v60, %v2370_v57 }
 0x30b   : > { %v2476_v33 = vsel %vm555_vm8, %v2422_v15, 0.0  ;;  %v2220_v0 = vadd.f32 %v2176_v24, %v2085_v28 }
 0x30c   : > { %v2477_v31 = vadd.f32 %v2476_v33, %v2475_v30 }
 0x30d   : > { %v2252_v17 = vpack.c.bf16 %v2220_v0, %v2220_v0  ;;  %v2181_v34 = vpop.f32.mrf.mxu0 }
 0x30e   : > { %v1905_v8 = vpop.f32.mrf.mxu2  ;;  %v1780_v4 = vpop.f32.mrf.mxu1 }
 0x30f   : > { %2285 = vst.msk [vmem:[%s2890_s16 + $0x60] sm:$0xf] %vm2260_vm10, %v2252_v17  ;;  %v2317_v6 = vunpack.c.l.bf16 %v2252_v17  ;;  %v1948_v35 = vadd.f32 %v1905_v8, %v1820_v32  ;;  %v1821_v39 = vadd.f32 %v1780_v4, %v3868_v63 }
 0x310   : > { %v2043_v10 = vpop.f32.mrf.mxu3 }
 0x311   : > { %v2373_v56 = vsel %vm555_vm8, %v2317_v6, 0.0  ;;  %v2423_v7 = vmul.f32 %v2317_v6, %v2317_v6  ;;  %v2086_v16 = vadd.f32 %v2043_v10, %v1948_v35 }
 0x312   : > { %v2374_v42 = vadd.f32 %v2373_v56, %v2372_v22 }
 0x313   : > { %v2478_v62 = vsel %vm555_vm8, %v2423_v7, 0.0  ;;  %v2221_v14 = vadd.f32 %v2178_v61, %v2086_v16 }
 0x314   : > { %v2479_v52 = vadd.f32 %v2478_v62, %v2477_v31 }
 0x315   : > { %v2253_v38 = vpack.c.bf16 %v2221_v14, %v2221_v14  ;;  %v2183_v21 = vpop.f32.mrf.mxu0 }
 0x316   : > { %v1908_v37 = vpop.f32.mrf.mxu2  ;;  %v1782_v41 = vpop.f32.mrf.mxu1 }
 0x317   : > { %2286 = vst.msk [vmem:[%s2890_s16 + $0x64] sm:$0xf] %vm2260_vm10, %v2253_v38  ;;  %v2318_v3 = vunpack.c.l.bf16 %v2253_v38  ;;  %v1949_v59 = vadd.f32 %v1908_v37, %v1821_v39  ;;  %v1822_v63 = vadd.f32 %v1782_v41, %v3877_v49 }
 0x318   : > { %v2046_v2 = vpop.f32.mrf.mxu3 }
 0x319   : > { %v2375_v5 = vsel %vm555_vm8, %v2318_v3, 0.0  ;;  %v2424_v53 = vmul.f32 %v2318_v3, %v2318_v3  ;;  %v2087_v12 = vadd.f32 %v2046_v2, %v1949_v59 }
 0x31a   : > { %v2376_v48 = vadd.f32 %v2375_v5, %v2374_v42 }
 0x31b   : > { %v2480_v24 = vsel %vm555_vm8, %v2424_v53, 0.0  ;;  %v2222_v58 = vadd.f32 %v2181_v34, %v2087_v12 }
 0x31c   : > { %v2481_v47 = vadd.f32 %v2480_v24, %v2479_v52 }
 0x31d   : > { %v2254_v36 = vpack.c.bf16 %v2222_v58, %v2222_v58  ;;  %v2186_v40 = vpop.f32.mrf.mxu0 }
 0x31e   : > { %v1910_v26 = vpop.f32.mrf.mxu2  ;;  %v1785_v46 = vpop.f32.mrf.mxu1 }
 0x31f   : > { %2287 = vst.msk [vmem:[%s2890_s16 + $0x68] sm:$0xf] %vm2260_vm10, %v2254_v36  ;;  %v2319_v43 = vunpack.c.l.bf16 %v2254_v36  ;;  %v1950_v1 = vadd.f32 %v1910_v26, %v1822_v63  ;;  %v1823_v49 = vadd.f32 %v1785_v46, %v3882_v54 }
 0x320   : > { %v2048_v27 = vpop.f32.mrf.mxu3 }
 0x321   : > { %v2377_v23 = vsel %vm555_vm8, %v2319_v43, 0.0  ;;  %v2425_v19 = vmul.f32 %v2319_v43, %v2319_v43  ;;  %v2088_v9 = vadd.f32 %v2048_v27, %v1950_v1 }
 0x322   : > { %v2378_v57 = vadd.f32 %v2377_v23, %v2376_v48 }
 0x323   : > { %v2482_v20 = vsel %vm555_vm8, %v2425_v19, 0.0  ;;  %v2223_v29 = vadd.f32 %v2183_v21, %v2088_v9 }
 0x324   : > { %v2483_v30 = vadd.f32 %v2482_v20, %v2481_v47 }
 0x325   : > { %v2255_v11 = vpack.c.bf16 %v2223_v29, %v2223_v29  ;;  %v2188_v17 = vpop.f32.mrf.mxu0 }
 0x326   : > { %v1913_v61 = vpop.f32.mrf.mxu2  ;;  %v1787_v18 = vpop.f32.mrf.mxu1 }
 0x327   : > { %2288 = vst.msk [vmem:[%s2890_s16 + $0x6c] sm:$0xf] %vm2260_vm10, %v2255_v11  ;;  %v2320_v55 = vunpack.c.l.bf16 %v2255_v11  ;;  %v1951_v13 = vadd.f32 %v1913_v61, %v1823_v49  ;;  %v1824_v54 = vadd.f32 %v1787_v18, %v3891_v50 }
 0x328   : > { %v2051_v45 = vpop.f32.mrf.mxu3 }
 0x329   : > { %v2379_v51 = vsel %vm555_vm8, %v2320_v55, 0.0  ;;  %v2426_v60 = vmul.f32 %v2320_v55, %v2320_v55  ;;  %v2089_v15 = vadd.f32 %v2051_v45, %v1951_v13 }
 0x32a   : > { %v2380_v28 = vadd.f32 %v2379_v51, %v2378_v57 }
 0x32b   : > { %v2484_v22 = vsel %vm555_vm8, %v2426_v60, 0.0  ;;  %v2224_v33 = vadd.f32 %v2186_v40, %v2089_v15 }
 0x32c   : > { %v2485_v0 = vadd.f32 %v2484_v22, %v2483_v30 }
 0x32d   : > { %v2256_v31 = vpack.c.bf16 %v2224_v33, %v2224_v33  ;;  %v2191_v37 = vpop.f32.mrf.mxu0 }
 0x32e   : > { %v1915_v32 = vpop.f32.mrf.mxu2  ;;  %v1790_v35 = vpop.f32.mrf.mxu1 }
 0x32f   : > { %2289 = vst.msk [vmem:[%s2890_s16 + $0x70] sm:$0xf] %vm2260_vm10, %v2256_v31  ;;  %v2321_v8 = vunpack.c.l.bf16 %v2256_v31  ;;  %v1952_v4 = vadd.f32 %v1915_v32, %v1824_v54  ;;  %v1825_v50 = vadd.f32 %v1790_v35, %v3896_v44 }
 0x330   : > { %v2053_v6 = vpop.f32.mrf.mxu3 }
 0x331   : > { %v2381_v10 = vsel %vm555_vm8, %v2321_v8, 0.0  ;;  %v2427_v34 = vmul.f32 %v2321_v8, %v2321_v8  ;;  %v2090_v56 = vadd.f32 %v2053_v6, %v1952_v4 }
 0x332   : > { %v2382_v7 = vadd.f32 %v2381_v10, %v2380_v28  ;;  %v2325_v28 = vld [vmem:[%s4155_s7] sm:$0x1] }
 0x333   : > { %v2486_v16 = vsel %vm555_vm8, %v2427_v34, 0.0  ;;  %v2225_v42 = vadd.f32 %v2188_v17, %v2090_v56 }
 0x334   : > { %v2487_v62 = vadd.f32 %v2486_v16, %v2485_v0  ;;  %v2398_v0 = vld [vmem:[%s4156_s8] sm:$0x1] }
 0x335   : > { %v2257_v14 = vpack.c.bf16 %v2225_v42, %v2225_v42  ;;  %v2193_v27 = vpop.f32.mrf.mxu0 }
 0x336   : > { %v1918_v52 = vpop.f32.mrf.mxu2  ;;  %v1792_v53 = vpop.f32.mrf.mxu1 }
 0x337   : > { %2290 = vst.msk [vmem:[%s2890_s16 + $0x74] sm:$0xf] %vm2260_vm10, %v2257_v14  ;;  %v2322_v38 = vunpack.c.l.bf16 %v2257_v14  ;;  %v1953_v39 = vadd.f32 %v1918_v52, %v1825_v50  ;;  %v1826_v44 = vadd.f32 %v1792_v53, %v3905_v25 }
 0x338   : > { %v2056_v41 = vpop.f32.mrf.mxu3 }
 0x339   : > { %v2383_v3 = vsel %vm555_vm8, %v2322_v38, 0.0  ;;  %v2428_v59 = vmul.f32 %v2322_v38, %v2322_v38  ;;  %v2091_v2 = vadd.f32 %v2056_v41, %v1953_v39 }
 0x33a   : > { %v2384_v5 = vadd.f32 %v2383_v3, %v2382_v7 }
 0x33b   : > { %v2488_v12 = vsel %vm555_vm8, %v2428_v59, 0.0  ;;  %v2226_v48 = vadd.f32 %v2191_v37, %v2091_v2 }
 0x33c   : > { %v2489_v21 = vadd.f32 %v2488_v12, %v2487_v62 }
 0x33d   : > { %v2258_v24 = vpack.c.bf16 %v2226_v48, %v2226_v48 }
 0x33e   : > { %v1920_v58 = vpop.f32.mrf.mxu2 }
 0x33f   : > { %2291 = vst.msk [vmem:[%s2890_s16 + $0x78] sm:$0xf] %vm2260_vm10, %v2258_v24  ;;  %v2323_v47 = vunpack.c.l.bf16 %v2258_v24  ;;  %v1954_v36 = vadd.f32 %v1920_v58, %v1826_v44 }
 0x340   : > { %v2058_v63 = vpop.f32.mrf.mxu3 }
 0x341   : > { %v2385_v26 = vsel %vm555_vm8, %v2323_v47, 0.0  ;;  %v2429_v46 = vmul.f32 %v2323_v47, %v2323_v47  ;;  %v2092_v43 = vadd.f32 %v2058_v63, %v1954_v36 }
 0x342   : > { %v2386_v1 = vadd.f32 %v2385_v26, %v2384_v5 }
 0x343   : > { %v2490_v23 = vsel %vm555_vm8, %v2429_v46, 0.0  ;;  %v2227_v19 = vadd.f32 %v2193_v27, %v2092_v43 }
 0x344   : > { %v2491_v9 = vadd.f32 %v2490_v23, %v2489_v21 }
 0x345   : > { %v2259_v57 = vpack.c.bf16 %v2227_v19, %v2227_v19 }
 0x347   : > { %2292 = vst.msk [vmem:[%s2890_s16 + $0x7c] sm:$0xf] %vm2260_vm10, %v2259_v57  ;;  %v2324_v25 = vunpack.c.l.bf16 %v2259_v57 }
 0x349   : > { %v2387_v20 = vsel %vm555_vm8, %v2324_v25, 0.0  ;;  %v2430_v29 = vmul.f32 %v2324_v25, %v2324_v25 }
 0x34a   : > { %v2388_v30 = vadd.f32 %v2387_v20, %v2386_v1 }
 0x34b   : > { %v2492_v40 = vsel %vm555_vm8, %v2430_v29, 0.0 }
 0x34c   : > { %v2389_v11 = vrot.slane %v2388_v30, 4  ;;  %v2493_v49 = vadd.f32 %v2492_v40, %v2491_v9 }
 0x34e   : > { %v2390_v61 = vadd.f32 %v2389_v11, %v2388_v30  ;;  %v2494_v18 = vrot.slane %v2493_v49, 4 }
 0x350   : > { %v2391_v55 = vrot.slane %v2390_v61, 2  ;;  %v2495_v13 = vadd.f32 %v2494_v18, %v2493_v49 }
 0x352   : > { %v2392_v45 = vadd.f32 %v2391_v55, %v2390_v61  ;;  %v2496_v51 = vrot.slane %v2495_v13, 2 }
 0x354   : > { %v2393_v60 = vrot.slane %v2392_v45, 1  ;;  %v2497_v15 = vadd.f32 %v2496_v51, %v2495_v13 }
 0x356   : > { %v2394_v22 = vadd.f32 %v2393_v60, %v2392_v45  ;;  %v2498_v33 = vrot.slane %v2497_v15, 1 }
 0x358   : > { %v2395_v31 = vadd.f32 %v2394_v22, %v2325_v28  ;;  %v2499_v54 = vadd.f32 %v2498_v33, %v2497_v15 }
 0x35a   : > { %2397 = vst.msk [vmem:[%s4155_s7] sm:$0x1] %vm2396_vm11, %v2395_v31  ;;  %v2500_v17 = vadd.f32 %v2499_v54, %v2398_v0 }
 0x35c   : > { %2501 = vst.msk [vmem:[%s4156_s8] sm:$0x1] %vm2396_vm11, %v2500_v17 }
 0x35d PF: > { %s19_s27 = sadd.s32 1, %s2826_s27  }
 0x35e   : > { %p16_p6 = scmp.ge.s32.totalorder %s19_s27, 4  }
 0x360   :  { %18 = sbr.rel (!%p16_p6) target bundleno = 1 (0x1), region = 95 }

</bundles_post_ra>
